<compile_context>
chip_gen: v7x
topology: tpu7x:2x2x1
jax: 0.10.0
libtpu: 0.0.40
codegen_flags: <defaults>
</compile_context>

<pallas_src>
import functools

import jax
import jax.numpy as jnp
from jax.experimental import pallas as pl
from jax.experimental.pallas import tpu as pltpu

EPS = 1e-3          # BatchNorm3d(eps=0.001)
NEG_SLOPE = 0.01    # nn.LeakyReLU default negative_slope
VMEM_LIMIT = 48 * 1024 * 1024


def _leaky_relu(x):
    return jnp.where(x >= 0, x, NEG_SLOPE * x)


def _fold_bn(p):
    s = p['gamma'] / jnp.sqrt(p['var'] + EPS)
    b = p['beta'] - p['mean'] * s
    return s, b


def _row_plan(m):
    """Pick a row tile (prefer >=2 grid steps, up to 1024 rows) + padded rows."""
    tm = None
    for cand in (1024, 512, 256, 128):
        if m >= 2 * cand:
            tm = cand
            break
    if tm is None:
        tm = ((m + 7) // 8) * 8
    m_pad = ((m + tm - 1) // tm) * tm
    return tm, m_pad


def dual_path_block_forward(x, params, cfg):
    """x: (N, C, D, H, W) float32 NCDHW. Returns (resid, dense), both NCDHW."""
    n, c, d, h, w = x.shape
    n1c, inc, groups = cfg['num_1x1_c'], cfg['inc'], cfg['groups']
    ca = cfg['num_1x1_a']
    cb = cfg['num_3x3_b']
    cs = n1c + 2 * inc          # projection output channels
    cc = n1c + inc              # c1x1_c output channels
    m = n * d * h * w

    # ---- parameters: fold BN, cast matmul weights to bf16 ----
    s_s1, b_s1 = _fold_bn(params['c1x1_w_s1'])
    s_a, b_a = _fold_bn(params['c1x1_a'])
    s_b, b_b = _fold_bn(params['c3x3_b'])
    s_c, b_c = _fold_bn(params['c1x1_c'])

    w_s1 = params['c1x1_w_s1']['w'].reshape(cs, c).T.astype(jnp.bfloat16)   # (C,  Cs)
    w_a = params['c1x1_a']['w'].reshape(ca, c).T.astype(jnp.bfloat16)       # (C,  Ca)
    w_c = params['c1x1_c']['w'].reshape(cc, cb).T.astype(jnp.bfloat16)      # (Cb, Cc)

    # block-diagonal (over groups) 3x3x3 weight, laid out per tap: (27, Ca, Cb)
    cin_g, cout_g = ca // groups, cb // groups
    w3 = params['c3x3_b']['w']                                   # (Cb, Ca//g, 3,3,3)
    w_bd = jnp.zeros((27, ca, cb), jnp.float32)
    for g in range(groups):
        wg = jnp.transpose(w3[g * cout_g:(g + 1) * cout_g], (2, 3, 4, 1, 0))
        wg = wg.reshape(27, cin_g, cout_g)
        w_bd = w_bd.at[:, g * cin_g:(g + 1) * cin_g,
                       g * cout_g:(g + 1) * cout_g].set(wg)
    w_bd = w_bd.astype(jnp.bfloat16)

    # ---- layout: NCDHW -> (M, C) channels-last rows ----
    x2d = jnp.transpose(x, (0, 2, 3, 4, 1)).reshape(m, c)
    tm, m_pad = _row_plan(m)
    if m_pad != m:
        x2d = jnp.pad(x2d, ((0, m_pad - m), (0, 0)))

    row_spec = lambda width: pl.BlockSpec((tm, width), lambda i: (i, 0))
    vec_spec = lambda width: pl.BlockSpec((1, width), lambda i: (0, 0))
    mat_spec = lambda rows, cols: pl.BlockSpec((rows, cols), lambda i: (0, 0))

    # ------------- kernel A: proj + c1x1_a + c3x3_b BN/act, fused -------------
    def kernel_a(x_ref, ss1_ref, bs1_ref, sa_ref, ba_ref, sb_ref, bb_ref,
                 ws1_ref, wa_ref, xs_ref, h1_ref):
        xv = x_ref[...]
        a_s = _leaky_relu(xv * ss1_ref[...] + bs1_ref[...])
        a_a = _leaky_relu(xv * sa_ref[...] + ba_ref[...])
        xs = jnp.dot(a_s.astype(jnp.bfloat16), ws1_ref[...],
                     preferred_element_type=jnp.float32)
        h1 = jnp.dot(a_a.astype(jnp.bfloat16), wa_ref[...],
                     preferred_element_type=jnp.float32)
        xs_ref[...] = xs
        h1_ref[...] = _leaky_relu(h1 * sb_ref[...] + bb_ref[...]).astype(h1_ref.dtype)

    x_s, h1act = pl.pallas_call(
        kernel_a,
        out_shape=(jax.ShapeDtypeStruct((m_pad, cs), jnp.float32),
                   jax.ShapeDtypeStruct((m_pad, ca), jnp.bfloat16)),
        grid=(m_pad // tm,),
        in_specs=[row_spec(c),
                  vec_spec(c), vec_spec(c), vec_spec(c), vec_spec(c),
                  vec_spec(ca), vec_spec(ca),
                  mat_spec(c, cs), mat_spec(c, ca)],
        out_specs=(row_spec(cs), row_spec(ca)),
        compiler_params=pltpu.CompilerParams(
            dimension_semantics=("parallel",), vmem_limit_bytes=VMEM_LIMIT),
    )(x2d, s_s1.reshape(1, c), b_s1.reshape(1, c),
      s_a.reshape(1, c), b_a.reshape(1, c),
      s_b.reshape(1, ca), b_b.reshape(1, ca), w_s1, w_a)

    # ------------- kernel B: grouped 3x3x3 conv (27 shifted matmuls) -------------
    wp = w + 2                    # zero-padded width
    th = h * wp                   # rows computed per (n, d) step (W-pad cols = junk)
    pplane = (h + 3) * wp         # padded plane rows (+1 extra bottom row keeps
                                  # the largest shifted tap slice in-bounds)
    h1_5d = h1act[:m].reshape(n, d, h, w, ca)
    h1_pad = jnp.pad(h1_5d, ((0, 0), (1, 1), (1, 2), (1, 1), (0, 0)))
    xp = h1_pad.reshape(n, d + 2, pplane, ca)
    # TODO(synk): for very large D*H*W the full padded volume per batch item may
    #             exceed VMEM; a D-tiled variant with halo planes would be needed.

    def kernel_b(xp_ref, wbd_ref, o_ref):
        dd = pl.program_id(1)
        acc = jnp.zeros((th, cb), jnp.float32)
        t = 0
        for kd in range(3):
            for kh in range(3):
                for kw in range(3):
                    patch = xp_ref[dd + kd, pl.ds(kh * wp + kw, th), :]
                    acc = acc + jnp.dot(patch, wbd_ref[t],
                                        preferred_element_type=jnp.float32)
                    t += 1
        o_ref[...] = acc.astype(o_ref.dtype)

    h2p = pl.pallas_call(
        kernel_b,
        out_shape=jax.ShapeDtypeStruct((n, d, th, cb), jnp.bfloat16),
        grid=(n, d),
        in_specs=[pl.BlockSpec((None, d + 2, pplane, ca),
                               lambda bi, di: (bi, 0, 0, 0)),
                  pl.BlockSpec((27, ca, cb), lambda bi, di: (0, 0, 0))],
        out_specs=pl.BlockSpec((None, None, th, cb),
                               lambda bi, di: (bi, di, 0, 0)),
        compiler_params=pltpu.CompilerParams(
            dimension_semantics=("parallel", "parallel"),
            vmem_limit_bytes=VMEM_LIMIT),
    )(xp, w_bd)

    # drop the junk W-pad columns -> (M, Cb)
    h2 = h2p.reshape(n, d, h, wp, cb)[:, :, :, :w, :].reshape(m, cb)
    if m_pad != m:
        h2 = jnp.pad(h2, ((0, m_pad - m), (0, 0)))

    # ------------- kernel C: c1x1_c + residual add + dense concat -------------
    def kernel_c(h2_ref, xs_ref, sc_ref, bc_ref, wc_ref, resid_ref, dense_ref):
        a = _leaky_relu(h2_ref[...].astype(jnp.float32) * sc_ref[...] + bc_ref[...])
        y = jnp.dot(a.astype(jnp.bfloat16), wc_ref[...],
                    preferred_element_type=jnp.float32)
        xs = xs_ref[...]
        resid_ref[...] = xs[:, :n1c] + y[:, :n1c]
        dense_ref[...] = jnp.concatenate([xs[:, n1c:], y[:, n1c:]], axis=-1)

    resid2d, dense2d = pl.pallas_call(
        kernel_c,
        out_shape=(jax.ShapeDtypeStruct((m_pad, n1c), jnp.float32),
                   jax.ShapeDtypeStruct((m_pad, 3 * inc), jnp.float32)),
        grid=(m_pad // tm,),
        in_specs=[row_spec(cb), row_spec(cs),
                  vec_spec(cb), vec_spec(cb), mat_spec(cb, cc)],
        out_specs=(row_spec(n1c), row_spec(3 * inc)),
        compiler_params=pltpu.CompilerParams(
            dimension_semantics=("parallel",), vmem_limit_bytes=VMEM_LIMIT),
    )(h2, x_s, s_c.reshape(1, cb), b_c.reshape(1, cb), w_c)

    def to_ncdhw(y2d):
        ch = y2d.shape[-1]
        return jnp.transpose(y2d[:m].reshape(n, d, h, w, ch), (0, 4, 1, 2, 3))

    return to_ncdhw(resid2d), to_ncdhw(dense2d)


# ------------- reference (plain JAX / XLA conv, mirrors PyTorch, f32) -------------

def _ref_forward(x, params, cfg):
    num_1x1_c, groups = cfg['num_1x1_c'], cfg['groups']

    def bn_act(z, p):
        s = p['gamma'] / jnp.sqrt(p['var'] + EPS)
        b = p['beta'] - p['mean'] * s
        y = z * s.reshape(1, -1, 1, 1, 1) + b.reshape(1, -1, 1, 1, 1)
        return jnp.where(y >= 0, y, NEG_SLOPE * y)

    def conv(z, wgt, stride=1, pad=0, g=1):
        return jax.lax.conv_general_dilated(
            z, wgt, window_strides=(stride,) * 3, padding=[(pad, pad)] * 3,
            dimension_numbers=('NCDHW', 'OIDHW', 'NCDHW'),
            feature_group_count=g)

    x_s = conv(bn_act(x, params['c1x1_w_s1']), params['c1x1_w_s1']['w'])
    x_s1, x_s2 = x_s[:, :num_1x1_c], x_s[:, num_1x1_c:]
    hh = conv(bn_act(x, params['c1x1_a']), params['c1x1_a']['w'])
    hh = conv(bn_act(hh, params['c3x3_b']), params['c3x3_b']['w'],
              stride=1, pad=1, g=groups)
    hh = conv(bn_act(hh, params['c1x1_c']), params['c1x1_c']['w'])
    out1, out2 = hh[:, :num_1x1_c], hh[:, num_1x1_c:]
    return x_s1 + out1, jnp.concatenate([x_s2, out2], axis=1)


# ----------------------------- parameter init -----------------------------

def init_bn_conv(key, in_chs, out_chs, k, groups=1):
    k1, k2, k3, k4, k5 = jax.random.split(key, 5)
    fan_in = (in_chs // groups) * k * k * k
    return dict(
        gamma=jax.random.uniform(k1, (in_chs,), jnp.float32, 0.5, 1.5),
        beta=0.1 * jax.random.normal(k2, (in_chs,), jnp.float32),
        mean=0.1 * jax.random.normal(k3, (in_chs,), jnp.float32),
        var=jax.random.uniform(k4, (in_chs,), jnp.float32, 0.5, 1.5),
        # PyTorch Conv3d weight layout: (out_chs, in_chs // groups, kD, kH, kW)
        w=jax.random.normal(k5, (out_chs, in_chs // groups, k, k, k), jnp.float32)
          / jnp.sqrt(float(fan_in)),
    )


if __name__ == "__main__":
    cfg = dict(in_chs=16, num_1x1_a=8, num_3x3_b=8, num_1x1_c=8, inc=4, groups=2)
    N, D, H, W = 2, 4, 8, 8

    key = jax.random.PRNGKey(0)
    kx, k1, k2, k3, k4 = jax.random.split(key, 5)
    x = jax.random.normal(kx, (N, cfg['in_chs'], D, H, W), dtype=jnp.float32)

    params = {
        'c1x1_w_s1': init_bn_conv(k1, cfg['in_chs'], cfg['num_1x1_c'] + 2 * cfg['inc'], 1),
        'c1x1_a':    init_bn_conv(k2, cfg['in_chs'], cfg['num_1x1_a'], 1),
        'c3x3_b':    init_bn_conv(k3, cfg['num_1x1_a'], cfg['num_3x3_b'], 3,
                                  groups=cfg['groups']),
        'c1x1_c':    init_bn_conv(k4, cfg['num_3x3_b'], cfg['num_1x1_c'] + cfg['inc'], 1),
    }

    fwd = jax.jit(functools.partial(dual_path_block_forward, cfg=cfg))
    resid, dense = fwd(x, params)
    jax.block_until_ready((resid, dense))

    # sanity: shapes + numerical check against an f32 XLA-conv reference
    # (kernels use bf16 MXU inputs with f32 accumulation -> slightly looser tol)
    assert resid.shape == (N, cfg['num_1x1_c'], D, H, W)
    assert dense.shape == (N, 3 * cfg['inc'], D, H, W)
    resid_ref, dense_ref = _ref_forward(x, params, cfg)
    assert jnp.allclose(resid, resid_ref, atol=5e-2, rtol=5e-2)
    assert jnp.allclose(dense, dense_ref, atol=5e-2, rtol=5e-2)

    print("KERNEL_OK")
</pallas_src>

<mosaic_0001>
module attributes {stable_mosaic.version = 11 : i64} {
  func.func @kernel_a(%arg0: i32, %arg1: memref<256x16xf32, #tpu.memory_space<vmem>>, %arg2: memref<1x16xf32, #tpu.memory_space<vmem>>, %arg3: memref<1x16xf32, #tpu.memory_space<vmem>>, %arg4: memref<1x16xf32, #tpu.memory_space<vmem>>, %arg5: memref<1x16xf32, #tpu.memory_space<vmem>>, %arg6: memref<1x8xf32, #tpu.memory_space<vmem>>, %arg7: memref<1x8xf32, #tpu.memory_space<vmem>>, %arg8: memref<16x16xbf16, #tpu.memory_space<vmem>>, %arg9: memref<16x8xbf16, #tpu.memory_space<vmem>>, %arg10: memref<256x16xf32, #tpu.memory_space<vmem>>, %arg11: memref<256x8xbf16, #tpu.memory_space<vmem>>) attributes {dimension_semantics = [#tpu.dimension_semantics<parallel>], iteration_bounds = array<i64: 2>, scalar_prefetch = 0 : i64, scratch_operands = 0 : i64, tpu.core_type = #tpu.core_type<tc>, window_params = [{transform_indices = @transform_0, window_bounds = array<i64: 256, 16>}, {pipeline_mode = #tpu.pipeline_mode<synchronous>, transform_indices = @transform_1, window_bounds = array<i64: 1, 16>}, {pipeline_mode = #tpu.pipeline_mode<synchronous>, transform_indices = @transform_2, window_bounds = array<i64: 1, 16>}, {pipeline_mode = #tpu.pipeline_mode<synchronous>, transform_indices = @transform_3, window_bounds = array<i64: 1, 16>}, {pipeline_mode = #tpu.pipeline_mode<synchronous>, transform_indices = @transform_4, window_bounds = array<i64: 1, 16>}, {pipeline_mode = #tpu.pipeline_mode<synchronous>, transform_indices = @transform_5, window_bounds = array<i64: 1, 8>}, {pipeline_mode = #tpu.pipeline_mode<synchronous>, transform_indices = @transform_6, window_bounds = array<i64: 1, 8>}, {pipeline_mode = #tpu.pipeline_mode<synchronous>, transform_indices = @transform_7, window_bounds = array<i64: 16, 16>}, {pipeline_mode = #tpu.pipeline_mode<synchronous>, transform_indices = @transform_8, window_bounds = array<i64: 16, 8>}, {transform_indices = @transform_9, window_bounds = array<i64: 256, 16>}, {transform_indices = @transform_10, window_bounds = array<i64: 256, 8>}]} {
    %c0 = arith.constant 0 : index
    %c0_0 = arith.constant 0 : index
    %0 = vector.load %arg1[%c0, %c0_0] : memref<256x16xf32, #tpu.memory_space<vmem>>, vector<256x16xf32>
    %c0_1 = arith.constant 0 : index
    %c0_2 = arith.constant 0 : index
    %1 = vector.load %arg2[%c0_1, %c0_2] : memref<1x16xf32, #tpu.memory_space<vmem>>, vector<1x16xf32>
    %2 = vector.broadcast %1 : vector<1x16xf32> to vector<256x16xf32>
    %3 = arith.mulf %0, %2 : vector<256x16xf32>
    %c0_3 = arith.constant 0 : index
    %c0_4 = arith.constant 0 : index
    %4 = vector.load %arg3[%c0_3, %c0_4] : memref<1x16xf32, #tpu.memory_space<vmem>>, vector<1x16xf32>
    %5 = vector.broadcast %4 : vector<1x16xf32> to vector<256x16xf32>
    %6 = arith.addf %3, %5 : vector<256x16xf32>
    %cst = arith.constant 0.000000e+00 : f32
    %7 = vector.broadcast %cst : f32 to vector<256x16xf32>
    %8 = arith.cmpf oge, %6, %7 : vector<256x16xf32>
    %cst_5 = arith.constant 0.00999999977 : f32
    %9 = vector.broadcast %cst_5 : f32 to vector<256x16xf32>
    %10 = arith.mulf %9, %6 : vector<256x16xf32>
    %11 = arith.select %8, %6, %10 : vector<256x16xi1>, vector<256x16xf32>
    %c0_6 = arith.constant 0 : index
    %c0_7 = arith.constant 0 : index
    %12 = vector.load %arg4[%c0_6, %c0_7] : memref<1x16xf32, #tpu.memory_space<vmem>>, vector<1x16xf32>
    %13 = vector.broadcast %12 : vector<1x16xf32> to vector<256x16xf32>
    %14 = arith.mulf %0, %13 : vector<256x16xf32>
    %c0_8 = arith.constant 0 : index
    %c0_9 = arith.constant 0 : index
    %15 = vector.load %arg5[%c0_8, %c0_9] : memref<1x16xf32, #tpu.memory_space<vmem>>, vector<1x16xf32>
    %16 = vector.broadcast %15 : vector<1x16xf32> to vector<256x16xf32>
    %17 = arith.addf %14, %16 : vector<256x16xf32>
    %cst_10 = arith.constant 0.000000e+00 : f32
    %18 = vector.broadcast %cst_10 : f32 to vector<256x16xf32>
    %19 = arith.cmpf oge, %17, %18 : vector<256x16xf32>
    %cst_11 = arith.constant 0.00999999977 : f32
    %20 = vector.broadcast %cst_11 : f32 to vector<256x16xf32>
    %21 = arith.mulf %20, %17 : vector<256x16xf32>
    %22 = arith.select %19, %17, %21 : vector<256x16xi1>, vector<256x16xf32>
    %23 = arith.truncf %11 : vector<256x16xf32> to vector<256x16xbf16>
    %c0_12 = arith.constant 0 : index
    %c0_13 = arith.constant 0 : index
    %24 = vector.load %arg8[%c0_12, %c0_13] : memref<16x16xbf16, #tpu.memory_space<vmem>>, vector<16x16xbf16>
    %cst_14 = arith.constant dense<0.000000e+00> : vector<256x16xf32>
    %25 = tpu.matmul %23, %24, %cst_14 {dimension_numbers = #tpu.dot_dimension_numbers<[1], [0], [0], [1], [0, 0, 1, 1], [], []>} : vector<256x16xbf16>, vector<16x16xbf16>, vector<256x16xf32> -> vector<256x16xf32>
    %26 = arith.truncf %22 : vector<256x16xf32> to vector<256x16xbf16>
    %c0_15 = arith.constant 0 : index
    %c0_16 = arith.constant 0 : index
    %27 = vector.load %arg9[%c0_15, %c0_16] : memref<16x8xbf16, #tpu.memory_space<vmem>>, vector<16x8xbf16>
    %cst_17 = arith.constant dense<0.000000e+00> : vector<256x8xf32>
    %28 = tpu.matmul %26, %27, %cst_17 {dimension_numbers = #tpu.dot_dimension_numbers<[1], [0], [0], [1], [0, 0, 1, 1], [], []>} : vector<256x16xbf16>, vector<16x8xbf16>, vector<256x8xf32> -> vector<256x8xf32>
    %c0_18 = arith.constant 0 : index
    %c0_19 = arith.constant 0 : index
    %29 = vector.load %arg10[%c0_18, %c0_19] : memref<256x16xf32, #tpu.memory_space<vmem>>, vector<256x16xf32>
    tpu.vector_store %arg10[%c0_18, %c0_19], %25 {strides = array<i32>} : memref<256x16xf32, #tpu.memory_space<vmem>>, vector<256x16xf32>,
    %c0_20 = arith.constant 0 : index
    %c0_21 = arith.constant 0 : index
    %30 = vector.load %arg6[%c0_20, %c0_21] : memref<1x8xf32, #tpu.memory_space<vmem>>, vector<1x8xf32>
    %31 = vector.broadcast %30 : vector<1x8xf32> to vector<256x8xf32>
    %32 = arith.mulf %28, %31 : vector<256x8xf32>
    %c0_22 = arith.constant 0 : index
    %c0_23 = arith.constant 0 : index
    %33 = vector.load %arg7[%c0_22, %c0_23] : memref<1x8xf32, #tpu.memory_space<vmem>>, vector<1x8xf32>
    %34 = vector.broadcast %33 : vector<1x8xf32> to vector<256x8xf32>
    %35 = arith.addf %32, %34 : vector<256x8xf32>
    %cst_24 = arith.constant 0.000000e+00 : f32
    %36 = vector.broadcast %cst_24 : f32 to vector<256x8xf32>
    %37 = arith.cmpf oge, %35, %36 : vector<256x8xf32>
    %cst_25 = arith.constant 0.00999999977 : f32
    %38 = vector.broadcast %cst_25 : f32 to vector<256x8xf32>
    %39 = arith.mulf %38, %35 : vector<256x8xf32>
    %40 = arith.select %37, %35, %39 : vector<256x8xi1>, vector<256x8xf32>
    %41 = arith.truncf %40 : vector<256x8xf32> to vector<256x8xbf16>
    %c0_26 = arith.constant 0 : index
    %c0_27 = arith.constant 0 : index
    %42 = vector.load %arg11[%c0_26, %c0_27] : memref<256x8xbf16, #tpu.memory_space<vmem>>, vector<256x8xbf16>
    tpu.vector_store %arg11[%c0_26, %c0_27], %41 {strides = array<i32>} : memref<256x8xbf16, #tpu.memory_space<vmem>>, vector<256x8xbf16>,
    return
  }
  func.func @transform_0(%arg0: i32) -> (i32, i32) {
    %c0_i32 = arith.constant 0 : i32
    %c0_i32_0 = arith.constant 0 : i32
    return %arg0, %c0_i32 : i32, i32
  }
  func.func @transform_1(%arg0: i32) -> (i32, i32) {
    %c0_i32 = arith.constant 0 : i32
    %c0_i32_0 = arith.constant 0 : i32
    %c0_i32_1 = arith.constant 0 : i32
    return %c0_i32, %c0_i32_0 : i32, i32
  }
  func.func @transform_2(%arg0: i32) -> (i32, i32) {
    %c0_i32 = arith.constant 0 : i32
    %c0_i32_0 = arith.constant 0 : i32
    %c0_i32_1 = arith.constant 0 : i32
    return %c0_i32, %c0_i32_0 : i32, i32
  }
  func.func @transform_3(%arg0: i32) -> (i32, i32) {
    %c0_i32 = arith.constant 0 : i32
    %c0_i32_0 = arith.constant 0 : i32
    %c0_i32_1 = arith.constant 0 : i32
    return %c0_i32, %c0_i32_0 : i32, i32
  }
  func.func @transform_4(%arg0: i32) -> (i32, i32) {
    %c0_i32 = arith.constant 0 : i32
    %c0_i32_0 = arith.constant 0 : i32
    %c0_i32_1 = arith.constant 0 : i32
    return %c0_i32, %c0_i32_0 : i32, i32
  }
  func.func @transform_5(%arg0: i32) -> (i32, i32) {
    %c0_i32 = arith.constant 0 : i32
    %c0_i32_0 = arith.constant 0 : i32
    %c0_i32_1 = arith.constant 0 : i32
    return %c0_i32, %c0_i32_0 : i32, i32
  }
  func.func @transform_6(%arg0: i32) -> (i32, i32) {
    %c0_i32 = arith.constant 0 : i32
    %c0_i32_0 = arith.constant 0 : i32
    %c0_i32_1 = arith.constant 0 : i32
    return %c0_i32, %c0_i32_0 : i32, i32
  }
  func.func @transform_7(%arg0: i32) -> (i32, i32) {
    %c0_i32 = arith.constant 0 : i32
    %c0_i32_0 = arith.constant 0 : i32
    %c0_i32_1 = arith.constant 0 : i32
    return %c0_i32, %c0_i32_0 : i32, i32
  }
  func.func @transform_8(%arg0: i32) -> (i32, i32) {
    %c0_i32 = arith.constant 0 : i32
    %c0_i32_0 = arith.constant 0 : i32
    %c0_i32_1 = arith.constant 0 : i32
    return %c0_i32, %c0_i32_0 : i32, i32
  }
  func.func @transform_9(%arg0: i32) -> (i32, i32) {
    %c0_i32 = arith.constant 0 : i32
    %c0_i32_0 = arith.constant 0 : i32
    return %arg0, %c0_i32 : i32, i32
  }
  func.func @transform_10(%arg0: i32) -> (i32, i32) {
    %c0_i32 = arith.constant 0 : i32
    %c0_i32_0 = arith.constant 0 : i32
    return %arg0, %c0_i32 : i32, i32
  }
}

module attributes {stable_mosaic.version = 11 : i64} {
  func.func @kernel_b(%arg0: i32, %arg1: i32, %arg2: memref<1x6x110x8xbf16, #tpu.memory_space<vmem>>, %arg3: memref<27x8x8xbf16, #tpu.memory_space<vmem>>, %arg4: memref<1x1x80x8xbf16, #tpu.memory_space<vmem>>) attributes {dimension_semantics = [#tpu.dimension_semantics<parallel>, #tpu.dimension_semantics<parallel>], iteration_bounds = array<i64: 2, 4>, scalar_prefetch = 0 : i64, scratch_operands = 0 : i64, tpu.core_type = #tpu.core_type<tc>, window_params = [{transform_indices = @transform_0, window_bounds = array<i64: 1, 6, 110, 8>}, {pipeline_mode = #tpu.pipeline_mode<synchronous>, transform_indices = @transform_1, window_bounds = array<i64: 27, 8, 8>}, {transform_indices = @transform_2, window_bounds = array<i64: 1, 1, 80, 8>}]} {
    %cst = arith.constant 0.000000e+00 : f32
    %0 = vector.broadcast %cst : f32 to vector<80x8xf32>
    %c0_i32 = arith.constant 0 : i32
    %1 = arith.addi %arg1, %c0_i32 : i32
    %c0 = arith.constant 0 : index
    %2 = arith.index_cast %1 : i32 to index
    %c0_0 = arith.constant 0 : index
    %c0_1 = arith.constant 0 : index
    %3 = vector.load %arg2[%c0, %2, %c0_0, %c0_1] : memref<1x6x110x8xbf16, #tpu.memory_space<vmem>>, vector<1x1x80x8xbf16>
    %4 = vector.shape_cast %3 : vector<1x1x80x8xbf16> to vector<80x8xbf16>
    %c0_2 = arith.constant 0 : index
    %c0_3 = arith.constant 0 : index
    %c0_4 = arith.constant 0 : index
    %5 = vector.load %arg3[%c0_2, %c0_3, %c0_4] : memref<27x8x8xbf16, #tpu.memory_space<vmem>>, vector<1x8x8xbf16>
    %6 = vector.shape_cast %5 : vector<1x8x8xbf16> to vector<8x8xbf16>
    %cst_5 = arith.constant dense<0.000000e+00> : vector<80x8xf32>
    %7 = tpu.matmul %4, %6, %cst_5 {dimension_numbers = #tpu.dot_dimension_numbers<[1], [0], [0], [1], [0, 0, 1, 1], [], []>} : vector<80x8xbf16>, vector<8x8xbf16>, vector<80x8xf32> -> vector<80x8xf32>
    %8 = arith.addf %0, %7 : vector<80x8xf32>
    %c0_i32_6 = arith.constant 0 : i32
    %9 = arith.addi %arg1, %c0_i32_6 : i32
    %c0_7 = arith.constant 0 : index
    %10 = arith.index_cast %9 : i32 to index
    %c1 = arith.constant 1 : index
    %c0_8 = arith.constant 0 : index
    %11 = vector.load %arg2[%c0_7, %10, %c1, %c0_8] : memref<1x6x110x8xbf16, #tpu.memory_space<vmem>>, vector<1x1x80x8xbf16>
    %12 = vector.shape_cast %11 : vector<1x1x80x8xbf16> to vector<80x8xbf16>
    %c1_9 = arith.constant 1 : index
    %c0_10 = arith.constant 0 : index
    %c0_11 = arith.constant 0 : index
    %13 = vector.load %arg3[%c1_9, %c0_10, %c0_11] : memref<27x8x8xbf16, #tpu.memory_space<vmem>>, vector<1x8x8xbf16>
    %14 = vector.shape_cast %13 : vector<1x8x8xbf16> to vector<8x8xbf16>
    %cst_12 = arith.constant dense<0.000000e+00> : vector<80x8xf32>
    %15 = tpu.matmul %12, %14, %cst_12 {dimension_numbers = #tpu.dot_dimension_numbers<[1], [0], [0], [1], [0, 0, 1, 1], [], []>} : vector<80x8xbf16>, vector<8x8xbf16>, vector<80x8xf32> -> vector<80x8xf32>
    %16 = arith.addf %8, %15 : vector<80x8xf32>
    %c0_i32_13 = arith.constant 0 : i32
    %17 = arith.addi %arg1, %c0_i32_13 : i32
    %c0_14 = arith.constant 0 : index
    %18 = arith.index_cast %17 : i32 to index
    %c2 = arith.constant 2 : index
    %c0_15 = arith.constant 0 : index
    %19 = vector.load %arg2[%c0_14, %18, %c2, %c0_15] : memref<1x6x110x8xbf16, #tpu.memory_space<vmem>>, vector<1x1x80x8xbf16>
    %20 = vector.shape_cast %19 : vector<1x1x80x8xbf16> to vector<80x8xbf16>
    %c2_16 = arith.constant 2 : index
    %c0_17 = arith.constant 0 : index
    %c0_18 = arith.constant 0 : index
    %21 = vector.load %arg3[%c2_16, %c0_17, %c0_18] : memref<27x8x8xbf16, #tpu.memory_space<vmem>>, vector<1x8x8xbf16>
    %22 = vector.shape_cast %21 : vector<1x8x8xbf16> to vector<8x8xbf16>
    %cst_19 = arith.constant dense<0.000000e+00> : vector<80x8xf32>
    %23 = tpu.matmul %20, %22, %cst_19 {dimension_numbers = #tpu.dot_dimension_numbers<[1], [0], [0], [1], [0, 0, 1, 1], [], []>} : vector<80x8xbf16>, vector<8x8xbf16>, vector<80x8xf32> -> vector<80x8xf32>
    %24 = arith.addf %16, %23 : vector<80x8xf32>
    %c0_i32_20 = arith.constant 0 : i32
    %25 = arith.addi %arg1, %c0_i32_20 : i32
    %c0_21 = arith.constant 0 : index
    %26 = arith.index_cast %25 : i32 to index
    %c10 = arith.constant 10 : index
    %c0_22 = arith.constant 0 : index
    %27 = vector.load %arg2[%c0_21, %26, %c10, %c0_22] : memref<1x6x110x8xbf16, #tpu.memory_space<vmem>>, vector<1x1x80x8xbf16>
    %28 = vector.shape_cast %27 : vector<1x1x80x8xbf16> to vector<80x8xbf16>
    %c3 = arith.constant 3 : index
    %c0_23 = arith.constant 0 : index
    %c0_24 = arith.constant 0 : index
    %29 = vector.load %arg3[%c3, %c0_23, %c0_24] : memref<27x8x8xbf16, #tpu.memory_space<vmem>>, vector<1x8x8xbf16>
    %30 = vector.shape_cast %29 : vector<1x8x8xbf16> to vector<8x8xbf16>
    %cst_25 = arith.constant dense<0.000000e+00> : vector<80x8xf32>
    %31 = tpu.matmul %28, %30, %cst_25 {dimension_numbers = #tpu.dot_dimension_numbers<[1], [0], [0], [1], [0, 0, 1, 1], [], []>} : vector<80x8xbf16>, vector<8x8xbf16>, vector<80x8xf32> -> vector<80x8xf32>
    %32 = arith.addf %24, %31 : vector<80x8xf32>
    %c0_i32_26 = arith.constant 0 : i32
    %33 = arith.addi %arg1, %c0_i32_26 : i32
    %c0_27 = arith.constant 0 : index
    %34 = arith.index_cast %33 : i32 to index
    %c11 = arith.constant 11 : index
    %c0_28 = arith.constant 0 : index
    %35 = vector.load %arg2[%c0_27, %34, %c11, %c0_28] : memref<1x6x110x8xbf16, #tpu.memory_space<vmem>>, vector<1x1x80x8xbf16>
    %36 = vector.shape_cast %35 : vector<1x1x80x8xbf16> to vector<80x8xbf16>
    %c4 = arith.constant 4 : index
    %c0_29 = arith.constant 0 : index
    %c0_30 = arith.constant 0 : index
    %37 = vector.load %arg3[%c4, %c0_29, %c0_30] : memref<27x8x8xbf16, #tpu.memory_space<vmem>>, vector<1x8x8xbf16>
    %38 = vector.shape_cast %37 : vector<1x8x8xbf16> to vector<8x8xbf16>
    %cst_31 = arith.constant dense<0.000000e+00> : vector<80x8xf32>
    %39 = tpu.matmul %36, %38, %cst_31 {dimension_numbers = #tpu.dot_dimension_numbers<[1], [0], [0], [1], [0, 0, 1, 1], [], []>} : vector<80x8xbf16>, vector<8x8xbf16>, vector<80x8xf32> -> vector<80x8xf32>
    %40 = arith.addf %32, %39 : vector<80x8xf32>
    %c0_i32_32 = arith.constant 0 : i32
    %41 = arith.addi %arg1, %c0_i32_32 : i32
    %c0_33 = arith.constant 0 : index
    %42 = arith.index_cast %41 : i32 to index
    %c12 = arith.constant 12 : index
    %c0_34 = arith.constant 0 : index
    %43 = vector.load %arg2[%c0_33, %42, %c12, %c0_34] : memref<1x6x110x8xbf16, #tpu.memory_space<vmem>>, vector<1x1x80x8xbf16>
    %44 = vector.shape_cast %43 : vector<1x1x80x8xbf16> to vector<80x8xbf16>
    %c5 = arith.constant 5 : index
    %c0_35 = arith.constant 0 : index
    %c0_36 = arith.constant 0 : index
    %45 = vector.load %arg3[%c5, %c0_35, %c0_36] : memref<27x8x8xbf16, #tpu.memory_space<vmem>>, vector<1x8x8xbf16>
    %46 = vector.shape_cast %45 : vector<1x8x8xbf16> to vector<8x8xbf16>
    %cst_37 = arith.constant dense<0.000000e+00> : vector<80x8xf32>
    %47 = tpu.matmul %44, %46, %cst_37 {dimension_numbers = #tpu.dot_dimension_numbers<[1], [0], [0], [1], [0, 0, 1, 1], [], []>} : vector<80x8xbf16>, vector<8x8xbf16>, vector<80x8xf32> -> vector<80x8xf32>
    %48 = arith.addf %40, %47 : vector<80x8xf32>
    %c0_i32_38 = arith.constant 0 : i32
    %49 = arith.addi %arg1, %c0_i32_38 : i32
    %c0_39 = arith.constant 0 : index
    %50 = arith.index_cast %49 : i32 to index
    %c20 = arith.constant 20 : index
    %c0_40 = arith.constant 0 : index
    %51 = vector.load %arg2[%c0_39, %50, %c20, %c0_40] : memref<1x6x110x8xbf16, #tpu.memory_space<vmem>>, vector<1x1x80x8xbf16>
    %52 = vector.shape_cast %51 : vector<1x1x80x8xbf16> to vector<80x8xbf16>
    %c6 = arith.constant 6 : index
    %c0_41 = arith.constant 0 : index
    %c0_42 = arith.constant 0 : index
    %53 = vector.load %arg3[%c6, %c0_41, %c0_42] : memref<27x8x8xbf16, #tpu.memory_space<vmem>>, vector<1x8x8xbf16>
    %54 = vector.shape_cast %53 : vector<1x8x8xbf16> to vector<8x8xbf16>
    %cst_43 = arith.constant dense<0.000000e+00> : vector<80x8xf32>
    %55 = tpu.matmul %52, %54, %cst_43 {dimension_numbers = #tpu.dot_dimension_numbers<[1], [0], [0], [1], [0, 0, 1, 1], [], []>} : vector<80x8xbf16>, vector<8x8xbf16>, vector<80x8xf32> -> vector<80x8xf32>
    %56 = arith.addf %48, %55 : vector<80x8xf32>
    %c0_i32_44 = arith.constant 0 : i32
    %57 = arith.addi %arg1, %c0_i32_44 : i32
    %c0_45 = arith.constant 0 : index
    %58 = arith.index_cast %57 : i32 to index
    %c21 = arith.constant 21 : index
    %c0_46 = arith.constant 0 : index
    %59 = vector.load %arg2[%c0_45, %58, %c21, %c0_46] : memref<1x6x110x8xbf16, #tpu.memory_space<vmem>>, vector<1x1x80x8xbf16>
    %60 = vector.shape_cast %59 : vector<1x1x80x8xbf16> to vector<80x8xbf16>
    %c7 = arith.constant 7 : index
    %c0_47 = arith.constant 0 : index
    %c0_48 = arith.constant 0 : index
    %61 = vector.load %arg3[%c7, %c0_47, %c0_48] : memref<27x8x8xbf16, #tpu.memory_space<vmem>>, vector<1x8x8xbf16>
    %62 = vector.shape_cast %61 : vector<1x8x8xbf16> to vector<8x8xbf16>
    %cst_49 = arith.constant dense<0.000000e+00> : vector<80x8xf32>
    %63 = tpu.matmul %60, %62, %cst_49 {dimension_numbers = #tpu.dot_dimension_numbers<[1], [0], [0], [1], [0, 0, 1, 1], [], []>} : vector<80x8xbf16>, vector<8x8xbf16>, vector<80x8xf32> -> vector<80x8xf32>
    %64 = arith.addf %56, %63 : vector<80x8xf32>
    %c0_i32_50 = arith.constant 0 : i32
    %65 = arith.addi %arg1, %c0_i32_50 : i32
    %c0_51 = arith.constant 0 : index
    %66 = arith.index_cast %65 : i32 to index
    %c22 = arith.constant 22 : index
    %c0_52 = arith.constant 0 : index
    %67 = vector.load %arg2[%c0_51, %66, %c22, %c0_52] : memref<1x6x110x8xbf16, #tpu.memory_space<vmem>>, vector<1x1x80x8xbf16>
    %68 = vector.shape_cast %67 : vector<1x1x80x8xbf16> to vector<80x8xbf16>
    %c8 = arith.constant 8 : index
    %c0_53 = arith.constant 0 : index
    %c0_54 = arith.constant 0 : index
    %69 = vector.load %arg3[%c8, %c0_53, %c0_54] : memref<27x8x8xbf16, #tpu.memory_space<vmem>>, vector<1x8x8xbf16>
    %70 = vector.shape_cast %69 : vector<1x8x8xbf16> to vector<8x8xbf16>
    %cst_55 = arith.constant dense<0.000000e+00> : vector<80x8xf32>
    %71 = tpu.matmul %68, %70, %cst_55 {dimension_numbers = #tpu.dot_dimension_numbers<[1], [0], [0], [1], [0, 0, 1, 1], [], []>} : vector<80x8xbf16>, vector<8x8xbf16>, vector<80x8xf32> -> vector<80x8xf32>
    %72 = arith.addf %64, %71 : vector<80x8xf32>
    %c1_i32 = arith.constant 1 : i32
    %73 = arith.addi %arg1, %c1_i32 : i32
    %c0_56 = arith.constant 0 : index
    %74 = arith.index_cast %73 : i32 to index
    %c0_57 = arith.constant 0 : index
    %c0_58 = arith.constant 0 : index
    %75 = vector.load %arg2[%c0_56, %74, %c0_57, %c0_58] : memref<1x6x110x8xbf16, #tpu.memory_space<vmem>>, vector<1x1x80x8xbf16>
    %76 = vector.shape_cast %75 : vector<1x1x80x8xbf16> to vector<80x8xbf16>
    %c9 = arith.constant 9 : index
    %c0_59 = arith.constant 0 : index
    %c0_60 = arith.constant 0 : index
    %77 = vector.load %arg3[%c9, %c0_59, %c0_60] : memref<27x8x8xbf16, #tpu.memory_space<vmem>>, vector<1x8x8xbf16>
    %78 = vector.shape_cast %77 : vector<1x8x8xbf16> to vector<8x8xbf16>
    %cst_61 = arith.constant dense<0.000000e+00> : vector<80x8xf32>
    %79 = tpu.matmul %76, %78, %cst_61 {dimension_numbers = #tpu.dot_dimension_numbers<[1], [0], [0], [1], [0, 0, 1, 1], [], []>} : vector<80x8xbf16>, vector<8x8xbf16>, vector<80x8xf32> -> vector<80x8xf32>
    %80 = arith.addf %72, %79 : vector<80x8xf32>
    %c1_i32_62 = arith.constant 1 : i32
    %81 = arith.addi %arg1, %c1_i32_62 : i32
    %c0_63 = arith.constant 0 : index
    %82 = arith.index_cast %81 : i32 to index
    %c1_64 = arith.constant 1 : index
    %c0_65 = arith.constant 0 : index
    %83 = vector.load %arg2[%c0_63, %82, %c1_64, %c0_65] : memref<1x6x110x8xbf16, #tpu.memory_space<vmem>>, vector<1x1x80x8xbf16>
    %84 = vector.shape_cast %83 : vector<1x1x80x8xbf16> to vector<80x8xbf16>
    %c10_66 = arith.constant 10 : index
    %c0_67 = arith.constant 0 : index
    %c0_68 = arith.constant 0 : index
    %85 = vector.load %arg3[%c10_66, %c0_67, %c0_68] : memref<27x8x8xbf16, #tpu.memory_space<vmem>>, vector<1x8x8xbf16>
    %86 = vector.shape_cast %85 : vector<1x8x8xbf16> to vector<8x8xbf16>
    %cst_69 = arith.constant dense<0.000000e+00> : vector<80x8xf32>
    %87 = tpu.matmul %84, %86, %cst_69 {dimension_numbers = #tpu.dot_dimension_numbers<[1], [0], [0], [1], [0, 0, 1, 1], [], []>} : vector<80x8xbf16>, vector<8x8xbf16>, vector<80x8xf32> -> vector<80x8xf32>
    %88 = arith.addf %80, %87 : vector<80x8xf32>
    %c1_i32_70 = arith.constant 1 : i32
    %89 = arith.addi %arg1, %c1_i32_70 : i32
    %c0_71 = arith.constant 0 : index
    %90 = arith.index_cast %89 : i32 to index
    %c2_72 = arith.constant 2 : index
    %c0_73 = arith.constant 0 : index
    %91 = vector.load %arg2[%c0_71, %90, %c2_72, %c0_73] : memref<1x6x110x8xbf16, #tpu.memory_space<vmem>>, vector<1x1x80x8xbf16>
    %92 = vector.shape_cast %91 : vector<1x1x80x8xbf16> to vector<80x8xbf16>
    %c11_74 = arith.constant 11 : index
    %c0_75 = arith.constant 0 : index
    %c0_76 = arith.constant 0 : index
    %93 = vector.load %arg3[%c11_74, %c0_75, %c0_76] : memref<27x8x8xbf16, #tpu.memory_space<vmem>>, vector<1x8x8xbf16>
    %94 = vector.shape_cast %93 : vector<1x8x8xbf16> to vector<8x8xbf16>
    %cst_77 = arith.constant dense<0.000000e+00> : vector<80x8xf32>
    %95 = tpu.matmul %92, %94, %cst_77 {dimension_numbers = #tpu.dot_dimension_numbers<[1], [0], [0], [1], [0, 0, 1, 1], [], []>} : vector<80x8xbf16>, vector<8x8xbf16>, vector<80x8xf32> -> vector<80x8xf32>
    %96 = arith.addf %88, %95 : vector<80x8xf32>
    %c1_i32_78 = arith.constant 1 : i32
    %97 = arith.addi %arg1, %c1_i32_78 : i32
    %c0_79 = arith.constant 0 : index
    %98 = arith.index_cast %97 : i32 to index
    %c10_80 = arith.constant 10 : index
    %c0_81 = arith.constant 0 : index
    %99 = vector.load %arg2[%c0_79, %98, %c10_80, %c0_81] : memref<1x6x110x8xbf16, #tpu.memory_space<vmem>>, vector<1x1x80x8xbf16>
    %100 = vector.shape_cast %99 : vector<1x1x80x8xbf16> to vector<80x8xbf16>
    %c12_82 = arith.constant 12 : index
    %c0_83 = arith.constant 0 : index
    %c0_84 = arith.constant 0 : index
    %101 = vector.load %arg3[%c12_82, %c0_83, %c0_84] : memref<27x8x8xbf16, #tpu.memory_space<vmem>>, vector<1x8x8xbf16>
    %102 = vector.shape_cast %101 : vector<1x8x8xbf16> to vector<8x8xbf16>
    %cst_85 = arith.constant dense<0.000000e+00> : vector<80x8xf32>
    %103 = tpu.matmul %100, %102, %cst_85 {dimension_numbers = #tpu.dot_dimension_numbers<[1], [0], [0], [1], [0, 0, 1, 1], [], []>} : vector<80x8xbf16>, vector<8x8xbf16>, vector<80x8xf32> -> vector<80x8xf32>
    %104 = arith.addf %96, %103 : vector<80x8xf32>
    %c1_i32_86 = arith.constant 1 : i32
    %105 = arith.addi %arg1, %c1_i32_86 : i32
    %c0_87 = arith.constant 0 : index
    %106 = arith.index_cast %105 : i32 to index
    %c11_88 = arith.constant 11 : index
    %c0_89 = arith.constant 0 : index
    %107 = vector.load %arg2[%c0_87, %106, %c11_88, %c0_89] : memref<1x6x110x8xbf16, #tpu.memory_space<vmem>>, vector<1x1x80x8xbf16>
    %108 = vector.shape_cast %107 : vector<1x1x80x8xbf16> to vector<80x8xbf16>
    %c13 = arith.constant 13 : index
    %c0_90 = arith.constant 0 : index
    %c0_91 = arith.constant 0 : index
    %109 = vector.load %arg3[%c13, %c0_90, %c0_91] : memref<27x8x8xbf16, #tpu.memory_space<vmem>>, vector<1x8x8xbf16>
    %110 = vector.shape_cast %109 : vector<1x8x8xbf16> to vector<8x8xbf16>
    %cst_92 = arith.constant dense<0.000000e+00> : vector<80x8xf32>
    %111 = tpu.matmul %108, %110, %cst_92 {dimension_numbers = #tpu.dot_dimension_numbers<[1], [0], [0], [1], [0, 0, 1, 1], [], []>} : vector<80x8xbf16>, vector<8x8xbf16>, vector<80x8xf32> -> vector<80x8xf32>
    %112 = arith.addf %104, %111 : vector<80x8xf32>
    %c1_i32_93 = arith.constant 1 : i32
    %113 = arith.addi %arg1, %c1_i32_93 : i32
    %c0_94 = arith.constant 0 : index
    %114 = arith.index_cast %113 : i32 to index
    %c12_95 = arith.constant 12 : index
    %c0_96 = arith.constant 0 : index
    %115 = vector.load %arg2[%c0_94, %114, %c12_95, %c0_96] : memref<1x6x110x8xbf16, #tpu.memory_space<vmem>>, vector<1x1x80x8xbf16>
    %116 = vector.shape_cast %115 : vector<1x1x80x8xbf16> to vector<80x8xbf16>
    %c14 = arith.constant 14 : index
    %c0_97 = arith.constant 0 : index
    %c0_98 = arith.constant 0 : index
    %117 = vector.load %arg3[%c14, %c0_97, %c0_98] : memref<27x8x8xbf16, #tpu.memory_space<vmem>>, vector<1x8x8xbf16>
    %118 = vector.shape_cast %117 : vector<1x8x8xbf16> to vector<8x8xbf16>
    %cst_99 = arith.constant dense<0.000000e+00> : vector<80x8xf32>
    %119 = tpu.matmul %116, %118, %cst_99 {dimension_numbers = #tpu.dot_dimension_numbers<[1], [0], [0], [1], [0, 0, 1, 1], [], []>} : vector<80x8xbf16>, vector<8x8xbf16>, vector<80x8xf32> -> vector<80x8xf32>
    %120 = arith.addf %112, %119 : vector<80x8xf32>
    %c1_i32_100 = arith.constant 1 : i32
    %121 = arith.addi %arg1, %c1_i32_100 : i32
    %c0_101 = arith.constant 0 : index
    %122 = arith.index_cast %121 : i32 to index
    %c20_102 = arith.constant 20 : index
    %c0_103 = arith.constant 0 : index
    %123 = vector.load %arg2[%c0_101, %122, %c20_102, %c0_103] : memref<1x6x110x8xbf16, #tpu.memory_space<vmem>>, vector<1x1x80x8xbf16>
    %124 = vector.shape_cast %123 : vector<1x1x80x8xbf16> to vector<80x8xbf16>
    %c15 = arith.constant 15 : index
    %c0_104 = arith.constant 0 : index
    %c0_105 = arith.constant 0 : index
    %125 = vector.load %arg3[%c15, %c0_104, %c0_105] : memref<27x8x8xbf16, #tpu.memory_space<vmem>>, vector<1x8x8xbf16>
    %126 = vector.shape_cast %125 : vector<1x8x8xbf16> to vector<8x8xbf16>
    %cst_106 = arith.constant dense<0.000000e+00> : vector<80x8xf32>
    %127 = tpu.matmul %124, %126, %cst_106 {dimension_numbers = #tpu.dot_dimension_numbers<[1], [0], [0], [1], [0, 0, 1, 1], [], []>} : vector<80x8xbf16>, vector<8x8xbf16>, vector<80x8xf32> -> vector<80x8xf32>
    %128 = arith.addf %120, %127 : vector<80x8xf32>
    %c1_i32_107 = arith.constant 1 : i32
    %129 = arith.addi %arg1, %c1_i32_107 : i32
    %c0_108 = arith.constant 0 : index
    %130 = arith.index_cast %129 : i32 to index
    %c21_109 = arith.constant 21 : index
    %c0_110 = arith.constant 0 : index
    %131 = vector.load %arg2[%c0_108, %130, %c21_109, %c0_110] : memref<1x6x110x8xbf16, #tpu.memory_space<vmem>>, vector<1x1x80x8xbf16>
    %132 = vector.shape_cast %131 : vector<1x1x80x8xbf16> to vector<80x8xbf16>
    %c16 = arith.constant 16 : index
    %c0_111 = arith.constant 0 : index
    %c0_112 = arith.constant 0 : index
    %133 = vector.load %arg3[%c16, %c0_111, %c0_112] : memref<27x8x8xbf16, #tpu.memory_space<vmem>>, vector<1x8x8xbf16>
    %134 = vector.shape_cast %133 : vector<1x8x8xbf16> to vector<8x8xbf16>
    %cst_113 = arith.constant dense<0.000000e+00> : vector<80x8xf32>
    %135 = tpu.matmul %132, %134, %cst_113 {dimension_numbers = #tpu.dot_dimension_numbers<[1], [0], [0], [1], [0, 0, 1, 1], [], []>} : vector<80x8xbf16>, vector<8x8xbf16>, vector<80x8xf32> -> vector<80x8xf32>
    %136 = arith.addf %128, %135 : vector<80x8xf32>
    %c1_i32_114 = arith.constant 1 : i32
    %137 = arith.addi %arg1, %c1_i32_114 : i32
    %c0_115 = arith.constant 0 : index
    %138 = arith.index_cast %137 : i32 to index
    %c22_116 = arith.constant 22 : index
    %c0_117 = arith.constant 0 : index
    %139 = vector.load %arg2[%c0_115, %138, %c22_116, %c0_117] : memref<1x6x110x8xbf16, #tpu.memory_space<vmem>>, vector<1x1x80x8xbf16>
    %140 = vector.shape_cast %139 : vector<1x1x80x8xbf16> to vector<80x8xbf16>
    %c17 = arith.constant 17 : index
    %c0_118 = arith.constant 0 : index
    %c0_119 = arith.constant 0 : index
    %141 = vector.load %arg3[%c17, %c0_118, %c0_119] : memref<27x8x8xbf16, #tpu.memory_space<vmem>>, vector<1x8x8xbf16>
    %142 = vector.shape_cast %141 : vector<1x8x8xbf16> to vector<8x8xbf16>
    %cst_120 = arith.constant dense<0.000000e+00> : vector<80x8xf32>
    %143 = tpu.matmul %140, %142, %cst_120 {dimension_numbers = #tpu.dot_dimension_numbers<[1], [0], [0], [1], [0, 0, 1, 1], [], []>} : vector<80x8xbf16>, vector<8x8xbf16>, vector<80x8xf32> -> vector<80x8xf32>
    %144 = arith.addf %136, %143 : vector<80x8xf32>
    %c2_i32 = arith.constant 2 : i32
    %145 = arith.addi %arg1, %c2_i32 : i32
    %c0_121 = arith.constant 0 : index
    %146 = arith.index_cast %145 : i32 to index
    %c0_122 = arith.constant 0 : index
    %c0_123 = arith.constant 0 : index
    %147 = vector.load %arg2[%c0_121, %146, %c0_122, %c0_123] : memref<1x6x110x8xbf16, #tpu.memory_space<vmem>>, vector<1x1x80x8xbf16>
    %148 = vector.shape_cast %147 : vector<1x1x80x8xbf16> to vector<80x8xbf16>
    %c18 = arith.constant 18 : index
    %c0_124 = arith.constant 0 : index
    %c0_125 = arith.constant 0 : index
    %149 = vector.load %arg3[%c18, %c0_124, %c0_125] : memref<27x8x8xbf16, #tpu.memory_space<vmem>>, vector<1x8x8xbf16>
    %150 = vector.shape_cast %149 : vector<1x8x8xbf16> to vector<8x8xbf16>
    %cst_126 = arith.constant dense<0.000000e+00> : vector<80x8xf32>
    %151 = tpu.matmul %148, %150, %cst_126 {dimension_numbers = #tpu.dot_dimension_numbers<[1], [0], [0], [1], [0, 0, 1, 1], [], []>} : vector<80x8xbf16>, vector<8x8xbf16>, vector<80x8xf32> -> vector<80x8xf32>
    %152 = arith.addf %144, %151 : vector<80x8xf32>
    %c2_i32_127 = arith.constant 2 : i32
    %153 = arith.addi %arg1, %c2_i32_127 : i32
    %c0_128 = arith.constant 0 : index
    %154 = arith.index_cast %153 : i32 to index
    %c1_129 = arith.constant 1 : index
    %c0_130 = arith.constant 0 : index
    %155 = vector.load %arg2[%c0_128, %154, %c1_129, %c0_130] : memref<1x6x110x8xbf16, #tpu.memory_space<vmem>>, vector<1x1x80x8xbf16>
    %156 = vector.shape_cast %155 : vector<1x1x80x8xbf16> to vector<80x8xbf16>
    %c19 = arith.constant 19 : index
    %c0_131 = arith.constant 0 : index
    %c0_132 = arith.constant 0 : index
    %157 = vector.load %arg3[%c19, %c0_131, %c0_132] : memref<27x8x8xbf16, #tpu.memory_space<vmem>>, vector<1x8x8xbf16>
    %158 = vector.shape_cast %157 : vector<1x8x8xbf16> to vector<8x8xbf16>
    %cst_133 = arith.constant dense<0.000000e+00> : vector<80x8xf32>
    %159 = tpu.matmul %156, %158, %cst_133 {dimension_numbers = #tpu.dot_dimension_numbers<[1], [0], [0], [1], [0, 0, 1, 1], [], []>} : vector<80x8xbf16>, vector<8x8xbf16>, vector<80x8xf32> -> vector<80x8xf32>
    %160 = arith.addf %152, %159 : vector<80x8xf32>
    %c2_i32_134 = arith.constant 2 : i32
    %161 = arith.addi %arg1, %c2_i32_134 : i32
    %c0_135 = arith.constant 0 : index
    %162 = arith.index_cast %161 : i32 to index
    %c2_136 = arith.constant 2 : index
    %c0_137 = arith.constant 0 : index
    %163 = vector.load %arg2[%c0_135, %162, %c2_136, %c0_137] : memref<1x6x110x8xbf16, #tpu.memory_space<vmem>>, vector<1x1x80x8xbf16>
    %164 = vector.shape_cast %163 : vector<1x1x80x8xbf16> to vector<80x8xbf16>
    %c20_138 = arith.constant 20 : index
    %c0_139 = arith.constant 0 : index
    %c0_140 = arith.constant 0 : index
    %165 = vector.load %arg3[%c20_138, %c0_139, %c0_140] : memref<27x8x8xbf16, #tpu.memory_space<vmem>>, vector<1x8x8xbf16>
    %166 = vector.shape_cast %165 : vector<1x8x8xbf16> to vector<8x8xbf16>
    %cst_141 = arith.constant dense<0.000000e+00> : vector<80x8xf32>
    %167 = tpu.matmul %164, %166, %cst_141 {dimension_numbers = #tpu.dot_dimension_numbers<[1], [0], [0], [1], [0, 0, 1, 1], [], []>} : vector<80x8xbf16>, vector<8x8xbf16>, vector<80x8xf32> -> vector<80x8xf32>
    %168 = arith.addf %160, %167 : vector<80x8xf32>
    %c2_i32_142 = arith.constant 2 : i32
    %169 = arith.addi %arg1, %c2_i32_142 : i32
    %c0_143 = arith.constant 0 : index
    %170 = arith.index_cast %169 : i32 to index
    %c10_144 = arith.constant 10 : index
    %c0_145 = arith.constant 0 : index
    %171 = vector.load %arg2[%c0_143, %170, %c10_144, %c0_145] : memref<1x6x110x8xbf16, #tpu.memory_space<vmem>>, vector<1x1x80x8xbf16>
    %172 = vector.shape_cast %171 : vector<1x1x80x8xbf16> to vector<80x8xbf16>
    %c21_146 = arith.constant 21 : index
    %c0_147 = arith.constant 0 : index
    %c0_148 = arith.constant 0 : index
    %173 = vector.load %arg3[%c21_146, %c0_147, %c0_148] : memref<27x8x8xbf16, #tpu.memory_space<vmem>>, vector<1x8x8xbf16>
    %174 = vector.shape_cast %173 : vector<1x8x8xbf16> to vector<8x8xbf16>
    %cst_149 = arith.constant dense<0.000000e+00> : vector<80x8xf32>
    %175 = tpu.matmul %172, %174, %cst_149 {dimension_numbers = #tpu.dot_dimension_numbers<[1], [0], [0], [1], [0, 0, 1, 1], [], []>} : vector<80x8xbf16>, vector<8x8xbf16>, vector<80x8xf32> -> vector<80x8xf32>
    %176 = arith.addf %168, %175 : vector<80x8xf32>
    %c2_i32_150 = arith.constant 2 : i32
    %177 = arith.addi %arg1, %c2_i32_150 : i32
    %c0_151 = arith.constant 0 : index
    %178 = arith.index_cast %177 : i32 to index
    %c11_152 = arith.constant 11 : index
    %c0_153 = arith.constant 0 : index
    %179 = vector.load %arg2[%c0_151, %178, %c11_152, %c0_153] : memref<1x6x110x8xbf16, #tpu.memory_space<vmem>>, vector<1x1x80x8xbf16>
    %180 = vector.shape_cast %179 : vector<1x1x80x8xbf16> to vector<80x8xbf16>
    %c22_154 = arith.constant 22 : index
    %c0_155 = arith.constant 0 : index
    %c0_156 = arith.constant 0 : index
    %181 = vector.load %arg3[%c22_154, %c0_155, %c0_156] : memref<27x8x8xbf16, #tpu.memory_space<vmem>>, vector<1x8x8xbf16>
    %182 = vector.shape_cast %181 : vector<1x8x8xbf16> to vector<8x8xbf16>
    %cst_157 = arith.constant dense<0.000000e+00> : vector<80x8xf32>
    %183 = tpu.matmul %180, %182, %cst_157 {dimension_numbers = #tpu.dot_dimension_numbers<[1], [0], [0], [1], [0, 0, 1, 1], [], []>} : vector<80x8xbf16>, vector<8x8xbf16>, vector<80x8xf32> -> vector<80x8xf32>
    %184 = arith.addf %176, %183 : vector<80x8xf32>
    %c2_i32_158 = arith.constant 2 : i32
    %185 = arith.addi %arg1, %c2_i32_158 : i32
    %c0_159 = arith.constant 0 : index
    %186 = arith.index_cast %185 : i32 to index
    %c12_160 = arith.constant 12 : index
    %c0_161 = arith.constant 0 : index
    %187 = vector.load %arg2[%c0_159, %186, %c12_160, %c0_161] : memref<1x6x110x8xbf16, #tpu.memory_space<vmem>>, vector<1x1x80x8xbf16>
    %188 = vector.shape_cast %187 : vector<1x1x80x8xbf16> to vector<80x8xbf16>
    %c23 = arith.constant 23 : index
    %c0_162 = arith.constant 0 : index
    %c0_163 = arith.constant 0 : index
    %189 = vector.load %arg3[%c23, %c0_162, %c0_163] : memref<27x8x8xbf16, #tpu.memory_space<vmem>>, vector<1x8x8xbf16>
    %190 = vector.shape_cast %189 : vector<1x8x8xbf16> to vector<8x8xbf16>
    %cst_164 = arith.constant dense<0.000000e+00> : vector<80x8xf32>
    %191 = tpu.matmul %188, %190, %cst_164 {dimension_numbers = #tpu.dot_dimension_numbers<[1], [0], [0], [1], [0, 0, 1, 1], [], []>} : vector<80x8xbf16>, vector<8x8xbf16>, vector<80x8xf32> -> vector<80x8xf32>
    %192 = arith.addf %184, %191 : vector<80x8xf32>
    %c2_i32_165 = arith.constant 2 : i32
    %193 = arith.addi %arg1, %c2_i32_165 : i32
    %c0_166 = arith.constant 0 : index
    %194 = arith.index_cast %193 : i32 to index
    %c20_167 = arith.constant 20 : index
    %c0_168 = arith.constant 0 : index
    %195 = vector.load %arg2[%c0_166, %194, %c20_167, %c0_168] : memref<1x6x110x8xbf16, #tpu.memory_space<vmem>>, vector<1x1x80x8xbf16>
    %196 = vector.shape_cast %195 : vector<1x1x80x8xbf16> to vector<80x8xbf16>
    %c24 = arith.constant 24 : index
    %c0_169 = arith.constant 0 : index
    %c0_170 = arith.constant 0 : index
    %197 = vector.load %arg3[%c24, %c0_169, %c0_170] : memref<27x8x8xbf16, #tpu.memory_space<vmem>>, vector<1x8x8xbf16>
    %198 = vector.shape_cast %197 : vector<1x8x8xbf16> to vector<8x8xbf16>
    %cst_171 = arith.constant dense<0.000000e+00> : vector<80x8xf32>
    %199 = tpu.matmul %196, %198, %cst_171 {dimension_numbers = #tpu.dot_dimension_numbers<[1], [0], [0], [1], [0, 0, 1, 1], [], []>} : vector<80x8xbf16>, vector<8x8xbf16>, vector<80x8xf32> -> vector<80x8xf32>
    %200 = arith.addf %192, %199 : vector<80x8xf32>
    %c2_i32_172 = arith.constant 2 : i32
    %201 = arith.addi %arg1, %c2_i32_172 : i32
    %c0_173 = arith.constant 0 : index
    %202 = arith.index_cast %201 : i32 to index
    %c21_174 = arith.constant 21 : index
    %c0_175 = arith.constant 0 : index
    %203 = vector.load %arg2[%c0_173, %202, %c21_174, %c0_175] : memref<1x6x110x8xbf16, #tpu.memory_space<vmem>>, vector<1x1x80x8xbf16>
    %204 = vector.shape_cast %203 : vector<1x1x80x8xbf16> to vector<80x8xbf16>
    %c25 = arith.constant 25 : index
    %c0_176 = arith.constant 0 : index
    %c0_177 = arith.constant 0 : index
    %205 = vector.load %arg3[%c25, %c0_176, %c0_177] : memref<27x8x8xbf16, #tpu.memory_space<vmem>>, vector<1x8x8xbf16>
    %206 = vector.shape_cast %205 : vector<1x8x8xbf16> to vector<8x8xbf16>
    %cst_178 = arith.constant dense<0.000000e+00> : vector<80x8xf32>
    %207 = tpu.matmul %204, %206, %cst_178 {dimension_numbers = #tpu.dot_dimension_numbers<[1], [0], [0], [1], [0, 0, 1, 1], [], []>} : vector<80x8xbf16>, vector<8x8xbf16>, vector<80x8xf32> -> vector<80x8xf32>
    %208 = arith.addf %200, %207 : vector<80x8xf32>
    %c2_i32_179 = arith.constant 2 : i32
    %209 = arith.addi %arg1, %c2_i32_179 : i32
    %c0_180 = arith.constant 0 : index
    %210 = arith.index_cast %209 : i32 to index
    %c22_181 = arith.constant 22 : index
    %c0_182 = arith.constant 0 : index
    %211 = vector.load %arg2[%c0_180, %210, %c22_181, %c0_182] : memref<1x6x110x8xbf16, #tpu.memory_space<vmem>>, vector<1x1x80x8xbf16>
    %212 = vector.shape_cast %211 : vector<1x1x80x8xbf16> to vector<80x8xbf16>
    %c26 = arith.constant 26 : index
    %c0_183 = arith.constant 0 : index
    %c0_184 = arith.constant 0 : index
    %213 = vector.load %arg3[%c26, %c0_183, %c0_184] : memref<27x8x8xbf16, #tpu.memory_space<vmem>>, vector<1x8x8xbf16>
    %214 = vector.shape_cast %213 : vector<1x8x8xbf16> to vector<8x8xbf16>
    %cst_185 = arith.constant dense<0.000000e+00> : vector<80x8xf32>
    %215 = tpu.matmul %212, %214, %cst_185 {dimension_numbers = #tpu.dot_dimension_numbers<[1], [0], [0], [1], [0, 0, 1, 1], [], []>} : vector<80x8xbf16>, vector<8x8xbf16>, vector<80x8xf32> -> vector<80x8xf32>
    %216 = arith.addf %208, %215 : vector<80x8xf32>
    %217 = arith.truncf %216 : vector<80x8xf32> to vector<80x8xbf16>
    %c0_186 = arith.constant 0 : index
    %c0_187 = arith.constant 0 : index
    %c0_188 = arith.constant 0 : index
    %c0_189 = arith.constant 0 : index
    %218 = vector.load %arg4[%c0_186, %c0_187, %c0_188, %c0_189] : memref<1x1x80x8xbf16, #tpu.memory_space<vmem>>, vector<1x1x80x8xbf16>
    %219 = vector.shape_cast %218 : vector<1x1x80x8xbf16> to vector<80x8xbf16>
    %220 = vector.shape_cast %217 : vector<80x8xbf16> to vector<1x1x80x8xbf16>
    tpu.vector_store %arg4[%c0_186, %c0_187, %c0_188, %c0_189], %220 {strides = array<i32>} : memref<1x1x80x8xbf16, #tpu.memory_space<vmem>>, vector<1x1x80x8xbf16>,
    return
  }
  func.func @transform_0(%arg0: i32, %arg1: i32) -> (i32, i32, i32, i32) {
    %c0_i32 = arith.constant 0 : i32
    %c0_i32_0 = arith.constant 0 : i32
    %c0_i32_1 = arith.constant 0 : i32
    %c0_i32_2 = arith.constant 0 : i32
    return %arg0, %c0_i32, %c0_i32_0, %c0_i32_1 : i32, i32, i32, i32
  }
  func.func @transform_1(%arg0: i32, %arg1: i32) -> (i32, i32, i32) {
    %c0_i32 = arith.constant 0 : i32
    %c0_i32_0 = arith.constant 0 : i32
    %c0_i32_1 = arith.constant 0 : i32
    %c0_i32_2 = arith.constant 0 : i32
    return %c0_i32, %c0_i32_0, %c0_i32_1 : i32, i32, i32
  }
  func.func @transform_2(%arg0: i32, %arg1: i32) -> (i32, i32, i32, i32) {
    %c0_i32 = arith.constant 0 : i32
    %c0_i32_0 = arith.constant 0 : i32
    %c0_i32_1 = arith.constant 0 : i32
    return %arg0, %arg1, %c0_i32, %c0_i32_0 : i32, i32, i32, i32
  }
}

module attributes {stable_mosaic.version = 11 : i64} {
  func.func @kernel_c(%arg0: i32, %arg1: memref<256x8xbf16, #tpu.memory_space<vmem>>, %arg2: memref<256x16xf32, #tpu.memory_space<vmem>>, %arg3: memref<1x8xf32, #tpu.memory_space<vmem>>, %arg4: memref<1x8xf32, #tpu.memory_space<vmem>>, %arg5: memref<8x12xbf16, #tpu.memory_space<vmem>>, %arg6: memref<256x8xf32, #tpu.memory_space<vmem>>, %arg7: memref<256x12xf32, #tpu.memory_space<vmem>>) attributes {dimension_semantics = [#tpu.dimension_semantics<parallel>], iteration_bounds = array<i64: 2>, scalar_prefetch = 0 : i64, scratch_operands = 0 : i64, tpu.core_type = #tpu.core_type<tc>, window_params = [{transform_indices = @transform_0, window_bounds = array<i64: 256, 8>}, {transform_indices = @transform_1, window_bounds = array<i64: 256, 16>}, {pipeline_mode = #tpu.pipeline_mode<synchronous>, transform_indices = @transform_2, window_bounds = array<i64: 1, 8>}, {pipeline_mode = #tpu.pipeline_mode<synchronous>, transform_indices = @transform_3, window_bounds = array<i64: 1, 8>}, {pipeline_mode = #tpu.pipeline_mode<synchronous>, transform_indices = @transform_4, window_bounds = array<i64: 8, 12>}, {transform_indices = @transform_5, window_bounds = array<i64: 256, 8>}, {transform_indices = @transform_6, window_bounds = array<i64: 256, 12>}]} {
    %c0 = arith.constant 0 : index
    %c0_0 = arith.constant 0 : index
    %0 = vector.load %arg1[%c0, %c0_0] : memref<256x8xbf16, #tpu.memory_space<vmem>>, vector<256x8xbf16>
    %1 = arith.extf %0 : vector<256x8xbf16> to vector<256x8xf32>
    %c0_1 = arith.constant 0 : index
    %c0_2 = arith.constant 0 : index
    %2 = vector.load %arg3[%c0_1, %c0_2] : memref<1x8xf32, #tpu.memory_space<vmem>>, vector<1x8xf32>
    %3 = vector.broadcast %2 : vector<1x8xf32> to vector<256x8xf32>
    %4 = arith.mulf %1, %3 : vector<256x8xf32>
    %c0_3 = arith.constant 0 : index
    %c0_4 = arith.constant 0 : index
    %5 = vector.load %arg4[%c0_3, %c0_4] : memref<1x8xf32, #tpu.memory_space<vmem>>, vector<1x8xf32>
    %6 = vector.broadcast %5 : vector<1x8xf32> to vector<256x8xf32>
    %7 = arith.addf %4, %6 : vector<256x8xf32>
    %cst = arith.constant 0.000000e+00 : f32
    %8 = vector.broadcast %cst : f32 to vector<256x8xf32>
    %9 = arith.cmpf oge, %7, %8 : vector<256x8xf32>
    %cst_5 = arith.constant 0.00999999977 : f32
    %10 = vector.broadcast %cst_5 : f32 to vector<256x8xf32>
    %11 = arith.mulf %10, %7 : vector<256x8xf32>
    %12 = arith.select %9, %7, %11 : vector<256x8xi1>, vector<256x8xf32>
    %13 = arith.truncf %12 : vector<256x8xf32> to vector<256x8xbf16>
    %c0_6 = arith.constant 0 : index
    %c0_7 = arith.constant 0 : index
    %14 = vector.load %arg5[%c0_6, %c0_7] : memref<8x12xbf16, #tpu.memory_space<vmem>>, vector<8x12xbf16>
    %cst_8 = arith.constant dense<0.000000e+00> : vector<256x12xf32>
    %15 = tpu.matmul %13, %14, %cst_8 {dimension_numbers = #tpu.dot_dimension_numbers<[1], [0], [0], [1], [0, 0, 1, 1], [], []>} : vector<256x8xbf16>, vector<8x12xbf16>, vector<256x12xf32> -> vector<256x12xf32>
    %c0_9 = arith.constant 0 : index
    %c0_10 = arith.constant 0 : index
    %16 = vector.load %arg2[%c0_9, %c0_10] : memref<256x16xf32, #tpu.memory_space<vmem>>, vector<256x16xf32>
    %17 = vector.extract_strided_slice %16 {offsets = [0, 0], sizes = [256, 8], strides = [1, 1]} : vector<256x16xf32> to vector<256x8xf32>
    %18 = vector.extract_strided_slice %15 {offsets = [0, 0], sizes = [256, 8], strides = [1, 1]} : vector<256x12xf32> to vector<256x8xf32>
    %19 = arith.addf %17, %18 : vector<256x8xf32>
    %c0_11 = arith.constant 0 : index
    %c0_12 = arith.constant 0 : index
    %20 = vector.load %arg6[%c0_11, %c0_12] : memref<256x8xf32, #tpu.memory_space<vmem>>, vector<256x8xf32>
    tpu.vector_store %arg6[%c0_11, %c0_12], %19 {strides = array<i32>} : memref<256x8xf32, #tpu.memory_space<vmem>>, vector<256x8xf32>,
    %21 = vector.extract_strided_slice %16 {offsets = [0, 8], sizes = [256, 8], strides = [1, 1]} : vector<256x16xf32> to vector<256x8xf32>
    %22 = vector.extract_strided_slice %15 {offsets = [0, 8], sizes = [256, 4], strides = [1, 1]} : vector<256x12xf32> to vector<256x4xf32>
    %23 = tpu.concatenate %21, %22 in 1 : vector<256x8xf32>, vector<256x4xf32> -> vector<256x12xf32>
    %c0_13 = arith.constant 0 : index
    %c0_14 = arith.constant 0 : index
    %24 = vector.load %arg7[%c0_13, %c0_14] : memref<256x12xf32, #tpu.memory_space<vmem>>, vector<256x12xf32>
    tpu.vector_store %arg7[%c0_13, %c0_14], %23 {strides = array<i32>} : memref<256x12xf32, #tpu.memory_space<vmem>>, vector<256x12xf32>,
    return
  }
  func.func @transform_0(%arg0: i32) -> (i32, i32) {
    %c0_i32 = arith.constant 0 : i32
    %c0_i32_0 = arith.constant 0 : i32
    return %arg0, %c0_i32 : i32, i32
  }
  func.func @transform_1(%arg0: i32) -> (i32, i32) {
    %c0_i32 = arith.constant 0 : i32
    %c0_i32_0 = arith.constant 0 : i32
    return %arg0, %c0_i32 : i32, i32
  }
  func.func @transform_2(%arg0: i32) -> (i32, i32) {
    %c0_i32 = arith.constant 0 : i32
    %c0_i32_0 = arith.constant 0 : i32
    %c0_i32_1 = arith.constant 0 : i32
    return %c0_i32, %c0_i32_0 : i32, i32
  }
  func.func @transform_3(%arg0: i32) -> (i32, i32) {
    %c0_i32 = arith.constant 0 : i32
    %c0_i32_0 = arith.constant 0 : i32
    %c0_i32_1 = arith.constant 0 : i32
    return %c0_i32, %c0_i32_0 : i32, i32
  }
  func.func @transform_4(%arg0: i32) -> (i32, i32) {
    %c0_i32 = arith.constant 0 : i32
    %c0_i32_0 = arith.constant 0 : i32
    %c0_i32_1 = arith.constant 0 : i32
    return %c0_i32, %c0_i32_0 : i32, i32
  }
  func.func @transform_5(%arg0: i32) -> (i32, i32) {
    %c0_i32 = arith.constant 0 : i32
    %c0_i32_0 = arith.constant 0 : i32
    return %arg0, %c0_i32 : i32, i32
  }
  func.func @transform_6(%arg0: i32) -> (i32, i32) {
    %c0_i32 = arith.constant 0 : i32
    %c0_i32_0 = arith.constant 0 : i32
    return %arg0, %c0_i32 : i32, i32
  }
}

</mosaic_0001>

<bundles_post_ra>
// kernel: dual_path_block_forward.3
= control target key start
LH: loop header
LB: loop body
LE: loop exit
PB: predicated region body
PF: predicated region fallthrough
CT: control target
= control target key end

     0   :  { %s1974_s13 = smov 0   ;;  %s2429_s0 = inlined_call_operand.vmem [shape: f32[512,16], index: 0, kind: input, shape index: {}]   ;;  %s2430_s1 = inlined_call_operand.vmem [shape: f32[1,16], index: 1, kind: input, shape index: {}]   ;;  %s2431_s2 = inlined_call_operand.vmem [shape: f32[1,16], index: 2, kind: input, shape index: {}]   ;;  %s2432_s3 = inlined_call_operand.vmem [shape: f32[1,16], index: 3, kind: input, shape index: {}]   ;;  %s2433_s4 = inlined_call_operand.vmem [shape: f32[1,16], index: 4, kind: input, shape index: {}]   ;;  %s2434_s5 = inlined_call_operand.vmem [shape: f32[1,8], index: 5, kind: input, shape index: {}]   ;;  %s2435_s6 = inlined_call_operand.vmem [shape: f32[1,8], index: 6, kind: input, shape index: {}]   ;;  %s2436_s7 = inlined_call_operand.vmem [shape: bf16[16,16], index: 7, kind: input, shape index: {}]   ;;  %s2437_s8 = inlined_call_operand.vmem [shape: bf16[16,8], index: 8, kind: input, shape index: {}]   ;;  %s2438_s9 = inlined_call_operand.vmem [shape: f32[512,16], index: 9, kind: output, shape index: {0}]   ;;  %s2439_s10 = inlined_call_operand.vmem [shape: bf16[512,8], index: 10, kind: output, shape index: {1}]  }
   0x1 LB: > { %s1682_s14 = sadd.s32 4294967295, %s1917_s13   ;;  %p1686_p0 = scmp.ge.s32.totalorder %s1917_s13, 1  ;;  %s1917_s13 = sphi %s1974_s13, %s21_s13  }
   0x2   : > { %p316_p1 = scmp.lt.s32.totalorder %s1917_s13, 3 }
   0x4   : > { %p317_p2 = pnand %p1686_p0, %p316_p1 }
   0x5   : > { %v1909_v0 = vld [vmem:[%s2437_s8] sm:$0xff] (!%p317_p2)   ;;  %s1687_s17 = sshll.u32 (!%p317_p2), %s1682_s14, 5  ;;  %vm782_vm0 = vcmask (!%p317_p2), 130048  }
   0x6   : > { %320 = sbr.rel (%p317_p2) target bundleno = 328 (0x148), region = 56  ;;  %p360_p3 = scmp.lt.s32.totalorder (!%p317_p2), %s1687_s17, 63  ;;  %1867 = vmatprep.subr.bf16.mxu1 (!%p317_p2), %v1909_v0  ;;  %v1910_v1 = vld [vmem:[%s2436_s7] sm:$0xff] (!%p317_p2)  }
   0x7   : > { %1868 = vmatpush3.bf16.msra.mxu1 (!%p317_p2), %v1909_v0  ;;  %1833 = vmatprep.subr.bf16.mxu0 (!%p317_p2), %v1910_v1  ;;  %v1994_v2 = vld [vmem:[%s2432_s3] ss:$0 sm:$0xff] (!%p317_p2) }
   0x8   : > { %1834 = vmatpush3.bf16.msra.mxu0 (!%p317_p2), %v1910_v1  ;;  %v1999_v3 = vld [vmem:[%s2430_s1] ss:$0 sm:$0xff] (!%p317_p2) }
   0x9   : > { %v2011_v4 = vld [vmem:[%s2433_s4] ss:$0 sm:$0xff] (!%p317_p2) }
   0xa   : > { %v2016_v5 = vld [vmem:[%s2431_s2] ss:$0 sm:$0xff] (!%p317_p2) }
   0xd   : > { %s2441_s17 = smov (!%p360_p3, %s1687_s17), 63 }
   0xe   : > { %s1688_s20 = sshll.u32 %s2441_s17, 3  ;;  %s1692_s22 = sshll.u32 %s2441_s17, 2 }
   0xf   : > { %s2006_s27 = scalar_lea.vmem %s2429_s0, %s1688_s20  ;;  %s2228_s21 = scalar_lea.vmem %s2438_s9, %s1688_s20 }
  0x10   : > { %v378_v6 = vld [vmem:[%s2006_s27] sm:$0xff]  ;;  %v379_v7 = vld [vmem:[%s2006_s27 + $0x8] sm:$0xff]  ;;  %v380_v8 = vld [vmem:[%s2006_s27 + $0x10] sm:$0xff]  ;;  %s2244_s23 = scalar_lea.vmem %s2439_s10, %s1692_s22 }
  0x11   : > { %v591_v9 = vmul.f32 %v1994_v2, %v378_v6  ;;  %v592_v10 = vmul.f32 %v1994_v2, %v379_v7  ;;  %v381_v11 = vld [vmem:[%s2006_s27 + $0x18] sm:$0xff]  ;;  %v593_v12 = vmul.f32 %v1994_v2, %v380_v8  ;;  %v417_v13 = vmul.f32 %v1999_v3, %v378_v6  ;;  %v382_v32 = vld [vmem:[%s2006_s27 + $0x20] sm:$0xff]  ;;  %v383_v37 = vld [vmem:[%s2006_s27 + $0x28] sm:$0xff] }
  0x12   : > { %v594_v14 = vmul.f32 %v1994_v2, %v381_v11  ;;  %v418_v15 = vmul.f32 %v1999_v3, %v379_v7  ;;  %v419_v16 = vmul.f32 %v1999_v3, %v380_v8  ;;  %v420_v17 = vmul.f32 %v1999_v3, %v381_v11  ;;  %v384_v38 = vld [vmem:[%s2006_s27 + $0x30] sm:$0xff]  ;;  %v385_v39 = vld [vmem:[%s2006_s27 + $0x38] sm:$0xff]  ;;  %v387_v11 = vld [vmem:[%s2006_s27 + $0x48] sm:$0xff] }
  0x13   : > { %v630_v18 = vadd.f32 %v2011_v4, %v591_v9  ;;  %v631_v19 = vadd.f32 %v2011_v4, %v592_v10  ;;  %v632_v20 = vadd.f32 %v2011_v4, %v593_v12  ;;  %v456_v21 = vadd.f32 %v2016_v5, %v417_v13  ;;  %v386_v10 = vld [vmem:[%s2006_s27 + $0x40] sm:$0xff] }
  0x14   : > { %v633_v22 = vadd.f32 %v2011_v4, %v594_v14  ;;  %v457_v23 = vadd.f32 %v2016_v5, %v418_v15  ;;  %v458_v24 = vadd.f32 %v2016_v5, %v419_v16  ;;  %v459_v25 = vadd.f32 %v2016_v5, %v420_v17  ;;  %v388_v15 = vld [vmem:[%s2006_s27 + $0x50] sm:$0xff]  ;;  %v389_v16 = vld [vmem:[%s2006_s27 + $0x58] sm:$0xff] }
  0x15   : > { %vm662_vm1 = vcmp.ge.f32.partialorder %v630_v18, 0.0  ;;  %vm663_vm2 = vcmp.ge.f32.partialorder %v631_v19, 0.0  ;;  %v694_v26 = vmul.f32 0.01, %v630_v18  ;;  %v695_v27 = vmul.f32 0.01, %v631_v19 }
  0x16   : > { %vm664_vm3 = vcmp.ge.f32.partialorder %v632_v20, 0.0  ;;  %vm665_vm4 = vcmp.ge.f32.partialorder %v633_v22, 0.0  ;;  %v696_v28 = vmul.f32 0.01, %v632_v20  ;;  %v697_v29 = vmul.f32 0.01, %v633_v22 }
  0x17   : > { %v726_v30 = vsel %vm662_vm1, %v630_v18, %v694_v26  ;;  %v727_v31 = vsel %vm663_vm2, %v631_v19, %v695_v27  ;;  %vm488_vm5 = vcmp.ge.f32.partialorder %v456_v21, 0.0  ;;  %vm489_vm6 = vcmp.ge.f32.partialorder %v457_v23, 0.0 }
  0x18   : > { %v992_v33 = vpack.c.bf16 %v727_v31, %v726_v30  ;;  %v728_v34 = vsel %vm664_vm3, %v632_v20, %v696_v28  ;;  %v729_v35 = vsel %vm665_vm4, %v633_v22, %v697_v29  ;;  %v520_v36 = vmul.f32 0.01, %v456_v21 }
  0x19   : > { %v993_v40 = vpack.c.bf16 %v729_v35, %v728_v34  ;;  %v521_v41 = vmul.f32 0.01, %v457_v23  ;;  %vm490_vm7 = vcmp.ge.f32.partialorder %v458_v24, 0.0  ;;  %vm491_vm8 = vcmp.ge.f32.partialorder %v459_v25, 0.0 }
  0x1a   : > { %1869 = vmatprep.mubr.msk.bf16.mxu1 %vm782_vm0, %v992_v33  ;;  %v552_v42 = vsel %vm488_vm5, %v456_v21, %v520_v36  ;;  %v522_v43 = vmul.f32 0.01, %v458_v24  ;;  %v523_v44 = vmul.f32 0.01, %v459_v25  ;;  %v595_v45 = vmul.f32 %v1994_v2, %v382_v32 }
  0x1b   : > { %1870 = vmatmul.mubr.msk.bf16.vlgmr.msra.gmra.mrb[0].mxu1 %vm782_vm0, %v993_v40  ;;  %v553_v46 = vsel %vm489_vm6, %v457_v23, %v521_v41  ;;  %v596_v47 = vmul.f32 %v1994_v2, %v383_v37  ;;  %v597_v48 = vmul.f32 %v1994_v2, %v384_v38  ;;  %v598_v49 = vmul.f32 %v1994_v2, %v385_v39 }
  0x1c   : > { %v758_v50 = vpack.c.bf16 %v553_v46, %v552_v42  ;;  %v554_v51 = vsel %vm490_vm7, %v458_v24, %v522_v43  ;;  %v555_v52 = vsel %vm491_vm8, %v459_v25, %v523_v44  ;;  %v634_v53 = vadd.f32 %v2011_v4, %v595_v45 }
  0x1d   : > { %v759_v54 = vpack.c.bf16 %v555_v52, %v554_v51  ;;  %v635_v55 = vadd.f32 %v2011_v4, %v596_v47  ;;  %v636_v56 = vadd.f32 %v2011_v4, %v597_v48  ;;  %v637_v57 = vadd.f32 %v2011_v4, %v598_v49  ;;  %v391_v51 = vld [vmem:[%s2006_s27 + $0x68] sm:$0xff] }
  0x1e   : > { %1835 = vmatprep.mubr.msk.bf16.mxu0 %vm782_vm0, %v758_v50  ;;  %vm666_vm9 = vcmp.ge.f32.partialorder %v634_v53, 0.0  ;;  %v698_v58 = vmul.f32 0.01, %v634_v53  ;;  %v421_v59 = vmul.f32 %v1999_v3, %v382_v32  ;;  %v422_v60 = vmul.f32 %v1999_v3, %v383_v37  ;;  %v390_v50 = vld [vmem:[%s2006_s27 + $0x60] sm:$0xff] }
  0x1f   : > { %1836 = vmatmul.mubr.msk.bf16.vlgmr.msra.gmra.mrb[0].mxu0 %vm782_vm0, %v759_v54  ;;  %vm667_vm10 = vcmp.ge.f32.partialorder %v635_v55, 0.0  ;;  %v699_v61 = vmul.f32 0.01, %v635_v55  ;;  %vm668_vm11 = vcmp.ge.f32.partialorder %v636_v56, 0.0  ;;  %vm669_vm12 = vcmp.ge.f32.partialorder %v637_v57, 0.0 }
  0x20   : > { %v730_v62 = vsel %vm666_vm9, %v634_v53, %v698_v58  ;;  %v700_v63 = vmul.f32 0.01, %v636_v56  ;;  %v701_v0 = vmul.f32 0.01, %v637_v57  ;;  %v460_v1 = vadd.f32 %v2016_v5, %v421_v59 }
  0x21   : > { %v731_v6 = vsel %vm667_vm10, %v635_v55, %v699_v61  ;;  %v461_v7 = vadd.f32 %v2016_v5, %v422_v60  ;;  %v423_v8 = vmul.f32 %v1999_v3, %v384_v38  ;;  %v424_v9 = vmul.f32 %v1999_v3, %v385_v39  ;;  %v392_v55 = vld [vmem:[%s2006_s27 + $0x70] sm:$0xff] }
  0x22   : > { %v994_v12 = vpack.c.bf16 %v731_v6, %v730_v62  ;;  %v732_v13 = vsel %vm668_vm11, %v636_v56, %v700_v63  ;;  %v733_v14 = vsel %vm669_vm12, %v637_v57, %v701_v0  ;;  %vm492_vm13 = vcmp.ge.f32.partialorder %v460_v1, 0.0  ;;  %v393_v56 = vld [vmem:[%s2006_s27 + $0x78] sm:$0xff] }
  0x23   : > { %v995_v17 = vpack.c.bf16 %v733_v14, %v732_v13  ;;  %vm493_vm14 = vcmp.ge.f32.partialorder %v461_v7, 0.0  ;;  %v524_v18 = vmul.f32 0.01, %v460_v1  ;;  %v525_v19 = vmul.f32 0.01, %v461_v7 }
  0x24   : > { %1873 = vmatprep.mubr.msk.bf16.mxu1 %vm782_vm0, %v994_v12  ;;  %v462_v20 = vadd.f32 %v2016_v5, %v423_v8  ;;  %v463_v21 = vadd.f32 %v2016_v5, %v424_v9  ;;  %v599_v22 = vmul.f32 %v1994_v2, %v386_v10  ;;  %v600_v23 = vmul.f32 %v1994_v2, %v387_v11 }
  0x25   : > { %1874 = vmatmul.mubr.msk.bf16.gmra.mrb[4].mxu1 %vm782_vm0, %v995_v17  ;;  %v556_v24 = vsel %vm492_vm13, %v460_v1, %v524_v18  ;;  %v557_v25 = vsel %vm493_vm14, %v461_v7, %v525_v19  ;;  %v601_v26 = vmul.f32 %v1994_v2, %v388_v15  ;;  %v602_v27 = vmul.f32 %v1994_v2, %v389_v16 }
  0x26   : > { %v760_v28 = vpack.c.bf16 %v557_v25, %v556_v24  ;;  %vm494_vm15 = vcmp.ge.f32.partialorder %v462_v20, 0.0  ;;  %vm495_vm1 = vcmp.ge.f32.partialorder %v463_v21, 0.0  ;;  %v526_v29 = vmul.f32 0.01, %v462_v20 }
  0x27   : > { %v527_v30 = vmul.f32 0.01, %v463_v21  ;;  %v638_v31 = vadd.f32 %v2011_v4, %v599_v22  ;;  %v639_v32 = vadd.f32 %v2011_v4, %v600_v23  ;;  %v640_v33 = vadd.f32 %v2011_v4, %v601_v26 }
  0x28   : > { %1839 = vmatprep.mubr.msk.bf16.mxu0 %vm782_vm0, %v760_v28  ;;  %v558_v34 = vsel %vm494_vm15, %v462_v20, %v526_v29  ;;  %v641_v35 = vadd.f32 %v2011_v4, %v602_v27  ;;  %v425_v36 = vmul.f32 %v1999_v3, %v386_v10  ;;  %v426_v37 = vmul.f32 %v1999_v3, %v387_v11 }
  0x29   : > { %v559_v38 = vsel %vm495_vm1, %v463_v21, %v527_v30  ;;  %vm670_vm2 = vcmp.ge.f32.partialorder %v638_v31, 0.0  ;;  %vm671_vm3 = vcmp.ge.f32.partialorder %v639_v32, 0.0  ;;  %v702_v39 = vmul.f32 0.01, %v638_v31  ;;  %v394_v30 = vld [vmem:[%s2006_s27 + $0x80] sm:$0xff] }
  0x2a   : > { %v761_v40 = vpack.c.bf16 %v559_v38, %v558_v34  ;;  %v703_v41 = vmul.f32 0.01, %v639_v32  ;;  %vm672_vm4 = vcmp.ge.f32.partialorder %v640_v33, 0.0  ;;  %vm673_vm5 = vcmp.ge.f32.partialorder %v641_v35, 0.0 }
  0x2b   : > { %v734_v42 = vsel %vm670_vm2, %v638_v31, %v702_v39  ;;  %v704_v43 = vmul.f32 0.01, %v640_v33  ;;  %v705_v44 = vmul.f32 0.01, %v641_v35  ;;  %v464_v45 = vadd.f32 %v2016_v5, %v425_v36  ;;  %v395_v31 = vld [vmem:[%s2006_s27 + $0x88] sm:$0xff]  ;;  %v397_v36 = vld [vmem:[%s2006_s27 + $0x98] sm:$0xff] }
  0x2c   : > { %1840 = vmatmul.mubr.msk.bf16.gmra.mrb[4].mxu0 %vm782_vm0, %v761_v40  ;;  %v735_v46 = vsel %vm671_vm3, %v639_v32, %v703_v41  ;;  %v465_v47 = vadd.f32 %v2016_v5, %v426_v37  ;;  %v427_v48 = vmul.f32 %v1999_v3, %v388_v15  ;;  %v428_v49 = vmul.f32 %v1999_v3, %v389_v16 }
  0x2d   : > { %v996_v52 = vpack.c.bf16 %v735_v46, %v734_v42  ;;  %v736_v53 = vsel %vm672_vm4, %v640_v33, %v704_v43  ;;  %v737_v54 = vsel %vm673_vm5, %v641_v35, %v705_v44  ;;  %vm496_vm6 = vcmp.ge.f32.partialorder %v464_v45, 0.0  ;;  %v396_v35 = vld [vmem:[%s2006_s27 + $0x90] sm:$0xff] }
  0x2e   : > { %v997_v57 = vpack.c.bf16 %v737_v54, %v736_v53  ;;  %vm497_vm7 = vcmp.ge.f32.partialorder %v465_v47, 0.0  ;;  %v528_v58 = vmul.f32 0.01, %v464_v45  ;;  %v529_v59 = vmul.f32 0.01, %v465_v47 }
  0x2f   : > { %1877 = vmatprep.mubr.msk.bf16.mxu1 %vm782_vm0, %v996_v52  ;;  %v466_v60 = vadd.f32 %v2016_v5, %v427_v48  ;;  %v467_v61 = vadd.f32 %v2016_v5, %v428_v49  ;;  %v603_v62 = vmul.f32 %v1994_v2, %v390_v50  ;;  %v604_v63 = vmul.f32 %v1994_v2, %v391_v51 }
  0x30   : > { %1878 = vmatmul.mubr.msk.bf16.gmra.mrb[8].mxu1 %vm782_vm0, %v997_v57  ;;  %v560_v0 = vsel %vm496_vm6, %v464_v45, %v528_v58  ;;  %v561_v1 = vsel %vm497_vm7, %v465_v47, %v529_v59  ;;  %v605_v6 = vmul.f32 %v1994_v2, %v392_v55  ;;  %v606_v7 = vmul.f32 %v1994_v2, %v393_v56 }
  0x31   : > { %v762_v8 = vpack.c.bf16 %v561_v1, %v560_v0  ;;  %vm498_vm8 = vcmp.ge.f32.partialorder %v466_v60, 0.0  ;;  %vm499_vm9 = vcmp.ge.f32.partialorder %v467_v61, 0.0  ;;  %v530_v9 = vmul.f32 0.01, %v466_v60 }
  0x32   : > { %v531_v10 = vmul.f32 0.01, %v467_v61  ;;  %v642_v11 = vadd.f32 %v2011_v4, %v603_v62  ;;  %v643_v12 = vadd.f32 %v2011_v4, %v604_v63  ;;  %v644_v13 = vadd.f32 %v2011_v4, %v605_v6 }
  0x33   : > { %1843 = vmatprep.mubr.msk.bf16.mxu0 %vm782_vm0, %v762_v8  ;;  %v562_v14 = vsel %vm498_vm8, %v466_v60, %v530_v9  ;;  %v645_v15 = vadd.f32 %v2011_v4, %v606_v7  ;;  %v429_v16 = vmul.f32 %v1999_v3, %v390_v50  ;;  %v430_v17 = vmul.f32 %v1999_v3, %v391_v51 }
  0x34   : > { %v563_v18 = vsel %vm499_vm9, %v467_v61, %v531_v10  ;;  %vm674_vm10 = vcmp.ge.f32.partialorder %v642_v11, 0.0  ;;  %vm675_vm11 = vcmp.ge.f32.partialorder %v643_v12, 0.0  ;;  %v706_v19 = vmul.f32 0.01, %v642_v11  ;;  %v398_v10 = vld [vmem:[%s2006_s27 + $0xa0] sm:$0xff] }
  0x35   : > { %v763_v20 = vpack.c.bf16 %v563_v18, %v562_v14  ;;  %v707_v21 = vmul.f32 0.01, %v643_v12  ;;  %vm676_vm12 = vcmp.ge.f32.partialorder %v644_v13, 0.0  ;;  %vm677_vm13 = vcmp.ge.f32.partialorder %v645_v15, 0.0 }
  0x36   : > { %v738_v22 = vsel %vm674_vm10, %v642_v11, %v706_v19  ;;  %v708_v23 = vmul.f32 0.01, %v644_v13  ;;  %v709_v24 = vmul.f32 0.01, %v645_v15  ;;  %v468_v25 = vadd.f32 %v2016_v5, %v429_v16  ;;  %v399_v11 = vld [vmem:[%s2006_s27 + $0xa8] sm:$0xff]  ;;  %v401_v16 = vld [vmem:[%s2006_s27 + $0xb8] sm:$0xff] }
  0x37   : > { %1844 = vmatmul.mubr.msk.bf16.gmra.mrb[8].mxu0 %vm782_vm0, %v763_v20  ;;  %v739_v26 = vsel %vm675_vm11, %v643_v12, %v707_v21  ;;  %v469_v27 = vadd.f32 %v2016_v5, %v430_v17  ;;  %v431_v28 = vmul.f32 %v1999_v3, %v392_v55  ;;  %v432_v29 = vmul.f32 %v1999_v3, %v393_v56 }
  0x38   : > { %v998_v32 = vpack.c.bf16 %v739_v26, %v738_v22  ;;  %v740_v33 = vsel %vm676_vm12, %v644_v13, %v708_v23  ;;  %v741_v34 = vsel %vm677_vm13, %v645_v15, %v709_v24  ;;  %vm500_vm14 = vcmp.ge.f32.partialorder %v468_v25, 0.0  ;;  %v400_v15 = vld [vmem:[%s2006_s27 + $0xb0] sm:$0xff] }
  0x39   : > { %v999_v37 = vpack.c.bf16 %v741_v34, %v740_v33  ;;  %vm501_vm15 = vcmp.ge.f32.partialorder %v469_v27, 0.0  ;;  %v532_v38 = vmul.f32 0.01, %v468_v25  ;;  %v533_v39 = vmul.f32 0.01, %v469_v27 }
  0x3a   : > { %1881 = vmatprep.mubr.msk.bf16.mxu1 %vm782_vm0, %v998_v32  ;;  %v470_v40 = vadd.f32 %v2016_v5, %v431_v28  ;;  %v471_v41 = vadd.f32 %v2016_v5, %v432_v29  ;;  %v607_v42 = vmul.f32 %v1994_v2, %v394_v30  ;;  %v608_v43 = vmul.f32 %v1994_v2, %v395_v31 }
  0x3b   : > { %1882 = vmatmul.mubr.msk.bf16.gmra.mrb[12].mxu1 %vm782_vm0, %v999_v37  ;;  %v564_v44 = vsel %vm500_vm14, %v468_v25, %v532_v38  ;;  %v565_v45 = vsel %vm501_vm15, %v469_v27, %v533_v39  ;;  %v609_v46 = vmul.f32 %v1994_v2, %v396_v35  ;;  %v610_v47 = vmul.f32 %v1994_v2, %v397_v36 }
  0x3c   : > { %v764_v48 = vpack.c.bf16 %v565_v45, %v564_v44  ;;  %vm502_vm1 = vcmp.ge.f32.partialorder %v470_v40, 0.0  ;;  %vm503_vm2 = vcmp.ge.f32.partialorder %v471_v41, 0.0  ;;  %v534_v49 = vmul.f32 0.01, %v470_v40 }
  0x3d   : > { %v535_v50 = vmul.f32 0.01, %v471_v41  ;;  %v646_v51 = vadd.f32 %v2011_v4, %v607_v42  ;;  %v647_v52 = vadd.f32 %v2011_v4, %v608_v43  ;;  %v648_v53 = vadd.f32 %v2011_v4, %v609_v46 }
  0x3e   : > { %1847 = vmatprep.mubr.msk.bf16.mxu0 %vm782_vm0, %v764_v48  ;;  %v566_v54 = vsel %vm502_vm1, %v470_v40, %v534_v49  ;;  %v649_v55 = vadd.f32 %v2011_v4, %v610_v47  ;;  %v433_v56 = vmul.f32 %v1999_v3, %v394_v30  ;;  %v434_v57 = vmul.f32 %v1999_v3, %v395_v31 }
  0x3f   : > { %v567_v58 = vsel %vm503_vm2, %v471_v41, %v535_v50  ;;  %vm678_vm3 = vcmp.ge.f32.partialorder %v646_v51, 0.0  ;;  %vm679_vm4 = vcmp.ge.f32.partialorder %v647_v52, 0.0  ;;  %v710_v59 = vmul.f32 0.01, %v646_v51  ;;  %v402_v50 = vld [vmem:[%s2006_s27 + $0xc0] sm:$0xff] }
  0x40   : > { %v765_v60 = vpack.c.bf16 %v567_v58, %v566_v54  ;;  %v711_v61 = vmul.f32 0.01, %v647_v52  ;;  %vm680_vm5 = vcmp.ge.f32.partialorder %v648_v53, 0.0  ;;  %vm681_vm6 = vcmp.ge.f32.partialorder %v649_v55, 0.0 }
  0x41   : > { %v742_v62 = vsel %vm678_vm3, %v646_v51, %v710_v59  ;;  %v712_v63 = vmul.f32 0.01, %v648_v53  ;;  %v713_v0 = vmul.f32 0.01, %v649_v55  ;;  %v472_v1 = vadd.f32 %v2016_v5, %v433_v56  ;;  %v403_v51 = vld [vmem:[%s2006_s27 + $0xc8] sm:$0xff]  ;;  %v405_v56 = vld [vmem:[%s2006_s27 + $0xd8] sm:$0xff] }
  0x42   : > { %1848 = vmatmul.mubr.msk.bf16.gmra.mrb[12].mxu0 %vm782_vm0, %v765_v60  ;;  %v743_v6 = vsel %vm679_vm4, %v647_v52, %v711_v61  ;;  %v473_v7 = vadd.f32 %v2016_v5, %v434_v57  ;;  %v435_v8 = vmul.f32 %v1999_v3, %v396_v35  ;;  %v436_v9 = vmul.f32 %v1999_v3, %v397_v36 }
  0x43   : > { %v1000_v12 = vpack.c.bf16 %v743_v6, %v742_v62  ;;  %v744_v13 = vsel %vm680_vm5, %v648_v53, %v712_v63  ;;  %v745_v14 = vsel %vm681_vm6, %v649_v55, %v713_v0  ;;  %vm504_vm7 = vcmp.ge.f32.partialorder %v472_v1, 0.0  ;;  %v404_v55 = vld [vmem:[%s2006_s27 + $0xd0] sm:$0xff] }
  0x44   : > { %v1001_v17 = vpack.c.bf16 %v745_v14, %v744_v13  ;;  %vm505_vm8 = vcmp.ge.f32.partialorder %v473_v7, 0.0  ;;  %v536_v18 = vmul.f32 0.01, %v472_v1  ;;  %v537_v19 = vmul.f32 0.01, %v473_v7 }
  0x45   : > { %1885 = vmatprep.mubr.msk.bf16.mxu1 %vm782_vm0, %v1000_v12  ;;  %v474_v20 = vadd.f32 %v2016_v5, %v435_v8  ;;  %v475_v21 = vadd.f32 %v2016_v5, %v436_v9  ;;  %v611_v22 = vmul.f32 %v1994_v2, %v398_v10  ;;  %v612_v23 = vmul.f32 %v1994_v2, %v399_v11 }
  0x46   : > { %1886 = vmatmul.mubr.msk.bf16.gmra.mrb[16].mxu1 %vm782_vm0, %v1001_v17  ;;  %v568_v24 = vsel %vm504_vm7, %v472_v1, %v536_v18  ;;  %v569_v25 = vsel %vm505_vm8, %v473_v7, %v537_v19  ;;  %v613_v26 = vmul.f32 %v1994_v2, %v400_v15  ;;  %v614_v27 = vmul.f32 %v1994_v2, %v401_v16 }
  0x47   : > { %v766_v28 = vpack.c.bf16 %v569_v25, %v568_v24  ;;  %vm506_vm9 = vcmp.ge.f32.partialorder %v474_v20, 0.0  ;;  %vm507_vm10 = vcmp.ge.f32.partialorder %v475_v21, 0.0  ;;  %v538_v29 = vmul.f32 0.01, %v474_v20 }
  0x48   : > { %v539_v30 = vmul.f32 0.01, %v475_v21  ;;  %v650_v31 = vadd.f32 %v2011_v4, %v611_v22  ;;  %v651_v32 = vadd.f32 %v2011_v4, %v612_v23  ;;  %v652_v33 = vadd.f32 %v2011_v4, %v613_v26 }
  0x49   : > { %1851 = vmatprep.mubr.msk.bf16.mxu0 %vm782_vm0, %v766_v28  ;;  %v570_v34 = vsel %vm506_vm9, %v474_v20, %v538_v29  ;;  %v653_v35 = vadd.f32 %v2011_v4, %v614_v27  ;;  %v437_v36 = vmul.f32 %v1999_v3, %v398_v10  ;;  %v438_v37 = vmul.f32 %v1999_v3, %v399_v11 }
  0x4a   : > { %v571_v38 = vsel %vm507_vm10, %v475_v21, %v539_v30  ;;  %vm682_vm11 = vcmp.ge.f32.partialorder %v650_v31, 0.0  ;;  %vm683_vm12 = vcmp.ge.f32.partialorder %v651_v32, 0.0  ;;  %v714_v39 = vmul.f32 0.01, %v650_v31  ;;  %v406_v30 = vld [vmem:[%s2006_s27 + $0xe0] sm:$0xff] }
  0x4b   : > { %v767_v40 = vpack.c.bf16 %v571_v38, %v570_v34  ;;  %v715_v41 = vmul.f32 0.01, %v651_v32  ;;  %vm684_vm13 = vcmp.ge.f32.partialorder %v652_v33, 0.0  ;;  %vm685_vm14 = vcmp.ge.f32.partialorder %v653_v35, 0.0 }
  0x4c   : > { %v746_v42 = vsel %vm682_vm11, %v650_v31, %v714_v39  ;;  %v716_v43 = vmul.f32 0.01, %v652_v33  ;;  %v717_v44 = vmul.f32 0.01, %v653_v35  ;;  %v476_v45 = vadd.f32 %v2016_v5, %v437_v36  ;;  %v407_v31 = vld [vmem:[%s2006_s27 + $0xe8] sm:$0xff]  ;;  %v409_v36 = vld [vmem:[%s2006_s27 + $0xf8] sm:$0xff] }
  0x4d   : > { %1852 = vmatmul.mubr.msk.bf16.gmra.mrb[16].mxu0 %vm782_vm0, %v767_v40  ;;  %v747_v46 = vsel %vm683_vm12, %v651_v32, %v715_v41  ;;  %v477_v47 = vadd.f32 %v2016_v5, %v438_v37  ;;  %v439_v48 = vmul.f32 %v1999_v3, %v400_v15  ;;  %v440_v49 = vmul.f32 %v1999_v3, %v401_v16 }
  0x4e   : > { %v1002_v52 = vpack.c.bf16 %v747_v46, %v746_v42  ;;  %v748_v53 = vsel %vm684_vm13, %v652_v33, %v716_v43  ;;  %v749_v54 = vsel %vm685_vm14, %v653_v35, %v717_v44  ;;  %vm508_vm15 = vcmp.ge.f32.partialorder %v476_v45, 0.0  ;;  %v408_v35 = vld [vmem:[%s2006_s27 + $0xf0] sm:$0xff] }
  0x4f   : > { %v1003_v57 = vpack.c.bf16 %v749_v54, %v748_v53  ;;  %vm509_vm1 = vcmp.ge.f32.partialorder %v477_v47, 0.0  ;;  %v540_v58 = vmul.f32 0.01, %v476_v45  ;;  %v541_v59 = vmul.f32 0.01, %v477_v47 }
  0x50   : > { %1889 = vmatprep.mubr.msk.bf16.mxu1 %vm782_vm0, %v1002_v52  ;;  %v478_v60 = vadd.f32 %v2016_v5, %v439_v48  ;;  %v479_v61 = vadd.f32 %v2016_v5, %v440_v49  ;;  %v615_v62 = vmul.f32 %v1994_v2, %v402_v50  ;;  %v616_v63 = vmul.f32 %v1994_v2, %v403_v51 }
  0x51   : > { %1890 = vmatmul.mubr.msk.bf16.gmra.mrb[20].mxu1 %vm782_vm0, %v1003_v57  ;;  %v572_v0 = vsel %vm508_vm15, %v476_v45, %v540_v58  ;;  %v573_v1 = vsel %vm509_vm1, %v477_v47, %v541_v59  ;;  %v617_v6 = vmul.f32 %v1994_v2, %v404_v55  ;;  %v618_v7 = vmul.f32 %v1994_v2, %v405_v56 }
  0x52   : > { %v768_v8 = vpack.c.bf16 %v573_v1, %v572_v0  ;;  %vm510_vm2 = vcmp.ge.f32.partialorder %v478_v60, 0.0  ;;  %vm511_vm3 = vcmp.ge.f32.partialorder %v479_v61, 0.0  ;;  %v542_v9 = vmul.f32 0.01, %v478_v60 }
  0x53   : > { %v543_v10 = vmul.f32 0.01, %v479_v61  ;;  %v654_v11 = vadd.f32 %v2011_v4, %v615_v62  ;;  %v655_v12 = vadd.f32 %v2011_v4, %v616_v63  ;;  %v656_v13 = vadd.f32 %v2011_v4, %v617_v6 }
  0x54   : > { %1855 = vmatprep.mubr.msk.bf16.mxu0 %vm782_vm0, %v768_v8  ;;  %v574_v14 = vsel %vm510_vm2, %v478_v60, %v542_v9  ;;  %v657_v15 = vadd.f32 %v2011_v4, %v618_v7  ;;  %v441_v16 = vmul.f32 %v1999_v3, %v402_v50  ;;  %v442_v17 = vmul.f32 %v1999_v3, %v403_v51 }
  0x55   : > { %v575_v18 = vsel %vm511_vm3, %v479_v61, %v543_v10  ;;  %vm686_vm4 = vcmp.ge.f32.partialorder %v654_v11, 0.0  ;;  %vm687_vm5 = vcmp.ge.f32.partialorder %v655_v12, 0.0  ;;  %v718_v19 = vmul.f32 0.01, %v654_v11 }
  0x56   : > { %v769_v20 = vpack.c.bf16 %v575_v18, %v574_v14  ;;  %v719_v21 = vmul.f32 0.01, %v655_v12  ;;  %vm688_vm6 = vcmp.ge.f32.partialorder %v656_v13, 0.0  ;;  %vm689_vm7 = vcmp.ge.f32.partialorder %v657_v15, 0.0 }
  0x57   : > { %v750_v22 = vsel %vm686_vm4, %v654_v11, %v718_v19  ;;  %v720_v23 = vmul.f32 0.01, %v656_v13  ;;  %v721_v24 = vmul.f32 0.01, %v657_v15  ;;  %v480_v25 = vadd.f32 %v2016_v5, %v441_v16 }
  0x58   : > { %1856 = vmatmul.mubr.msk.bf16.gmra.mrb[20].mxu0 %vm782_vm0, %v769_v20  ;;  %v751_v26 = vsel %vm687_vm5, %v655_v12, %v719_v21  ;;  %v481_v27 = vadd.f32 %v2016_v5, %v442_v17  ;;  %v443_v28 = vmul.f32 %v1999_v3, %v404_v55  ;;  %v444_v29 = vmul.f32 %v1999_v3, %v405_v56 }
  0x59   : > { %v1004_v32 = vpack.c.bf16 %v751_v26, %v750_v22  ;;  %v752_v33 = vsel %vm688_vm6, %v656_v13, %v720_v23  ;;  %v753_v34 = vsel %vm689_vm7, %v657_v15, %v721_v24  ;;  %vm512_vm8 = vcmp.ge.f32.partialorder %v480_v25, 0.0  ;;  %v2219_v24 = vld [vmem:[%s2435_s6] ss:$0 sm:$0xff] }
  0x5a   : > { %v1005_v37 = vpack.c.bf16 %v753_v34, %v752_v33  ;;  %vm513_vm9 = vcmp.ge.f32.partialorder %v481_v27, 0.0  ;;  %v544_v38 = vmul.f32 0.01, %v480_v25  ;;  %v545_v39 = vmul.f32 0.01, %v481_v27 }
  0x5b   : > { %1893 = vmatprep.mubr.msk.bf16.mxu1 %vm782_vm0, %v1004_v32  ;;  %v482_v40 = vadd.f32 %v2016_v5, %v443_v28  ;;  %v483_v41 = vadd.f32 %v2016_v5, %v444_v29  ;;  %v619_v42 = vmul.f32 %v1994_v2, %v406_v30  ;;  %v620_v43 = vmul.f32 %v1994_v2, %v407_v31 }
  0x5c   : > { %1894 = vmatmul.mubr.msk.bf16.gmra.mrb[24].mxu1 %vm782_vm0, %v1005_v37  ;;  %v576_v44 = vsel %vm512_vm8, %v480_v25, %v544_v38  ;;  %v577_v45 = vsel %vm513_vm9, %v481_v27, %v545_v39  ;;  %v621_v46 = vmul.f32 %v1994_v2, %v408_v35  ;;  %v622_v47 = vmul.f32 %v1994_v2, %v409_v36 }
  0x5d   : > { %v770_v48 = vpack.c.bf16 %v577_v45, %v576_v44  ;;  %vm514_vm10 = vcmp.ge.f32.partialorder %v482_v40, 0.0  ;;  %vm515_vm11 = vcmp.ge.f32.partialorder %v483_v41, 0.0  ;;  %v546_v49 = vmul.f32 0.01, %v482_v40 }
  0x5e   : > { %v547_v50 = vmul.f32 0.01, %v483_v41  ;;  %v658_v51 = vadd.f32 %v2011_v4, %v619_v42  ;;  %v659_v52 = vadd.f32 %v2011_v4, %v620_v43  ;;  %v660_v53 = vadd.f32 %v2011_v4, %v621_v46 }
  0x5f   : > { %1859 = vmatprep.mubr.msk.bf16.mxu0 %vm782_vm0, %v770_v48  ;;  %v578_v54 = vsel %vm514_vm10, %v482_v40, %v546_v49  ;;  %v661_v55 = vadd.f32 %v2011_v4, %v622_v47  ;;  %v445_v56 = vmul.f32 %v1999_v3, %v406_v30  ;;  %v446_v2 = vmul.f32 %v1999_v3, %v407_v31 }
  0x60   : > { %v579_v57 = vsel %vm515_vm11, %v483_v41, %v547_v50  ;;  %vm690_vm12 = vcmp.ge.f32.partialorder %v658_v51, 0.0  ;;  %vm691_vm13 = vcmp.ge.f32.partialorder %v659_v52, 0.0  ;;  %v722_v58 = vmul.f32 0.01, %v658_v51 }
  0x61   : > { %v771_v59 = vpack.c.bf16 %v579_v57, %v578_v54  ;;  %v723_v60 = vmul.f32 0.01, %v659_v52  ;;  %vm692_vm14 = vcmp.ge.f32.partialorder %v660_v53, 0.0  ;;  %vm693_vm15 = vcmp.ge.f32.partialorder %v661_v55, 0.0 }
  0x62   : > { %v754_v61 = vsel %vm690_vm12, %v658_v51, %v722_v58  ;;  %v724_v62 = vmul.f32 0.01, %v660_v53  ;;  %v725_v63 = vmul.f32 0.01, %v661_v55  ;;  %v484_v0 = vadd.f32 %v2016_v5, %v445_v56 }
  0x63   : > { %1860 = vmatmul.mubr.msk.bf16.gmra.mrb[24].mxu0 %vm782_vm0, %v771_v59  ;;  %v755_v4 = vsel %vm691_vm13, %v659_v52, %v723_v60  ;;  %v485_v1 = vadd.f32 %v2016_v5, %v446_v2  ;;  %v447_v6 = vmul.f32 %v1999_v3, %v408_v35  ;;  %v448_v7 = vmul.f32 %v1999_v3, %v409_v36 }
  0x64   : > { %v1006_v8 = vpack.c.bf16 %v755_v4, %v754_v61  ;;  %v756_v9 = vsel %vm692_vm14, %v660_v53, %v724_v62  ;;  %v757_v10 = vsel %vm693_vm15, %v661_v55, %v725_v63  ;;  %vm516_vm1 = vcmp.ge.f32.partialorder %v484_v0, 0.0 }
  0x65   : > { %v1007_v11 = vpack.c.bf16 %v757_v10, %v756_v9  ;;  %vm517_vm2 = vcmp.ge.f32.partialorder %v485_v1, 0.0  ;;  %v548_v12 = vmul.f32 0.01, %v484_v0  ;;  %v549_v13 = vmul.f32 0.01, %v485_v1 }
  0x66   : > { %1897 = vmatprep.mubr.msk.bf16.mxu1 %vm782_vm0, %v1006_v8  ;;  %v486_v14 = vadd.f32 %v2016_v5, %v447_v6  ;;  %v487_v15 = vadd.f32 %v2016_v5, %v448_v7  ;;  %v2214_v5 = vld [vmem:[%s2434_s5] ss:$0 sm:$0xff]  ;;  %vm1559_vm7 = vcmask 60416  }
  0x67   : > { %1898 = vmatmul.mubr.msk.bf16.gmra.mrb[28].mxu1 %vm782_vm0, %v1007_v11  ;;  %v580_v16 = vsel %vm516_vm1, %v484_v0, %v548_v12  ;;  %v581_v17 = vsel %vm517_vm2, %v485_v1, %v549_v13 }
  0x68   : > { %v772_v18 = vpack.c.bf16 %v581_v17, %v580_v16  ;;  %vm518_vm3 = vcmp.ge.f32.partialorder %v486_v14, 0.0  ;;  %vm519_vm4 = vcmp.ge.f32.partialorder %v487_v15, 0.0  ;;  %v550_v3 = vmul.f32 0.01, %v486_v14 }
  0x69   : > { %v551_v19 = vmul.f32 0.01, %v487_v15 }
  0x6a   : > { %1863 = vmatprep.mubr.msk.bf16.mxu0 %vm782_vm0, %v772_v18  ;;  %v582_v20 = vsel %vm518_vm3, %v486_v14, %v550_v3 }
  0x6b   : > { %v583_v21 = vsel %vm519_vm4, %v487_v15, %v551_v19 }
  0x6c   : > { %v773_v22 = vpack.c.bf16 %v583_v21, %v582_v20 }
  0x6e   : > { %1864 = vmatmul.mubr.msk.bf16.gmra.mrb[28].mxu0 %vm782_vm0, %v773_v22 }
  0xee   : > { %v1871_v23 = vpop.f32.mrb[0].mxu1 }
  0xef   : > { %v1266_v25 = vmul.f32 %v1871_v23, %v2214_v5  ;;  %v1098_v26 = vpop.f32.mrb[1].mxu1 }
  0xf0   : > { %v1264_v27 = vmul.f32 %v2214_v5, %v1098_v26  ;;  %v1872_v28 = vpop.f32.mrb[2].mxu1 }
  0xf1   : > { %v1305_v29 = vadd.f32 %v2219_v24, %v1266_v25  ;;  %v1267_v30 = vmul.f32 %v1872_v28, %v2214_v5  ;;  %v1101_v31 = vpop.f32.mrb[3].mxu1 }
  0xf2   : > { %v1303_v32 = vadd.f32 %v2219_v24, %v1264_v27  ;;  %v1265_v33 = vmul.f32 %v2214_v5, %v1101_v31  ;;  %v1837_v34 = vpop.f32.mrb[0].mxu0 }
  0xf3   : > { %vm1337_vm5 = vcmp.ge.f32.partialorder %v1305_v29, 0.0  ;;  %v1369_v35 = vmul.f32 0.01, %v1305_v29  ;;  %v1306_v36 = vadd.f32 %v2219_v24, %v1267_v30  ;;  %1227 = vst.msk [vmem:[%s2228_s21 + $0x10] sm:$0xff] %vm782_vm0, %v1837_v34  ;;  %v865_v37 = vpop.f32.mrb[1].mxu0 }
  0xf4   : > { %vm1335_vm6 = vcmp.ge.f32.partialorder %v1303_v32, 0.0  ;;  %v1367_v38 = vmul.f32 0.01, %v1303_v32  ;;  %v1304_v39 = vadd.f32 %v2219_v24, %v1265_v33  ;;  %1225 = vst.msk [vmem:[%s2228_s21] sm:$0xff] %vm782_vm0, %v865_v37  ;;  %v1838_v40 = vpop.f32.mrb[2].mxu0 }
  0xf5   : > { %v1401_v41 = vsel %vm1337_vm5, %v1305_v29, %v1369_v35  ;;  %vm1338_vm8 = vcmp.ge.f32.partialorder %v1306_v36, 0.0  ;;  %v1370_v42 = vmul.f32 0.01, %v1306_v36  ;;  %1228 = vst.msk [vmem:[%s2228_s21 + $0x18] sm:$0xff] %vm782_vm0, %v1838_v40  ;;  %v868_v43 = vpop.f32.mrb[3].mxu0 }
  0xf6   : > { %v1769_v44 = vpack.c.bf16 %v1401_v41, %v1401_v41  ;;  %v1399_v45 = vsel %vm1335_vm6, %v1303_v32, %v1367_v38  ;;  %vm1336_vm9 = vcmp.ge.f32.partialorder %v1304_v39, 0.0  ;;  %v1368_v46 = vmul.f32 0.01, %v1304_v39  ;;  %1226 = vst.msk [vmem:[%s2228_s21 + $0x8] sm:$0xff] %vm782_vm0, %v868_v43 }
  0xf7   : > { %v1767_v47 = vpack.c.bf16 %v1399_v45, %v1399_v45  ;;  %v1402_v48 = vsel %vm1338_vm8, %v1306_v36, %v1370_v42 }
  0xf8   : > { %1562 = vst.msk [vmem:[%s2244_s23 + $0x8] sm:$0xf] %vm1559_vm7, %v1769_v44  ;;  %v1770_v49 = vpack.c.bf16 %v1402_v48, %v1402_v48  ;;  %v1400_v50 = vsel %vm1336_vm9, %v1304_v39, %v1368_v46  ;;  %v1875_v51 = vpop.f32.mrb[4].mxu1 }
  0xf9   : > { %1560 = vst.msk [vmem:[%s2244_s23] sm:$0xf] %vm1559_vm7, %v1767_v47  ;;  %v1768_v52 = vpack.c.bf16 %v1400_v50, %v1400_v50  ;;  %v1270_v53 = vmul.f32 %v1875_v51, %v2214_v5  ;;  %v1114_v54 = vpop.f32.mrb[5].mxu1 }
  0xfa   : > { %1563 = vst.msk [vmem:[%s2244_s23 + $0xc] sm:$0xf] %vm1559_vm7, %v1770_v49  ;;  %v1268_v55 = vmul.f32 %v2214_v5, %v1114_v54  ;;  %v1876_v56 = vpop.f32.mrb[6].mxu1 }
  0xfb   : > { %1561 = vst.msk [vmem:[%s2244_s23 + $0x4] sm:$0xf] %vm1559_vm7, %v1768_v52  ;;  %v1309_v2 = vadd.f32 %v2219_v24, %v1270_v53  ;;  %v1271_v57 = vmul.f32 %v1876_v56, %v2214_v5  ;;  %v1117_v58 = vpop.f32.mrb[7].mxu1 }
  0xfc   : > { %v1307_v59 = vadd.f32 %v2219_v24, %v1268_v55  ;;  %v1269_v60 = vmul.f32 %v2214_v5, %v1117_v58 }
  0xfd   : > { %vm1341_vm10 = vcmp.ge.f32.partialorder %v1309_v2, 0.0  ;;  %v1373_v61 = vmul.f32 0.01, %v1309_v2  ;;  %v1310_v62 = vadd.f32 %v2219_v24, %v1271_v57 }
  0xfe   : > { %vm1339_vm11 = vcmp.ge.f32.partialorder %v1307_v59, 0.0  ;;  %v1371_v63 = vmul.f32 0.01, %v1307_v59  ;;  %v1308_v0 = vadd.f32 %v2219_v24, %v1269_v60 }
  0xff   : > { %v1405_v4 = vsel %vm1341_vm10, %v1309_v2, %v1373_v61  ;;  %vm1342_vm12 = vcmp.ge.f32.partialorder %v1310_v62, 0.0  ;;  %v1374_v1 = vmul.f32 0.01, %v1310_v62  ;;  %v1841_v6 = vpop.f32.mrb[4].mxu0 }
 0x100   : > { %v1773_v7 = vpack.c.bf16 %v1405_v4, %v1405_v4  ;;  %v1403_v8 = vsel %vm1339_vm11, %v1307_v59, %v1371_v63  ;;  %vm1340_vm13 = vcmp.ge.f32.partialorder %v1308_v0, 0.0  ;;  %v1372_v9 = vmul.f32 0.01, %v1308_v0  ;;  %1231 = vst.msk [vmem:[%s2228_s21 + $0x30] sm:$0xff] %vm782_vm0, %v1841_v6  ;;  %v881_v10 = vpop.f32.mrb[5].mxu0 }
 0x101   : > { %v1771_v11 = vpack.c.bf16 %v1403_v8, %v1403_v8  ;;  %v1406_v12 = vsel %vm1342_vm12, %v1310_v62, %v1374_v1  ;;  %1229 = vst.msk [vmem:[%s2228_s21 + $0x20] sm:$0xff] %vm782_vm0, %v881_v10  ;;  %v1842_v13 = vpop.f32.mrb[6].mxu0 }
 0x102   : > { %1566 = vst.msk [vmem:[%s2244_s23 + $0x18] sm:$0xf] %vm1559_vm7, %v1773_v7  ;;  %v1774_v14 = vpack.c.bf16 %v1406_v12, %v1406_v12  ;;  %v1404_v15 = vsel %vm1340_vm13, %v1308_v0, %v1372_v9  ;;  %v884_v16 = vpop.f32.mrb[7].mxu0 }
 0x103   : > { %1232 = vst.msk [vmem:[%s2228_s21 + $0x38] sm:$0xff] %vm782_vm0, %v1842_v13  ;;  %v1772_v17 = vpack.c.bf16 %v1404_v15, %v1404_v15  ;;  %v1879_v18 = vpop.f32.mrb[8].mxu1  ;;  %1230 = vst.msk [vmem:[%s2228_s21 + $0x28] sm:$0xff] %vm782_vm0, %v884_v16 }
 0x104   : > { %1564 = vst.msk [vmem:[%s2244_s23 + $0x10] sm:$0xf] %vm1559_vm7, %v1771_v11  ;;  %1567 = vst.msk [vmem:[%s2244_s23 + $0x1c] sm:$0xf] %vm1559_vm7, %v1774_v14  ;;  %v1274_v3 = vmul.f32 %v1879_v18, %v2214_v5  ;;  %v1130_v19 = vpop.f32.mrb[9].mxu1 }
 0x105   : > { %1565 = vst.msk [vmem:[%s2244_s23 + $0x14] sm:$0xf] %vm1559_vm7, %v1772_v17  ;;  %v1272_v20 = vmul.f32 %v2214_v5, %v1130_v19  ;;  %v1880_v21 = vpop.f32.mrb[10].mxu1 }
 0x106   : > { %v1313_v22 = vadd.f32 %v2219_v24, %v1274_v3  ;;  %v1275_v23 = vmul.f32 %v1880_v21, %v2214_v5  ;;  %v1133_v25 = vpop.f32.mrb[11].mxu1 }
 0x107   : > { %v1311_v26 = vadd.f32 %v2219_v24, %v1272_v20  ;;  %v1273_v27 = vmul.f32 %v2214_v5, %v1133_v25 }
 0x108   : > { %vm1345_vm14 = vcmp.ge.f32.partialorder %v1313_v22, 0.0  ;;  %v1377_v28 = vmul.f32 0.01, %v1313_v22  ;;  %v1314_v29 = vadd.f32 %v2219_v24, %v1275_v23 }
 0x109   : > { %vm1343_vm15 = vcmp.ge.f32.partialorder %v1311_v26, 0.0  ;;  %v1375_v30 = vmul.f32 0.01, %v1311_v26  ;;  %v1312_v31 = vadd.f32 %v2219_v24, %v1273_v27 }
 0x10a   : > { %v1409_v32 = vsel %vm1345_vm14, %v1313_v22, %v1377_v28  ;;  %vm1346_vm1 = vcmp.ge.f32.partialorder %v1314_v29, 0.0  ;;  %v1378_v33 = vmul.f32 0.01, %v1314_v29  ;;  %v1845_v34 = vpop.f32.mrb[8].mxu0 }
 0x10b   : > { %v1777_v35 = vpack.c.bf16 %v1409_v32, %v1409_v32  ;;  %v1407_v36 = vsel %vm1343_vm15, %v1311_v26, %v1375_v30  ;;  %vm1344_vm2 = vcmp.ge.f32.partialorder %v1312_v31, 0.0  ;;  %v1376_v37 = vmul.f32 0.01, %v1312_v31  ;;  %1235 = vst.msk [vmem:[%s2228_s21 + $0x50] sm:$0xff] %vm782_vm0, %v1845_v34  ;;  %v897_v38 = vpop.f32.mrb[9].mxu0 }
 0x10c   : > { %v1775_v39 = vpack.c.bf16 %v1407_v36, %v1407_v36  ;;  %v1410_v40 = vsel %vm1346_vm1, %v1314_v29, %v1378_v33  ;;  %1233 = vst.msk [vmem:[%s2228_s21 + $0x40] sm:$0xff] %vm782_vm0, %v897_v38  ;;  %v1846_v41 = vpop.f32.mrb[10].mxu0 }
 0x10d   : > { %1570 = vst.msk [vmem:[%s2244_s23 + $0x28] sm:$0xf] %vm1559_vm7, %v1777_v35  ;;  %v1778_v42 = vpack.c.bf16 %v1410_v40, %v1410_v40  ;;  %v1408_v43 = vsel %vm1344_vm2, %v1312_v31, %v1376_v37  ;;  %v900_v44 = vpop.f32.mrb[11].mxu0 }
 0x10e   : > { %1236 = vst.msk [vmem:[%s2228_s21 + $0x58] sm:$0xff] %vm782_vm0, %v1846_v41  ;;  %v1776_v45 = vpack.c.bf16 %v1408_v43, %v1408_v43  ;;  %v1883_v46 = vpop.f32.mrb[12].mxu1  ;;  %1234 = vst.msk [vmem:[%s2228_s21 + $0x48] sm:$0xff] %vm782_vm0, %v900_v44 }
 0x10f   : > { %1568 = vst.msk [vmem:[%s2244_s23 + $0x20] sm:$0xf] %vm1559_vm7, %v1775_v39  ;;  %1571 = vst.msk [vmem:[%s2244_s23 + $0x2c] sm:$0xf] %vm1559_vm7, %v1778_v42  ;;  %v1278_v47 = vmul.f32 %v1883_v46, %v2214_v5  ;;  %v1146_v48 = vpop.f32.mrb[13].mxu1 }
 0x110   : > { %1569 = vst.msk [vmem:[%s2244_s23 + $0x24] sm:$0xf] %vm1559_vm7, %v1776_v45  ;;  %v1276_v49 = vmul.f32 %v2214_v5, %v1146_v48  ;;  %v1884_v50 = vpop.f32.mrb[14].mxu1 }
 0x111   : > { %v1317_v51 = vadd.f32 %v2219_v24, %v1278_v47  ;;  %v1279_v52 = vmul.f32 %v1884_v50, %v2214_v5  ;;  %v1149_v53 = vpop.f32.mrb[15].mxu1 }
 0x112   : > { %v1315_v54 = vadd.f32 %v2219_v24, %v1276_v49  ;;  %v1277_v55 = vmul.f32 %v2214_v5, %v1149_v53 }
 0x113   : > { %vm1349_vm3 = vcmp.ge.f32.partialorder %v1317_v51, 0.0  ;;  %v1381_v56 = vmul.f32 0.01, %v1317_v51  ;;  %v1318_v2 = vadd.f32 %v2219_v24, %v1279_v52 }
 0x114   : > { %vm1347_vm4 = vcmp.ge.f32.partialorder %v1315_v54, 0.0  ;;  %v1379_v57 = vmul.f32 0.01, %v1315_v54  ;;  %v1316_v58 = vadd.f32 %v2219_v24, %v1277_v55 }
 0x115   : > { %v1413_v59 = vsel %vm1349_vm3, %v1317_v51, %v1381_v56  ;;  %vm1350_vm5 = vcmp.ge.f32.partialorder %v1318_v2, 0.0  ;;  %v1382_v60 = vmul.f32 0.01, %v1318_v2  ;;  %v1849_v61 = vpop.f32.mrb[12].mxu0 }
 0x116   : > { %v1781_v62 = vpack.c.bf16 %v1413_v59, %v1413_v59  ;;  %v1411_v63 = vsel %vm1347_vm4, %v1315_v54, %v1379_v57  ;;  %vm1348_vm6 = vcmp.ge.f32.partialorder %v1316_v58, 0.0  ;;  %v1380_v0 = vmul.f32 0.01, %v1316_v58  ;;  %1239 = vst.msk [vmem:[%s2228_s21 + $0x70] sm:$0xff] %vm782_vm0, %v1849_v61  ;;  %v913_v4 = vpop.f32.mrb[13].mxu0 }
 0x117   : > { %v1779_v1 = vpack.c.bf16 %v1411_v63, %v1411_v63  ;;  %v1414_v6 = vsel %vm1350_vm5, %v1318_v2, %v1382_v60  ;;  %1237 = vst.msk [vmem:[%s2228_s21 + $0x60] sm:$0xff] %vm782_vm0, %v913_v4  ;;  %v1850_v7 = vpop.f32.mrb[14].mxu0 }
 0x118   : > { %1574 = vst.msk [vmem:[%s2244_s23 + $0x38] sm:$0xf] %vm1559_vm7, %v1781_v62  ;;  %v1782_v8 = vpack.c.bf16 %v1414_v6, %v1414_v6  ;;  %v1412_v9 = vsel %vm1348_vm6, %v1316_v58, %v1380_v0  ;;  %v916_v10 = vpop.f32.mrb[15].mxu0 }
 0x119   : > { %1240 = vst.msk [vmem:[%s2228_s21 + $0x78] sm:$0xff] %vm782_vm0, %v1850_v7  ;;  %v1780_v11 = vpack.c.bf16 %v1412_v9, %v1412_v9  ;;  %v1887_v12 = vpop.f32.mrb[16].mxu1  ;;  %1238 = vst.msk [vmem:[%s2228_s21 + $0x68] sm:$0xff] %vm782_vm0, %v916_v10 }
 0x11a   : > { %1572 = vst.msk [vmem:[%s2244_s23 + $0x30] sm:$0xf] %vm1559_vm7, %v1779_v1  ;;  %1575 = vst.msk [vmem:[%s2244_s23 + $0x3c] sm:$0xf] %vm1559_vm7, %v1782_v8  ;;  %v1282_v13 = vmul.f32 %v1887_v12, %v2214_v5  ;;  %v1162_v14 = vpop.f32.mrb[17].mxu1 }
 0x11b   : > { %1573 = vst.msk [vmem:[%s2244_s23 + $0x34] sm:$0xf] %vm1559_vm7, %v1780_v11  ;;  %v1280_v15 = vmul.f32 %v2214_v5, %v1162_v14  ;;  %v1888_v16 = vpop.f32.mrb[18].mxu1 }
 0x11c   : > { %v1321_v17 = vadd.f32 %v2219_v24, %v1282_v13  ;;  %v1283_v18 = vmul.f32 %v1888_v16, %v2214_v5  ;;  %v1165_v3 = vpop.f32.mrb[19].mxu1 }
 0x11d   : > { %v1319_v19 = vadd.f32 %v2219_v24, %v1280_v15  ;;  %v1281_v20 = vmul.f32 %v2214_v5, %v1165_v3 }
 0x11e   : > { %vm1353_vm8 = vcmp.ge.f32.partialorder %v1321_v17, 0.0  ;;  %v1385_v21 = vmul.f32 0.01, %v1321_v17  ;;  %v1322_v22 = vadd.f32 %v2219_v24, %v1283_v18 }
 0x11f   : > { %vm1351_vm9 = vcmp.ge.f32.partialorder %v1319_v19, 0.0  ;;  %v1383_v23 = vmul.f32 0.01, %v1319_v19  ;;  %v1320_v25 = vadd.f32 %v2219_v24, %v1281_v20 }
 0x120   : > { %v1417_v26 = vsel %vm1353_vm8, %v1321_v17, %v1385_v21  ;;  %vm1354_vm10 = vcmp.ge.f32.partialorder %v1322_v22, 0.0  ;;  %v1386_v27 = vmul.f32 0.01, %v1322_v22  ;;  %v1853_v28 = vpop.f32.mrb[16].mxu0 }
 0x121   : > { %v1785_v29 = vpack.c.bf16 %v1417_v26, %v1417_v26  ;;  %v1415_v30 = vsel %vm1351_vm9, %v1319_v19, %v1383_v23  ;;  %vm1352_vm11 = vcmp.ge.f32.partialorder %v1320_v25, 0.0  ;;  %v1384_v31 = vmul.f32 0.01, %v1320_v25  ;;  %1243 = vst.msk [vmem:[%s2228_s21 + $0x90] sm:$0xff] %vm782_vm0, %v1853_v28  ;;  %v929_v32 = vpop.f32.mrb[17].mxu0 }
 0x122   : > { %v1783_v33 = vpack.c.bf16 %v1415_v30, %v1415_v30  ;;  %v1418_v34 = vsel %vm1354_vm10, %v1322_v22, %v1386_v27  ;;  %1241 = vst.msk [vmem:[%s2228_s21 + $0x80] sm:$0xff] %vm782_vm0, %v929_v32  ;;  %v1854_v35 = vpop.f32.mrb[18].mxu0 }
 0x123   : > { %1578 = vst.msk [vmem:[%s2244_s23 + $0x48] sm:$0xf] %vm1559_vm7, %v1785_v29  ;;  %v1786_v36 = vpack.c.bf16 %v1418_v34, %v1418_v34  ;;  %v1416_v37 = vsel %vm1352_vm11, %v1320_v25, %v1384_v31  ;;  %v932_v38 = vpop.f32.mrb[19].mxu0 }
 0x124   : > { %1244 = vst.msk [vmem:[%s2228_s21 + $0x98] sm:$0xff] %vm782_vm0, %v1854_v35  ;;  %v1784_v39 = vpack.c.bf16 %v1416_v37, %v1416_v37  ;;  %v1891_v40 = vpop.f32.mrb[20].mxu1  ;;  %1242 = vst.msk [vmem:[%s2228_s21 + $0x88] sm:$0xff] %vm782_vm0, %v932_v38 }
 0x125   : > { %1576 = vst.msk [vmem:[%s2244_s23 + $0x40] sm:$0xf] %vm1559_vm7, %v1783_v33  ;;  %1579 = vst.msk [vmem:[%s2244_s23 + $0x4c] sm:$0xf] %vm1559_vm7, %v1786_v36  ;;  %v1286_v41 = vmul.f32 %v1891_v40, %v2214_v5  ;;  %v1178_v42 = vpop.f32.mrb[21].mxu1 }
 0x126   : > { %1577 = vst.msk [vmem:[%s2244_s23 + $0x44] sm:$0xf] %vm1559_vm7, %v1784_v39  ;;  %v1284_v43 = vmul.f32 %v2214_v5, %v1178_v42  ;;  %v1892_v44 = vpop.f32.mrb[22].mxu1 }
 0x127   : > { %v1325_v45 = vadd.f32 %v2219_v24, %v1286_v41  ;;  %v1287_v46 = vmul.f32 %v1892_v44, %v2214_v5  ;;  %v1181_v47 = vpop.f32.mrb[23].mxu1 }
 0x128   : > { %v1323_v48 = vadd.f32 %v2219_v24, %v1284_v43  ;;  %v1285_v49 = vmul.f32 %v2214_v5, %v1181_v47 }
 0x129   : > { %vm1357_vm12 = vcmp.ge.f32.partialorder %v1325_v45, 0.0  ;;  %v1389_v50 = vmul.f32 0.01, %v1325_v45  ;;  %v1326_v51 = vadd.f32 %v2219_v24, %v1287_v46 }
 0x12a   : > { %vm1355_vm13 = vcmp.ge.f32.partialorder %v1323_v48, 0.0  ;;  %v1387_v52 = vmul.f32 0.01, %v1323_v48  ;;  %v1324_v53 = vadd.f32 %v2219_v24, %v1285_v49 }
 0x12b   : > { %v1421_v54 = vsel %vm1357_vm12, %v1325_v45, %v1389_v50  ;;  %vm1358_vm14 = vcmp.ge.f32.partialorder %v1326_v51, 0.0  ;;  %v1390_v55 = vmul.f32 0.01, %v1326_v51  ;;  %v1857_v56 = vpop.f32.mrb[20].mxu0 }
 0x12c   : > { %v1789_v2 = vpack.c.bf16 %v1421_v54, %v1421_v54  ;;  %v1419_v57 = vsel %vm1355_vm13, %v1323_v48, %v1387_v52  ;;  %vm1356_vm15 = vcmp.ge.f32.partialorder %v1324_v53, 0.0  ;;  %v1388_v58 = vmul.f32 0.01, %v1324_v53  ;;  %1247 = vst.msk [vmem:[%s2228_s21 + $0xb0] sm:$0xff] %vm782_vm0, %v1857_v56  ;;  %v945_v59 = vpop.f32.mrb[21].mxu0 }
 0x12d   : > { %v1787_v60 = vpack.c.bf16 %v1419_v57, %v1419_v57  ;;  %v1422_v61 = vsel %vm1358_vm14, %v1326_v51, %v1390_v55  ;;  %1245 = vst.msk [vmem:[%s2228_s21 + $0xa0] sm:$0xff] %vm782_vm0, %v945_v59  ;;  %v1858_v62 = vpop.f32.mrb[22].mxu0 }
 0x12e   : > { %1582 = vst.msk [vmem:[%s2244_s23 + $0x58] sm:$0xf] %vm1559_vm7, %v1789_v2  ;;  %v1790_v63 = vpack.c.bf16 %v1422_v61, %v1422_v61  ;;  %v1420_v0 = vsel %vm1356_vm15, %v1324_v53, %v1388_v58  ;;  %v948_v4 = vpop.f32.mrb[23].mxu0 }
 0x12f   : > { %1248 = vst.msk [vmem:[%s2228_s21 + $0xb8] sm:$0xff] %vm782_vm0, %v1858_v62  ;;  %v1788_v1 = vpack.c.bf16 %v1420_v0, %v1420_v0  ;;  %v1895_v6 = vpop.f32.mrb[24].mxu1  ;;  %1246 = vst.msk [vmem:[%s2228_s21 + $0xa8] sm:$0xff] %vm782_vm0, %v948_v4 }
 0x130   : > { %1580 = vst.msk [vmem:[%s2244_s23 + $0x50] sm:$0xf] %vm1559_vm7, %v1787_v60  ;;  %1583 = vst.msk [vmem:[%s2244_s23 + $0x5c] sm:$0xf] %vm1559_vm7, %v1790_v63  ;;  %v1290_v7 = vmul.f32 %v1895_v6, %v2214_v5  ;;  %v1194_v8 = vpop.f32.mrb[25].mxu1 }
 0x131   : > { %1581 = vst.msk [vmem:[%s2244_s23 + $0x54] sm:$0xf] %vm1559_vm7, %v1788_v1  ;;  %v1288_v9 = vmul.f32 %v2214_v5, %v1194_v8  ;;  %v1896_v10 = vpop.f32.mrb[26].mxu1 }
 0x132   : > { %v1329_v11 = vadd.f32 %v2219_v24, %v1290_v7  ;;  %v1291_v12 = vmul.f32 %v1896_v10, %v2214_v5  ;;  %v1197_v13 = vpop.f32.mrb[27].mxu1 }
 0x133   : > { %v1327_v14 = vadd.f32 %v2219_v24, %v1288_v9  ;;  %v1289_v15 = vmul.f32 %v2214_v5, %v1197_v13 }
 0x134   : > { %vm1361_vm1 = vcmp.ge.f32.partialorder %v1329_v11, 0.0  ;;  %v1393_v16 = vmul.f32 0.01, %v1329_v11  ;;  %v1330_v17 = vadd.f32 %v2219_v24, %v1291_v12 }
 0x135   : > { %vm1359_vm2 = vcmp.ge.f32.partialorder %v1327_v14, 0.0  ;;  %v1391_v18 = vmul.f32 0.01, %v1327_v14  ;;  %v1328_v3 = vadd.f32 %v2219_v24, %v1289_v15 }
 0x136   : > { %v1425_v19 = vsel %vm1361_vm1, %v1329_v11, %v1393_v16  ;;  %vm1362_vm3 = vcmp.ge.f32.partialorder %v1330_v17, 0.0  ;;  %v1394_v20 = vmul.f32 0.01, %v1330_v17  ;;  %v1861_v21 = vpop.f32.mrb[24].mxu0 }
 0x137   : > { %v1793_v22 = vpack.c.bf16 %v1425_v19, %v1425_v19  ;;  %v1423_v23 = vsel %vm1359_vm2, %v1327_v14, %v1391_v18  ;;  %vm1360_vm4 = vcmp.ge.f32.partialorder %v1328_v3, 0.0  ;;  %v1392_v25 = vmul.f32 0.01, %v1328_v3  ;;  %1251 = vst.msk [vmem:[%s2228_s21 + $0xd0] sm:$0xff] %vm782_vm0, %v1861_v21  ;;  %v961_v26 = vpop.f32.mrb[25].mxu0 }
 0x138   : > { %v1791_v27 = vpack.c.bf16 %v1423_v23, %v1423_v23  ;;  %v1426_v28 = vsel %vm1362_vm3, %v1330_v17, %v1394_v20  ;;  %1249 = vst.msk [vmem:[%s2228_s21 + $0xc0] sm:$0xff] %vm782_vm0, %v961_v26  ;;  %v1862_v29 = vpop.f32.mrb[26].mxu0 }
 0x139   : > { %1586 = vst.msk [vmem:[%s2244_s23 + $0x68] sm:$0xf] %vm1559_vm7, %v1793_v22  ;;  %v1794_v30 = vpack.c.bf16 %v1426_v28, %v1426_v28  ;;  %v1424_v31 = vsel %vm1360_vm4, %v1328_v3, %v1392_v25  ;;  %v964_v32 = vpop.f32.mrb[27].mxu0 }
 0x13a   : > { %1252 = vst.msk [vmem:[%s2228_s21 + $0xd8] sm:$0xff] %vm782_vm0, %v1862_v29  ;;  %v1792_v33 = vpack.c.bf16 %v1424_v31, %v1424_v31  ;;  %v1899_v34 = vpop.f32.mrb[28].mxu1  ;;  %1250 = vst.msk [vmem:[%s2228_s21 + $0xc8] sm:$0xff] %vm782_vm0, %v964_v32 }
 0x13b   : > { %1584 = vst.msk [vmem:[%s2244_s23 + $0x60] sm:$0xf] %vm1559_vm7, %v1791_v27  ;;  %1587 = vst.msk [vmem:[%s2244_s23 + $0x6c] sm:$0xf] %vm1559_vm7, %v1794_v30  ;;  %v1294_v35 = vmul.f32 %v1899_v34, %v2214_v5  ;;  %v1210_v36 = vpop.f32.mrb[29].mxu1 }
 0x13c   : > { %1585 = vst.msk [vmem:[%s2244_s23 + $0x64] sm:$0xf] %vm1559_vm7, %v1792_v33  ;;  %v1292_v37 = vmul.f32 %v2214_v5, %v1210_v36  ;;  %v1900_v38 = vpop.f32.mrb[30].mxu1 }
 0x13d   : > { %v1333_v39 = vadd.f32 %v2219_v24, %v1294_v35  ;;  %v1295_v40 = vmul.f32 %v1900_v38, %v2214_v5  ;;  %v1213_v41 = vpop.f32.mrb[31].mxu1 }
 0x13e   : > { %v1331_v42 = vadd.f32 %v2219_v24, %v1292_v37  ;;  %v1293_v43 = vmul.f32 %v2214_v5, %v1213_v41 }
 0x13f   : > { %vm1365_vm5 = vcmp.ge.f32.partialorder %v1333_v39, 0.0  ;;  %v1397_v44 = vmul.f32 0.01, %v1333_v39  ;;  %v1334_v45 = vadd.f32 %v2219_v24, %v1295_v40 }
 0x140   : > { %vm1363_vm6 = vcmp.ge.f32.partialorder %v1331_v42, 0.0  ;;  %v1395_v46 = vmul.f32 0.01, %v1331_v42  ;;  %v1332_v47 = vadd.f32 %v2219_v24, %v1293_v43 }
 0x141   : > { %v1429_v48 = vsel %vm1365_vm5, %v1333_v39, %v1397_v44  ;;  %vm1366_vm8 = vcmp.ge.f32.partialorder %v1334_v45, 0.0  ;;  %v1398_v49 = vmul.f32 0.01, %v1334_v45  ;;  %v1865_v50 = vpop.f32.mrb[28].mxu0 }
 0x142   : > { %v1797_v51 = vpack.c.bf16 %v1429_v48, %v1429_v48  ;;  %v1427_v52 = vsel %vm1363_vm6, %v1331_v42, %v1395_v46  ;;  %vm1364_vm9 = vcmp.ge.f32.partialorder %v1332_v47, 0.0  ;;  %v1396_v5 = vmul.f32 0.01, %v1332_v47  ;;  %1255 = vst.msk [vmem:[%s2228_s21 + $0xf0] sm:$0xff] %vm782_vm0, %v1865_v50  ;;  %v977_v53 = vpop.f32.mrb[29].mxu0 }
 0x143   : > { %v1795_v54 = vpack.c.bf16 %v1427_v52, %v1427_v52  ;;  %v1430_v55 = vsel %vm1366_vm8, %v1334_v45, %v1398_v49  ;;  %1253 = vst.msk [vmem:[%s2228_s21 + $0xe0] sm:$0xff] %vm782_vm0, %v977_v53  ;;  %v1866_v24 = vpop.f32.mrb[30].mxu0 }
 0x144   : > { %1590 = vst.msk [vmem:[%s2244_s23 + $0x78] sm:$0xf] %vm1559_vm7, %v1797_v51  ;;  %v1798_v56 = vpack.c.bf16 %v1430_v55, %v1430_v55  ;;  %v1428_v2 = vsel %vm1364_vm9, %v1332_v47, %v1396_v5  ;;  %v980_v57 = vpop.f32.mrb[31].mxu0 }
 0x145   : > { %1256 = vst.msk [vmem:[%s2228_s21 + $0xf8] sm:$0xff] %vm782_vm0, %v1866_v24  ;;  %v1796_v58 = vpack.c.bf16 %v1428_v2, %v1428_v2  ;;  %1254 = vst.msk [vmem:[%s2228_s21 + $0xe8] sm:$0xff] %vm782_vm0, %v980_v57 }
 0x146   : > { %1588 = vst.msk [vmem:[%s2244_s23 + $0x70] sm:$0xf] %vm1559_vm7, %v1795_v54  ;;  %1591 = vst.msk [vmem:[%s2244_s23 + $0x7c] sm:$0xf] %vm1559_vm7, %v1798_v56 }
 0x147   : > { %1589 = vst.msk [vmem:[%s2244_s23 + $0x74] sm:$0xf] %vm1559_vm7, %v1796_v58 }
 0x148 PF: > { %s21_s13 = sadd.s32 1, %s1917_s13  }
 0x149   : > { %p18_p4 = scmp.ge.s32.totalorder %s21_s13, 4  }
 0x14b   :  { %20 = sbr.rel (!%p18_p4) target bundleno = 1 (0x1), region = 98 }

// kernel: dual_path_block_forward.5
= control target key start
LH: loop header
LB: loop body
LE: loop exit
PB: predicated region body
PF: predicated region fallthrough
CT: control target
= control target key end

     0   :  { %12 = vsyncpa [#allocation3], 0  ;;  %s2115_s0 = inlined_call_operand.vmem [shape: bf16[512,8], index: 0, kind: input, shape index: {}]   ;;  %s2116_s1 = inlined_call_operand.vmem [shape: f32[512,16], index: 1, kind: input, shape index: {}]   ;;  %s2117_s2 = inlined_call_operand.vmem [shape: f32[1,8], index: 2, kind: input, shape index: {}]   ;;  %s2118_s3 = inlined_call_operand.vmem [shape: f32[1,8], index: 3, kind: input, shape index: {}]   ;;  %s2119_s4 = inlined_call_operand.vmem [shape: bf16[8,12], index: 4, kind: input, shape index: {}]   ;;  %s2120_s5 = inlined_call_operand.vmem [shape: f32[512,8], index: 5, kind: output, shape index: {0}]   ;;  %s2121_s6 = inlined_call_operand.hbm [shape: f32[512,12], index: 6, kind: output, shape index: {1}]  }
   0x1   :  { %14 = vsyncpa [#allocation3 + $0x1], 0  ;;  %s1484_s21 = smov 0   ;;  %s1486_s22 = smov 0  }
   0x2   :  { %s1488_s23 = smov 0   ;;  %s1490_s24 = smov 0  }
   0x3 LB: > { %s1505_s25 = sadd.s32 4294967295, %s1443_s24   ;;  %s1170_s26 = sadd.s32 4294967294, %s1443_s24   ;;  %s1443_s24 = sphi %s1490_s24, %s2127_s24   ;;  %s1439_s23 = sphi %s1488_s23, %s2126_s23   ;;  %s1435_s22 = sphi %s1486_s22, %s2125_s22   ;;  %s1431_s21 = sphi %s1484_s21, %s2124_s21  }
   0x4   : > { %s1509_s27 = sadd.s32 1, %s1443_s24   ;;  %s168_s28 = sadd.s32 1, %s1439_s23 }
   0x5   : > { %s165_s29 = ssub.s32 %s1443_s24, %s1509_s27  ;;  %p178_p0 = scmp.ne.s32.totalorder %s1439_s23, %s1435_s22 }
   0x6   : > { %p166_p1 = scmp.eq.s32.totalorder %s165_s29, 0  ;;  %p179_p2 = scmp.eq.s32.totalorder %s1505_s25, 1 }
   0x7   : > { %p184_p3 = scmp.ne.s32.totalorder %s1435_s22, %s1431_s21  ;;  %p185_p4 = scmp.eq.s32.totalorder %s1170_s26, 1 }
   0x8   : > { %s1520_s30 = scalar_select %p166_p1, %s1439_s23, %s168_s28  }
   0x9   : > { %p1522_p5 = por %p179_p2, %p178_p0  ;;  %p1526_p6 = por %p185_p4, %p184_p3 }
   0xa   : > { %p1173_p7 = scmp.ge.s32.totalorder %s1443_s24, 1  ;;  %p230_p8 = scmp.lt.s32.totalorder %s1443_s24, 3 }
   0xc   : > { %p231_p9 = pnand %p1173_p7, %p230_p8 }
   0xd   : > { %v544_v0 = vld [vmem:[%s2119_s4] sm:$0xf] (!%p231_p9)  ;;  %vm594_vm0 = vcmask (!%p231_p9), 1043456   ;;  %s1175_s11 = sshll.u32 (!%p231_p9), %s1505_s25, 5  ;;  %vm545_vm1 = vcmask (!%p231_p9), 64512   ;;  %s1445_s9 = smov (!%p231_p9), 120  }
   0xe   : > { %234 = sbr.rel (%p231_p9) target bundleno = 317 (0x13d), region = 40  ;;  %1337 = vmatprep.subr.msk.bf16.mxu0 (!%p231_p9), %vm594_vm0, %v544_v0  ;;  %1338 = vmatprep.subr.msk.bf16.mxu1 (!%p231_p9), %vm594_vm0, %v544_v0  ;;  %v596_v1 = vsel (!%p231_p9), %vm594_vm0, %v544_v0, 0  ;;  %p271_p10 = scmp.lt.s32.totalorder (!%p231_p9), %s1175_s11, 63  ;;  %v1548_v2 = vld [vmem:[%s2117_s2] ss:$0 sm:$0xff] (!%p231_p9) }
   0xf   : > { %1302 = vmatpush3.bf16.msra.mxu0 (!%p231_p9), %v596_v1  ;;  %1336 = vmatpush3.bf16.msra.mxu1 (!%p231_p9), %v596_v1  ;;  %v1564_v11 = vld [vmem:[%s2118_s3] ss:$0 sm:$0xff] (!%p231_p9)  ;;  %s267_s10 = sand.u32 (!%p231_p9), 1, %s1435_s22   ;;  %s1446_s28 = smov (!%p231_p9), [#allocation2]  }
  0x10   : > { %s2074_s20 = scalar_lea.sflag (!%p231_p9), [#allocation3], %s267_s10  ;;  %s1385_s29 = sshll.u32 (!%p231_p9), %s1446_s28, 4  ;;  %s1386_s29 = int_to_ptr.vmem [resolvable:$false] %s1385_s29 }
  0x15   : > { %s2129_s11 = smov (!%p271_p10, %s1175_s11), 63 }
  0x16   : > { %s1176_s12 = sshll.u32 %s2129_s11, 2  ;;  %s1178_s16 = sshll.u32 %s2129_s11, 3 }
  0x17   : > { %s1542_s15 = scalar_lea.vmem %s2115_s0, %s1176_s12  ;;  %s1559_s26 = scalar_lea.vmem %s2116_s1, %s1178_s16 }
  0x18   : > { %v1206_v3 = vld [vmem:[%s1542_s15] sm:$0xff]   ;;  %v1269_v5 = vld [vmem:[%s1542_s15 + $0x8] sm:$0xff]   ;;  %v1582_v29 = vld [vmem:[%s1559_s26 + $0x10] sm:$0xff]  ;;  %s1174_s12 = sshll.u32 %s267_s10, 8  ;;  %s1204_s11 = sshll.u32 %s1505_s25, 12 }
  0x19   : > { %v1276_v4 = vld [vmem:[%s1542_s15 + $0x40] sm:$0xff]   ;;  %v1207_v6 = vunpack.c.l.bf16 %v1206_v3  ;;  %v1208_v7 = vunpack.c.h.bf16 %v1206_v3  ;;  %v1277_v10 = vld [vmem:[%s1542_s15 + $0x48] sm:$0xff]   ;;  %v1211_v12 = vunpack.c.l.bf16 %v1269_v5  ;;  %v1212_v13 = vunpack.c.h.bf16 %v1269_v5  ;;  %v1594_v35 = vld [vmem:[%s1559_s26 + $0x18] sm:$0xff]  ;;  %891 = vrot.lane.b32.xlu1 %v1582_v29, %s1445_s9  ;;  %s1859_s17 = scalar_lea.vmem [#allocation2], %s1174_s12  ;;  %s2048_s19 = scalar_lea.hbm %s2121_s6, %s1204_s11 }
  0x1a   : > { %v1239_v8 = vunpack.c.l.bf16 %v1276_v4  ;;  %v1240_v9 = vunpack.c.h.bf16 %v1276_v4  ;;  %v1243_v14 = vunpack.c.l.bf16 %v1277_v10  ;;  %v1244_v15 = vunpack.c.h.bf16 %v1277_v10  ;;  %v1579_v28 = vld [vmem:[%s1559_s26] sm:$0xff]  ;;  %v1591_v34 = vld [vmem:[%s1559_s26 + $0x8] sm:$0xff]  ;;  %v1270_v42 = vld [vmem:[%s1542_s15 + $0x10] sm:$0xff]  }
  0x1b   : > { %v361_v16 = vmul.f32 %v1207_v6, %v1548_v2  ;;  %v362_v17 = vmul.f32 %v1208_v7, %v1548_v2  ;;  %v363_v20 = vmul.f32 %v1211_v12, %v1548_v2  ;;  %v364_v21 = vmul.f32 %v1212_v13, %v1548_v2  ;;  %887 = vrot.lane.b32.xlu0 %v1579_v28, %s1445_s9  ;;  %v1278_v47 = vld [vmem:[%s1542_s15 + $0x50] sm:$0xff]   ;;  %v1605_v50 = vld [vmem:[%s1559_s26 + $0x20] sm:$0xff]  ;;  %v1610_v55 = vld [vmem:[%s1559_s26 + $0x28] sm:$0xff] }
  0x1c   : > { %v377_v18 = vmul.f32 %v1239_v8, %v1548_v2  ;;  %v378_v19 = vmul.f32 %v1240_v9, %v1548_v2  ;;  %v379_v22 = vmul.f32 %v1243_v14, %v1548_v2  ;;  %v380_v23 = vmul.f32 %v1244_v15, %v1548_v2  ;;  %v1271_v60 = vld [vmem:[%s1542_s15 + $0x18] sm:$0xff]   ;;  %v1627_v7 = vld [vmem:[%s1559_s26 + $0x30] sm:$0xff] }
  0x1d   : > { %v400_v24 = vadd.f32 %v1564_v11, %v361_v16  ;;  %v401_v25 = vadd.f32 %v1564_v11, %v362_v17  ;;  %v402_v30 = vadd.f32 %v1564_v11, %v363_v20  ;;  %v403_v31 = vadd.f32 %v1564_v11, %v364_v21  ;;  %893 = vrot.lane.b32.xlu1 %v1594_v35, %s1445_s9  ;;  %v1279_v61 = vld [vmem:[%s1542_s15 + $0x58] sm:$0xff]  }
  0x1e   : > { %v416_v26 = vadd.f32 %v1564_v11, %v377_v18  ;;  %v417_v27 = vadd.f32 %v1564_v11, %v378_v19  ;;  %v418_v32 = vadd.f32 %v1564_v11, %v379_v22  ;;  %v419_v33 = vadd.f32 %v1564_v11, %v380_v23  ;;  %v1632_v13 = vld [vmem:[%s1559_s26 + $0x38] sm:$0xff]  ;;  %v1645_v22 = vld [vmem:[%s1559_s26 + $0x40] sm:$0xff] }
  0x1f   : > { %vm432_vm2 = vcmp.ge.f32.partialorder %v400_v24, 0.0  ;;  %vm433_vm3 = vcmp.ge.f32.partialorder %v401_v25, 0.0  ;;  %v464_v36 = vmul.f32 0.01, %v400_v24  ;;  %v465_v37 = vmul.f32 0.01, %v401_v25  ;;  %889 = vrot.lane.b32.xlu0 %v1591_v34, %s1445_s9 }
  0x20   : > { %vm448_vm4 = vcmp.ge.f32.partialorder %v416_v26, 0.0  ;;  %vm449_vm5 = vcmp.ge.f32.partialorder %v417_v27, 0.0  ;;  %v480_v38 = vmul.f32 0.01, %v416_v26  ;;  %v481_v39 = vmul.f32 0.01, %v417_v27 }
  0x21   : > { %v496_v40 = vsel %vm432_vm2, %v400_v24, %v464_v36  ;;  %v497_v41 = vsel %vm433_vm3, %v401_v25, %v465_v37  ;;  %vm434_vm6 = vcmp.ge.f32.partialorder %v402_v30, 0.0  ;;  %vm435_vm7 = vcmp.ge.f32.partialorder %v403_v31, 0.0  ;;  %897 = vrot.lane.b32.xlu1 %v1610_v55, %s1445_s9  ;;  %v1272_v36 = vld [vmem:[%s1542_s15 + $0x20] sm:$0xff]  }
  0x22   : > { %v528_v43 = vpack.c.bf16 %v497_v41, %v496_v40  ;;  %v512_v44 = vsel %vm448_vm4, %v416_v26, %v480_v38  ;;  %v513_v45 = vsel %vm449_vm5, %v417_v27, %v481_v39  ;;  %v466_v46 = vmul.f32 0.01, %v402_v30  ;;  %v1649_v27 = vld [vmem:[%s1559_s26 + $0x48] sm:$0xff]  ;;  %v1280_v40 = vld [vmem:[%s1542_s15 + $0x60] sm:$0xff]  }
  0x23   : > { %v536_v48 = vpack.c.bf16 %v513_v45, %v512_v44  ;;  %v467_v49 = vmul.f32 0.01, %v403_v31  ;;  %vm450_vm8 = vcmp.ge.f32.partialorder %v418_v32, 0.0  ;;  %vm451_vm9 = vcmp.ge.f32.partialorder %v419_v33, 0.0  ;;  %895 = vrot.lane.b32.xlu0 %v1605_v50, %s1445_s9  ;;  %v1661_v44 = vld [vmem:[%s1559_s26 + $0x50] sm:$0xff] }
  0x24   : > { %1303 = vmatprep.mubr.msk.bf16.mxu0 %vm545_vm1, %v528_v43  ;;  %v498_v51 = vsel %vm434_vm6, %v402_v30, %v466_v46  ;;  %v482_v52 = vmul.f32 0.01, %v418_v32  ;;  %v483_v53 = vmul.f32 0.01, %v419_v33  ;;  %v1215_v54 = vunpack.c.l.bf16 %v1270_v42 }
  0x25   : > { %1319 = vmatprep.mubr.msk.bf16.mxu1 %vm545_vm1, %v536_v48  ;;  %v499_v56 = vsel %vm435_vm7, %v403_v31, %v467_v49  ;;  %v1216_v57 = vunpack.c.h.bf16 %v1270_v42  ;;  %v1247_v58 = vunpack.c.l.bf16 %v1278_v47  ;;  %v1248_v59 = vunpack.c.h.bf16 %v1278_v47  ;;  %901 = vrot.lane.b32.xlu1 %v1632_v13, %s1445_s9  ;;  %v1667_v49 = vld [vmem:[%s1559_s26 + $0x58] sm:$0xff] }
  0x26   : > { %v529_v62 = vpack.c.bf16 %v499_v56, %v498_v51  ;;  %v514_v63 = vsel %vm450_vm8, %v418_v32, %v482_v52  ;;  %v515_v0 = vsel %vm451_vm9, %v419_v33, %v483_v53  ;;  %v365_v1 = vmul.f32 %v1215_v54, %v1548_v2  ;;  %v1273_v56 = vld [vmem:[%s1542_s15 + $0x28] sm:$0xff]  }
  0x27   : > { %v537_v3 = vpack.c.bf16 %v515_v0, %v514_v63  ;;  %v366_v4 = vmul.f32 %v1216_v57, %v1548_v2  ;;  %v381_v5 = vmul.f32 %v1247_v58, %v1548_v2  ;;  %v382_v6 = vmul.f32 %v1248_v59, %v1548_v2  ;;  %899 = vrot.lane.b32.xlu0 %v1627_v7, %s1445_s9  ;;  %v1680_v63 = vld [vmem:[%s1559_s26 + $0x60] sm:$0xff] }
  0x28   : > { %1304 = vmatmul.mubr.msk.bf16.vlgmr.msra.gmra.mrb[0].mxu0 %vm545_vm1, %v529_v62  ;;  %v404_v8 = vadd.f32 %v1564_v11, %v365_v1  ;;  %v1219_v9 = vunpack.c.l.bf16 %v1271_v60  ;;  %v1220_v10 = vunpack.c.h.bf16 %v1271_v60  ;;  %v1251_v12 = vunpack.c.l.bf16 %v1279_v61 }
  0x29   : > { %1320 = vmatmul.mubr.msk.bf16.vlgmr.msra.gmra.mrb[0].mxu1 %vm545_vm1, %v537_v3  ;;  %v405_v14 = vadd.f32 %v1564_v11, %v366_v4  ;;  %v420_v15 = vadd.f32 %v1564_v11, %v381_v5  ;;  %v421_v16 = vadd.f32 %v1564_v11, %v382_v6  ;;  %v1252_v17 = vunpack.c.h.bf16 %v1279_v61  ;;  %905 = vrot.lane.b32.xlu1 %v1649_v27, %s1445_s9  ;;  %v1685_v5 = vld [vmem:[%s1559_s26 + $0x68] sm:$0xff] }
  0x2a   : > { %vm436_vm10 = vcmp.ge.f32.partialorder %v404_v8, 0.0  ;;  %v468_v18 = vmul.f32 0.01, %v404_v8  ;;  %v367_v19 = vmul.f32 %v1219_v9, %v1548_v2  ;;  %v368_v20 = vmul.f32 %v1220_v10, %v1548_v2 }
  0x2b   : > { %vm437_vm11 = vcmp.ge.f32.partialorder %v405_v14, 0.0  ;;  %v469_v21 = vmul.f32 0.01, %v405_v14  ;;  %vm452_vm12 = vcmp.ge.f32.partialorder %v420_v15, 0.0  ;;  %vm453_vm13 = vcmp.ge.f32.partialorder %v421_v16, 0.0  ;;  %903 = vrot.lane.b32.xlu0 %v1645_v22, %s1445_s9 }
  0x2c   : > { %v500_v23 = vsel %vm436_vm10, %v404_v8, %v468_v18  ;;  %v484_v24 = vmul.f32 0.01, %v420_v15  ;;  %v485_v25 = vmul.f32 0.01, %v421_v16  ;;  %v406_v26 = vadd.f32 %v1564_v11, %v367_v19  ;;  %v1697_v18 = vld [vmem:[%s1559_s26 + $0x70] sm:$0xff]  ;;  %v1700_v19 = vld [vmem:[%s1559_s26 + $0x78] sm:$0xff] }
  0x2d   : > { %v501_v30 = vsel %vm437_vm11, %v405_v14, %v469_v21  ;;  %v407_v31 = vadd.f32 %v1564_v11, %v368_v20  ;;  %v383_v32 = vmul.f32 %v1251_v12, %v1548_v2  ;;  %v384_v33 = vmul.f32 %v1252_v17, %v1548_v2  ;;  %909 = vrot.lane.b32.xlu1 %v1667_v49, %s1445_s9  ;;  %v1281_v17 = vld [vmem:[%s1542_s15 + $0x68] sm:$0xff]  }
  0x2e   : > { %v530_v37 = vpack.c.bf16 %v501_v30, %v500_v23  ;;  %v516_v38 = vsel %vm452_vm12, %v420_v15, %v484_v24  ;;  %v517_v39 = vsel %vm453_vm13, %v421_v16, %v485_v25  ;;  %vm438_vm14 = vcmp.ge.f32.partialorder %v406_v26, 0.0 }
  0x2f   : > { %v538_v41 = vpack.c.bf16 %v517_v39, %v516_v38  ;;  %vm439_vm15 = vcmp.ge.f32.partialorder %v407_v31, 0.0  ;;  %v470_v42 = vmul.f32 0.01, %v406_v26  ;;  %v471_v43 = vmul.f32 0.01, %v407_v31  ;;  %907 = vrot.lane.b32.xlu0 %v1661_v44, %s1445_s9  ;;  %v1282_v39 = vld [vmem:[%s1542_s15 + $0x70] sm:$0xff]  }
  0x30   : > { %1307 = vmatprep.mubr.msk.bf16.mxu0 %vm545_vm1, %v530_v37  ;;  %v422_v45 = vadd.f32 %v1564_v11, %v383_v32  ;;  %v423_v46 = vadd.f32 %v1564_v11, %v384_v33  ;;  %v1223_v47 = vunpack.c.l.bf16 %v1272_v36  ;;  %v1224_v48 = vunpack.c.h.bf16 %v1272_v36  ;;  %v1274_v32 = vld [vmem:[%s1542_s15 + $0x30] sm:$0xff]  }
  0x31   : > { %1323 = vmatprep.mubr.msk.bf16.mxu1 %vm545_vm1, %v538_v41  ;;  %v502_v51 = vsel %vm438_vm14, %v406_v26, %v470_v42  ;;  %v503_v52 = vsel %vm439_vm15, %v407_v31, %v471_v43  ;;  %v1255_v53 = vunpack.c.l.bf16 %v1280_v40  ;;  %v1256_v54 = vunpack.c.h.bf16 %v1280_v40  ;;  %913 = vrot.lane.b32.xlu1 %v1685_v5, %s1445_s9  ;;  %v1714_v42 = vld [vmem:[%s1559_s26 + $0x80] sm:$0xff] }
  0x32   : > { %v531_v57 = vpack.c.bf16 %v503_v52, %v502_v51  ;;  %vm454_vm0 = vcmp.ge.f32.partialorder %v422_v45, 0.0  ;;  %vm455_vm2 = vcmp.ge.f32.partialorder %v423_v46, 0.0  ;;  %v486_v58 = vmul.f32 0.01, %v422_v45 }
  0x33   : > { %v487_v59 = vmul.f32 0.01, %v423_v46  ;;  %v369_v60 = vmul.f32 %v1223_v47, %v1548_v2  ;;  %v370_v61 = vmul.f32 %v1224_v48, %v1548_v2  ;;  %v385_v62 = vmul.f32 %v1255_v53, %v1548_v2  ;;  %911 = vrot.lane.b32.xlu0 %v1680_v63, %s1445_s9  ;;  %v1719_v48 = vld [vmem:[%s1559_s26 + $0x88] sm:$0xff] }
  0x34   : > { %1308 = vmatmul.mubr.msk.bf16.gmra.mrb[4].mxu0 %vm545_vm1, %v531_v57  ;;  %v518_v0 = vsel %vm454_vm0, %v422_v45, %v486_v58  ;;  %v386_v1 = vmul.f32 %v1256_v54, %v1548_v2  ;;  %v1227_v3 = vunpack.c.l.bf16 %v1273_v56  ;;  %v1228_v4 = vunpack.c.h.bf16 %v1273_v56 }
  0x35   : > { %v519_v6 = vsel %vm455_vm2, %v423_v46, %v487_v59  ;;  %v408_v8 = vadd.f32 %v1564_v11, %v369_v60  ;;  %v409_v9 = vadd.f32 %v1564_v11, %v370_v61  ;;  %v424_v10 = vadd.f32 %v1564_v11, %v385_v62  ;;  %917 = vrot.lane.b32.xlu1 %v1700_v19, %s1445_s9  ;;  %v1275_v60 = vld [vmem:[%s1542_s15 + $0x38] sm:$0xff]  }
  0x36   : > { %v539_v12 = vpack.c.bf16 %v519_v6, %v518_v0  ;;  %v425_v14 = vadd.f32 %v1564_v11, %v386_v1  ;;  %v371_v15 = vmul.f32 %v1227_v3, %v1548_v2  ;;  %v372_v16 = vmul.f32 %v1228_v4, %v1548_v2  ;;  %v1734_v3 = vld [vmem:[%s1559_s26 + $0x90] sm:$0xff] }
  0x37   : > { %vm440_vm3 = vcmp.ge.f32.partialorder %v408_v8, 0.0  ;;  %vm441_vm4 = vcmp.ge.f32.partialorder %v409_v9, 0.0  ;;  %v472_v20 = vmul.f32 0.01, %v408_v8  ;;  %v473_v21 = vmul.f32 0.01, %v409_v9  ;;  %915 = vrot.lane.b32.xlu0 %v1697_v18, %s1445_s9 }
  0x38   : > { %1324 = vmatmul.mubr.msk.bf16.gmra.mrb[4].mxu1 %vm545_vm1, %v539_v12  ;;  %vm456_vm5 = vcmp.ge.f32.partialorder %v424_v10, 0.0  ;;  %vm457_vm6 = vcmp.ge.f32.partialorder %v425_v14, 0.0  ;;  %v488_v23 = vmul.f32 0.01, %v424_v10  ;;  %v489_v24 = vmul.f32 0.01, %v425_v14 }
  0x39   : > { %v504_v25 = vsel %vm440_vm3, %v408_v8, %v472_v20  ;;  %v505_v26 = vsel %vm441_vm4, %v409_v9, %v473_v21  ;;  %v410_v30 = vadd.f32 %v1564_v11, %v371_v15  ;;  %v411_v31 = vadd.f32 %v1564_v11, %v372_v16  ;;  %921 = vrot.lane.b32.xlu1 %v1719_v48, %s1445_s9  ;;  %v1739_v9 = vld [vmem:[%s1559_s26 + $0x98] sm:$0xff]  ;;  %v1749_v21 = vld [vmem:[%s1559_s26 + $0xa0] sm:$0xff] }
  0x3a   : > { %v532_v33 = vpack.c.bf16 %v505_v26, %v504_v25  ;;  %v520_v36 = vsel %vm456_vm5, %v424_v10, %v488_v23  ;;  %v521_v37 = vsel %vm457_vm6, %v425_v14, %v489_v24  ;;  %v1259_v38 = vunpack.c.l.bf16 %v1281_v17  ;;  %v1283_v20 = vld [vmem:[%s1542_s15 + $0x78] sm:$0xff]   ;;  %s1855_s15 = scalar_lea.vmem %s2120_s5, %s1178_s16  ;;  %s1071_s16 = sshll.u32 %s1859_s17, 4  ;;  %s2050_s16 = int_to_ptr.vmem [resolvable:$true] %s1071_s16 }
  0x3b   : > { %v540_v40 = vpack.c.bf16 %v521_v37, %v520_v36  ;;  %vm442_vm7 = vcmp.ge.f32.partialorder %v410_v30, 0.0  ;;  %vm443_vm8 = vcmp.ge.f32.partialorder %v411_v31, 0.0  ;;  %v474_v41 = vmul.f32 0.01, %v410_v30  ;;  %919 = vrot.lane.b32.xlu0 %v1714_v42, %s1445_s9  ;;  %p1388_p0 = scmp.lt.s32.totalorder %s2050_s16, %s1386_s29 }
  0x3c   : > { %1311 = vmatprep.mubr.msk.bf16.mxu0 %vm545_vm1, %v532_v33  ;;  %v475_v43 = vmul.f32 0.01, %v411_v31  ;;  %v1260_v45 = vunpack.c.h.bf16 %v1281_v17  ;;  %v387_v46 = vmul.f32 %v1259_v38, %v1548_v2  ;;  %v1231_v47 = vunpack.c.l.bf16 %v1274_v32 }
  0x3d   : > { %1327 = vmatprep.mubr.msk.bf16.mxu1 %vm545_vm1, %v540_v40  ;;  %v506_v51 = vsel %vm442_vm7, %v410_v30, %v474_v41  ;;  %v1232_v52 = vunpack.c.h.bf16 %v1274_v32  ;;  %v1263_v53 = vunpack.c.l.bf16 %v1282_v39  ;;  %v1264_v54 = vunpack.c.h.bf16 %v1282_v39  ;;  %925 = vrot.lane.b32.xlu1 %v1739_v9, %s1445_s9 }
  0x3e   : > { %v507_v56 = vsel %vm443_vm8, %v411_v31, %v475_v43  ;;  %v388_v57 = vmul.f32 %v1260_v45, %v1548_v2  ;;  %v426_v58 = vadd.f32 %v1564_v11, %v387_v46  ;;  %v373_v59 = vmul.f32 %v1231_v47, %v1548_v2  ;;  %v1754_v31 = vld [vmem:[%s1559_s26 + $0xa8] sm:$0xff] }
  0x3f   : > { %v533_v61 = vpack.c.bf16 %v507_v56, %v506_v51  ;;  %v374_v62 = vmul.f32 %v1232_v52, %v1548_v2  ;;  %v389_v0 = vmul.f32 %v1263_v53, %v1548_v2  ;;  %v390_v1 = vmul.f32 %v1264_v54, %v1548_v2  ;;  %923 = vrot.lane.b32.xlu0 %v1734_v3, %s1445_s9  ;;  %v1764_v51 = vld [vmem:[%s1559_s26 + $0xb0] sm:$0xff]  ;;  %v1769_v53 = vld [vmem:[%s1559_s26 + $0xb8] sm:$0xff] }
  0x40   : > { %v427_v4 = vadd.f32 %v1564_v11, %v388_v57  ;;  %vm458_vm9 = vcmp.ge.f32.partialorder %v426_v58, 0.0  ;;  %v490_v6 = vmul.f32 0.01, %v426_v58  ;;  %v412_v8 = vadd.f32 %v1564_v11, %v373_v59 }
  0x41   : > { %1312 = vmatmul.mubr.msk.bf16.gmra.mrb[8].mxu0 %vm545_vm1, %v533_v61  ;;  %v413_v10 = vadd.f32 %v1564_v11, %v374_v62  ;;  %v428_v12 = vadd.f32 %v1564_v11, %v389_v0  ;;  %v429_v14 = vadd.f32 %v1564_v11, %v390_v1  ;;  %v1235_v15 = vunpack.c.l.bf16 %v1275_v60  ;;  %929 = vrot.lane.b32.xlu1 %v1754_v31, %s1445_s9  ;;  %v1782_v62 = vld [vmem:[%s1559_s26 + $0xc0] sm:$0xff] }
  0x42   : > { %vm459_vm10 = vcmp.ge.f32.partialorder %v427_v4, 0.0  ;;  %v491_v16 = vmul.f32 0.01, %v427_v4  ;;  %v522_v17 = vsel %vm458_vm9, %v426_v58, %v490_v6  ;;  %vm444_vm11 = vcmp.ge.f32.partialorder %v412_v8, 0.0 }
  0x43   : > { %vm445_vm12 = vcmp.ge.f32.partialorder %v413_v10, 0.0  ;;  %v476_v23 = vmul.f32 0.01, %v412_v8  ;;  %v477_v24 = vmul.f32 0.01, %v413_v10  ;;  %vm460_vm13 = vcmp.ge.f32.partialorder %v428_v12, 0.0  ;;  %927 = vrot.lane.b32.xlu0 %v1749_v21, %s1445_s9 }
  0x44   : > { %v523_v25 = vsel %vm459_vm10, %v427_v4, %v491_v16  ;;  %vm461_vm14 = vcmp.ge.f32.partialorder %v429_v14, 0.0  ;;  %v492_v26 = vmul.f32 0.01, %v428_v12  ;;  %v493_v30 = vmul.f32 0.01, %v429_v14  ;;  %v1804_v16 = vld [vmem:[%s1559_s26 + $0xe0] sm:$0xff] }
  0x45   : > { %v541_v32 = vpack.c.bf16 %v523_v25, %v522_v17  ;;  %v508_v33 = vsel %vm444_vm11, %v412_v8, %v476_v23  ;;  %v509_v36 = vsel %vm445_vm12, %v413_v10, %v477_v24  ;;  %v1236_v37 = vunpack.c.h.bf16 %v1275_v60  ;;  %933 = vrot.lane.b32.xlu1 %v1769_v53, %s1445_s9  ;;  %v1792_v10 = vld [vmem:[%s1559_s26 + $0xd0] sm:$0xff]  ;;  %v1807_v17 = vld [vmem:[%s1559_s26 + $0xe8] sm:$0xff]  ;;  %v1817_v23 = vld [vmem:[%s1559_s26 + $0xf8] sm:$0xff] }
  0x46   : > { %v534_v38 = vpack.c.bf16 %v509_v36, %v508_v33  ;;  %v524_v39 = vsel %vm460_vm13, %v428_v12, %v492_v26  ;;  %v525_v40 = vsel %vm461_vm14, %v429_v14, %v493_v30  ;;  %v375_v41 = vmul.f32 %v1235_v15, %v1548_v2  ;;  %v1796_v14 = vld [vmem:[%s1559_s26 + $0xd8] sm:$0xff] }
  0x47   : > { %1328 = vmatmul.mubr.msk.bf16.gmra.mrb[8].mxu1 %vm545_vm1, %v541_v32  ;;  %v542_v43 = vpack.c.bf16 %v525_v40, %v524_v39  ;;  %v376_v45 = vmul.f32 %v1236_v37, %v1548_v2  ;;  %v1267_v46 = vunpack.c.l.bf16 %v1283_v20  ;;  %v1268_v47 = vunpack.c.h.bf16 %v1283_v20  ;;  %931 = vrot.lane.b32.xlu0 %v1764_v51, %s1445_s9  ;;  %v1814_v20 = vld [vmem:[%s1559_s26 + $0xf0] sm:$0xff] }
  0x48   : > { %1315 = vmatprep.mubr.msk.bf16.mxu0 %vm545_vm1, %v534_v38  ;;  %v414_v52 = vadd.f32 %v1564_v11, %v375_v41  ;;  %vm1015_vm4 = vcmask 97280  }
  0x49   : > { %1331 = vmatprep.mubr.msk.bf16.mxu1 %vm545_vm1, %v542_v43  ;;  %v415_v54 = vadd.f32 %v1564_v11, %v376_v45  ;;  %v391_v56 = vmul.f32 %v1267_v46, %v1548_v2  ;;  %v392_v57 = vmul.f32 %v1268_v47, %v1548_v2  ;;  %v1785_v2 = vld [vmem:[%s1559_s26 + $0xc8] sm:$0xff]  ;;  %s1381_s26 = scalar_lea.vmem %s2050_s16, 4096 }
  0x4a   : > { %vm446_vm15 = vcmp.ge.f32.partialorder %v414_v52, 0.0  ;;  %v478_v58 = vmul.f32 0.01, %v414_v52  ;;  %937 = vrot.lane.b32.xlu1 %v1785_v2, %s1445_s9  ;;  %p1382_p11 = scmp.ne.s32.totalorder %s2050_s16, %s1381_s26 }
  0x4b   : > { %vm447_vm0 = vcmp.ge.f32.partialorder %v415_v54, 0.0  ;;  %v479_v59 = vmul.f32 0.01, %v415_v54  ;;  %v430_v60 = vadd.f32 %v1564_v11, %v391_v56  ;;  %v431_v61 = vadd.f32 %v1564_v11, %v392_v57  ;;  %935 = vrot.lane.b32.xlu0 %v1782_v62, %s1445_s9 }
  0x4c   : > { %v510_v0 = vsel %vm446_vm15, %v414_v52, %v478_v58  ;;  %p1383_p12 = pnand %p1382_p11, %p1522_p5 }
  0x4d   : > { %v511_v1 = vsel %vm447_vm0, %v415_v54, %v479_v59  ;;  %vm462_vm2 = vcmp.ge.f32.partialorder %v430_v60, 0.0  ;;  %vm463_vm3 = vcmp.ge.f32.partialorder %v431_v61, 0.0  ;;  %v494_v4 = vmul.f32 0.01, %v430_v60 }
  0x4e   : > { %v535_v6 = vpack.c.bf16 %v511_v1, %v510_v0  ;;  %v495_v8 = vmul.f32 0.01, %v431_v61  ;;  %941 = vrot.lane.b32.xlu1 %v1796_v14, %s1445_s9  ;;  %p1384_p13 = pneg %p1383_p12 }
  0x4f   : > { %v526_v11 = vsel %vm462_vm2, %v430_v60, %v494_v4  ;;  %939 = vrot.lane.b32.xlu0 %v1792_v10, %s1445_s9 }
  0x50   : > { %1316 = vmatmul.mubr.msk.bf16.gmra.mrb[12].mxu0 %vm545_vm1, %v535_v6  ;;  %v527_v12 = vsel %vm463_vm3, %v431_v61, %v495_v8 }
  0x51   : > { %v543_v15 = vpack.c.bf16 %v527_v12, %v526_v11 }
  0x52   : > { %945 = vrot.lane.b32.xlu1 %v1807_v17, %s1445_s9 }
  0x53   : > { %1332 = vmatmul.mubr.msk.bf16.gmra.mrb[12].mxu1 %vm545_vm1, %v543_v15  ;;  %943 = vrot.lane.b32.xlu0 %v1804_v16, %s1445_s9 }
  0x56   : > { %949 = vrot.lane.b32.xlu1 %v1817_v23, %s1445_s9 }
  0x57   : > { %947 = vrot.lane.b32.xlu0 %v1814_v20, %s1445_s9  ;;  %s1387_s9 = scalar_lea.vmem %s1386_s29, 8192 }
  0x58   : > { %p1389_p1 = scmp.lt.s32.totalorder %s1387_s9, %s1381_s26 }
  0x5a   : > { %p1390_p2 = por %p1389_p1, %p1388_p0 }
  0x5c   : > { %p1391_p3 = pnand %p1390_p2, %p1384_p13 }
  0x8b   : > { %v892_v25 = vpop.permute.xlu1 %891 }
  0x8d   : > { %v888_v24 = vpop.permute.xlu0 %887 }
  0x8f   : > { %v894_v30 = vpop.permute.xlu1 %893 }
  0x91   : > { %v890_v26 = vpop.permute.xlu0 %889 }
  0x93   : > { %v1825_v33 = vpop.permute.xlu1 %897 }
  0x95   : > { %v1823_v32 = vpop.permute.xlu0 %895 }
  0x97   : > { %v1829_v37 = vpop.permute.xlu1 %901 }
  0x99   : > { %v1827_v36 = vpop.permute.xlu0 %899 }
  0x9b   : > { %v1833_v39 = vpop.permute.xlu1 %905 }
  0x9d   : > { %v1831_v38 = vpop.permute.xlu0 %903 }
  0x9f   : > { %v1837_v41 = vpop.permute.xlu1 %909 }
  0xa1   : > { %v1835_v40 = vpop.permute.xlu0 %907 }
  0xa3   : > { %v1841_v45 = vpop.permute.xlu1 %913 }
  0xa5   : > { %v1839_v43 = vpop.permute.xlu0 %911 }
  0xa7   : > { %v1845_v47 = vpop.permute.xlu1 %917 }
  0xa9   : > { %v1843_v46 = vpop.permute.xlu0 %915 }
  0xab   : > { %v922_v54 = vpop.permute.xlu1 %921 }
  0xad   : > { %v920_v52 = vpop.permute.xlu0 %919 }
  0xaf   : > { %v926_v58 = vpop.permute.xlu1 %925 }
  0xb1   : > { %v924_v56 = vpop.permute.xlu0 %923 }
  0xfb   : > { %v1305_v57 = vpop.f32.mrb[0].mxu0 }
  0xfc   : > { %v793_v59 = vadd.f32 %v1305_v57, %v1582_v29  ;;  %v985_v60 = vsel %vm545_vm1, %v892_v25, %v1305_v57  ;;  %v1321_v61 = vpop.f32.mrb[0].mxu1  ;;  %v632_v0 = vpop.f32.mrb[1].mxu0 }
  0xfd   : > { %1018 = vst.msk [vmem:[%s1859_s17 + $0x10] sm:$0xff] %vm1015_vm4, %v985_v60  ;;  %v809_v1 = vadd.f32 %v1321_v61, %v1734_v3  ;;  %v1001_v4 = vsel %vm545_vm1, %v924_v56, %v1321_v61  ;;  %v791_v29 = vadd.f32 %v1579_v28, %v632_v0  ;;  %v983_v6 = vsel %vm545_vm1, %v888_v24, %v632_v0  ;;  %v696_v8 = vpop.f32.mrb[1].mxu1  ;;  %v1306_v11 = vpop.f32.mrb[2].mxu0 }
  0xfe   : > { %825 = vst.msk [vmem:[%s1855_s15 + $0x10] sm:$0xff] %vm545_vm1, %v793_v59  ;;  %v807_v3 = vadd.f32 %v1714_v42, %v696_v8  ;;  %v999_v12 = vsel %vm545_vm1, %v920_v52, %v696_v8  ;;  %v794_v28 = vadd.f32 %v1306_v11, %v1594_v35  ;;  %v986_v15 = vsel %vm545_vm1, %v894_v30, %v1306_v11  ;;  %v1322_v24 = vpop.f32.mrb[2].mxu1  ;;  %v635_v25 = vpop.f32.mrb[3].mxu0 }
  0xff   : > { %1034 = vst.msk [vmem:[%s1859_s17 + $0x90] sm:$0xff] %vm1015_vm4, %v1001_v4  ;;  %1016 = vst.msk [vmem:[%s1859_s17] sm:$0xff] %vm1015_vm4, %v983_v6  ;;  %v810_v42 = vadd.f32 %v1322_v24, %v1739_v9  ;;  %v1002_v35 = vsel %vm545_vm1, %v926_v58, %v1322_v24  ;;  %v792_v30 = vadd.f32 %v1591_v34, %v635_v25  ;;  %v699_v56 = vpop.f32.mrb[3].mxu1  ;;  %v928_v34 = vpop.permute.xlu0 %927 }
 0x100   : > { %841 = vst.msk [vmem:[%s1855_s15 + $0x90] sm:$0xff] %vm545_vm1, %v809_v1  ;;  %823 = vst.msk [vmem:[%s1855_s15] sm:$0xff] %vm545_vm1, %v791_v29  ;;  %v984_v52 = vsel %vm545_vm1, %v890_v26, %v635_v25  ;;  %v808_v57 = vadd.f32 %v1719_v48, %v699_v56  ;;  %v1000_v9 = vsel %vm545_vm1, %v922_v54, %v699_v56  ;;  %v930_v26 = vpop.permute.xlu1 %929 }
 0x101   : > { %1032 = vst.msk [vmem:[%s1859_s17 + $0x80] sm:$0xff] %vm1015_vm4, %v999_v12  ;;  %1019 = vst.msk [vmem:[%s1859_s17 + $0x18] sm:$0xff] %vm1015_vm4, %v986_v15 }
 0x102   : > { %839 = vst.msk [vmem:[%s1855_s15 + $0x80] sm:$0xff] %vm545_vm1, %v807_v3  ;;  %826 = vst.msk [vmem:[%s1855_s15 + $0x18] sm:$0xff] %vm545_vm1, %v794_v28 }
 0x103   : > { %1035 = vst.msk [vmem:[%s1859_s17 + $0x98] sm:$0xff] %vm1015_vm4, %v1002_v35  ;;  %1017 = vst.msk [vmem:[%s1859_s17 + $0x8] sm:$0xff] %vm1015_vm4, %v984_v52  ;;  %v932_v60 = vpop.permute.xlu0 %931 }
 0x104   : > { %842 = vst.msk [vmem:[%s1855_s15 + $0x98] sm:$0xff] %vm545_vm1, %v810_v42  ;;  %824 = vst.msk [vmem:[%s1855_s15 + $0x8] sm:$0xff] %vm545_vm1, %v792_v30 }
 0x105   : > { %1033 = vst.msk [vmem:[%s1859_s17 + $0x88] sm:$0xff] %vm1015_vm4, %v1000_v9 }
 0x106   : > { %840 = vst.msk [vmem:[%s1855_s15 + $0x88] sm:$0xff] %vm545_vm1, %v808_v57 }
 0x107   : > { %v1309_v58 = vpop.f32.mrb[4].mxu0 }
 0x108   : > { %v797_v59 = vadd.f32 %v1309_v58, %v1627_v7  ;;  %v989_v48 = vsel %vm545_vm1, %v1827_v36, %v1309_v58  ;;  %v648_v54 = vpop.f32.mrb[5].mxu0 }
 0x109   : > { %1022 = vst.msk [vmem:[%s1859_s17 + $0x30] sm:$0xff] %vm1015_vm4, %v989_v48  ;;  %v795_v61 = vadd.f32 %v1605_v50, %v648_v54  ;;  %v987_v0 = vsel %vm545_vm1, %v1823_v32, %v648_v54  ;;  %v1310_v1 = vpop.f32.mrb[6].mxu0  ;;  %v934_v50 = vpop.permute.xlu1 %933 }
 0x10a   : > { %829 = vst.msk [vmem:[%s1855_s15 + $0x30] sm:$0xff] %vm545_vm1, %v797_v59  ;;  %v798_v7 = vadd.f32 %v1310_v1, %v1632_v13  ;;  %v990_v36 = vsel %vm545_vm1, %v1829_v37, %v1310_v1  ;;  %v651_v4 = vpop.f32.mrb[7].mxu0 }
 0x10b   : > { %1020 = vst.msk [vmem:[%s1859_s17 + $0x20] sm:$0xff] %vm1015_vm4, %v987_v0  ;;  %v1325_v29 = vpop.f32.mrb[4].mxu1  ;;  %1023 = vst.msk [vmem:[%s1859_s17 + $0x38] sm:$0xff] %vm1015_vm4, %v990_v36  ;;  %v796_v32 = vadd.f32 %v1610_v55, %v651_v4  ;;  %v988_v6 = vsel %vm545_vm1, %v1825_v33, %v651_v4 }
 0x10c   : > { %827 = vst.msk [vmem:[%s1855_s15 + $0x20] sm:$0xff] %vm545_vm1, %v795_v61  ;;  %v813_v13 = vadd.f32 %v1325_v29, %v1764_v51  ;;  %v1005_v37 = vsel %vm545_vm1, %v932_v60, %v1325_v29  ;;  %v712_v8 = vpop.f32.mrb[5].mxu1  ;;  %830 = vst.msk [vmem:[%s1855_s15 + $0x38] sm:$0xff] %vm545_vm1, %v798_v7 }
 0x10d   : > { %1021 = vst.msk [vmem:[%s1859_s17 + $0x28] sm:$0xff] %vm1015_vm4, %v988_v6  ;;  %1038 = vst.msk [vmem:[%s1859_s17 + $0xb0] sm:$0xff] %vm1015_vm4, %v1005_v37  ;;  %v811_v55 = vadd.f32 %v1749_v21, %v712_v8  ;;  %v1003_v33 = vsel %vm545_vm1, %v928_v34, %v712_v8  ;;  %v1326_v11 = vpop.f32.mrb[6].mxu1  ;;  %v938_v15 = vpop.permute.xlu1 %937 }
 0x10e   : > { %828 = vst.msk [vmem:[%s1855_s15 + $0x28] sm:$0xff] %vm545_vm1, %v796_v32  ;;  %845 = vst.msk [vmem:[%s1855_s15 + $0xb0] sm:$0xff] %vm545_vm1, %v813_v13  ;;  %v814_v51 = vadd.f32 %v1326_v11, %v1769_v53  ;;  %v1006_v3 = vsel %vm545_vm1, %v934_v50, %v1326_v11  ;;  %v715_v12 = vpop.f32.mrb[7].mxu1  ;;  %v936_v53 = vpop.permute.xlu0 %935 }
 0x10f   : > { %1036 = vst.msk [vmem:[%s1859_s17 + $0xa0] sm:$0xff] %vm1015_vm4, %v1003_v33  ;;  %1039 = vst.msk [vmem:[%s1859_s17 + $0xb8] sm:$0xff] %vm1015_vm4, %v1006_v3  ;;  %v812_v21 = vadd.f32 %v1754_v31, %v715_v12  ;;  %v1004_v28 = vsel %vm545_vm1, %v930_v26, %v715_v12 }
 0x110   : > { %843 = vst.msk [vmem:[%s1855_s15 + $0xa0] sm:$0xff] %vm545_vm1, %v811_v55  ;;  %846 = vst.msk [vmem:[%s1855_s15 + $0xb8] sm:$0xff] %vm545_vm1, %v814_v51 }
 0x111   : > { %1037 = vst.msk [vmem:[%s1859_s17 + $0xa8] sm:$0xff] %vm1015_vm4, %v1004_v28  ;;  %v942_v9 = vpop.permute.xlu1 %941 }
 0x112   : > { %844 = vst.msk [vmem:[%s1855_s15 + $0xa8] sm:$0xff] %vm545_vm1, %v812_v21  ;;  %v940_v57 = vpop.permute.xlu0 %939 }
 0x114   : > { %v1313_v24 = vpop.f32.mrb[8].mxu0 }
 0x115   : > { %v801_v25 = vadd.f32 %v1313_v24, %v1661_v44  ;;  %v993_v42 = vsel %vm545_vm1, %v1835_v40, %v1313_v24  ;;  %v664_v31 = vpop.f32.mrb[9].mxu0 }
 0x116   : > { %1026 = vst.msk [vmem:[%s1859_s17 + $0x50] sm:$0xff] %vm1015_vm4, %v993_v42  ;;  %v799_v35 = vadd.f32 %v1645_v22, %v664_v31  ;;  %v991_v30 = vsel %vm545_vm1, %v1831_v38, %v664_v31  ;;  %v1314_v52 = vpop.f32.mrb[10].mxu0  ;;  %v944_v60 = vpop.permute.xlu0 %943 }
 0x117   : > { %833 = vst.msk [vmem:[%s1855_s15 + $0x50] sm:$0xff] %vm545_vm1, %v801_v25  ;;  %v802_v44 = vadd.f32 %v1314_v52, %v1667_v49  ;;  %v994_v40 = vsel %vm545_vm1, %v1837_v41, %v1314_v52  ;;  %v667_v56 = vpop.f32.mrb[11].mxu0 }
 0x118   : > { %1024 = vst.msk [vmem:[%s1859_s17 + $0x40] sm:$0xff] %vm1015_vm4, %v991_v30  ;;  %1027 = vst.msk [vmem:[%s1859_s17 + $0x58] sm:$0xff] %vm1015_vm4, %v994_v40  ;;  %v800_v22 = vadd.f32 %v1649_v27, %v667_v56  ;;  %v992_v38 = vsel %vm545_vm1, %v1833_v39, %v667_v56 }
 0x119   : > { %831 = vst.msk [vmem:[%s1855_s15 + $0x40] sm:$0xff] %vm545_vm1, %v799_v35  ;;  %834 = vst.msk [vmem:[%s1855_s15 + $0x58] sm:$0xff] %vm545_vm1, %v802_v44 }
 0x11a   : > { %1025 = vst.msk [vmem:[%s1859_s17 + $0x48] sm:$0xff] %vm1015_vm4, %v992_v38  ;;  %v1329_v49 = vpop.f32.mrb[8].mxu1  ;;  %v948_v0 = vpop.permute.xlu0 %947 }
 0x11b   : > { %832 = vst.msk [vmem:[%s1855_s15 + $0x48] sm:$0xff] %vm545_vm1, %v800_v22  ;;  %v817_v41 = vadd.f32 %v1329_v49, %v1792_v10  ;;  %v1009_v34 = vsel %vm545_vm1, %v940_v57, %v1329_v49  ;;  %v728_v26 = vpop.f32.mrb[9].mxu1 }
 0x11c   : > { %1042 = vst.msk [vmem:[%s1859_s17 + $0xd0] sm:$0xff] %vm1015_vm4, %v1009_v34  ;;  %v815_v27 = vadd.f32 %v1782_v62, %v728_v26  ;;  %v1007_v39 = vsel %vm545_vm1, %v936_v53, %v728_v26  ;;  %v1330_v58 = vpop.f32.mrb[10].mxu1 }
 0x11d   : > { %849 = vst.msk [vmem:[%s1855_s15 + $0xd0] sm:$0xff] %vm545_vm1, %v817_v41  ;;  %v818_v59 = vadd.f32 %v1330_v58, %v1796_v14  ;;  %v1010_v10 = vsel %vm545_vm1, %v942_v9, %v1330_v58  ;;  %v731_v48 = vpop.f32.mrb[11].mxu1  ;;  %v946_v14 = vpop.permute.xlu1 %945 }
 0x11e   : > { %1040 = vst.msk [vmem:[%s1859_s17 + $0xc0] sm:$0xff] %vm1015_vm4, %v1007_v39  ;;  %1043 = vst.msk [vmem:[%s1859_s17 + $0xd8] sm:$0xff] %vm1015_vm4, %v1010_v10  ;;  %v816_v62 = vadd.f32 %v1785_v2, %v731_v48  ;;  %v1008_v54 = vsel %vm545_vm1, %v938_v15, %v731_v48 }
 0x11f   : > { %847 = vst.msk [vmem:[%s1855_s15 + $0xc0] sm:$0xff] %vm545_vm1, %v815_v27  ;;  %850 = vst.msk [vmem:[%s1855_s15 + $0xd8] sm:$0xff] %vm545_vm1, %v818_v59 }
 0x120   : > { %1041 = vst.msk [vmem:[%s1859_s17 + $0xc8] sm:$0xff] %vm1015_vm4, %v1008_v54 }
 0x121   : > { %848 = vst.msk [vmem:[%s1855_s15 + $0xc8] sm:$0xff] %vm545_vm1, %v816_v62  ;;  %v950_v29 = vpop.permute.xlu1 %949 }
 0x123   : > { %v1317_v61 = vpop.f32.mrb[12].mxu0 }
 0x124   : > { %v805_v1 = vadd.f32 %v1317_v61, %v1697_v18  ;;  %v997_v2 = vsel %vm545_vm1, %v1843_v46, %v1317_v61  ;;  %v680_v7 = vpop.f32.mrb[13].mxu0 }
 0x125   : > { %1030 = vst.msk [vmem:[%s1859_s17 + $0x70] sm:$0xff] %vm1015_vm4, %v997_v2  ;;  %v803_v36 = vadd.f32 %v1680_v63, %v680_v7  ;;  %v995_v4 = vsel %vm545_vm1, %v1839_v43, %v680_v7  ;;  %v1318_v50 = vpop.f32.mrb[14].mxu0 }
 0x126   : > { %837 = vst.msk [vmem:[%s1855_s15 + $0x70] sm:$0xff] %vm545_vm1, %v805_v1  ;;  %v1333_v18 = vpop.f32.mrb[12].mxu1  ;;  %v806_v46 = vadd.f32 %v1318_v50, %v1700_v19  ;;  %v998_v63 = vsel %vm545_vm1, %v1845_v47, %v1318_v50  ;;  %v683_v32 = vpop.f32.mrb[15].mxu0 }
 0x127   : > { %1028 = vst.msk [vmem:[%s1859_s17 + $0x60] sm:$0xff] %vm1015_vm4, %v995_v4  ;;  %v821_v43 = vadd.f32 %v1333_v18, %v1814_v20  ;;  %v1013_v6 = vsel %vm545_vm1, %v948_v0, %v1333_v18  ;;  %v744_v13 = vpop.f32.mrb[13].mxu1  ;;  %1031 = vst.msk [vmem:[%s1859_s17 + $0x78] sm:$0xff] %vm1015_vm4, %v998_v63  ;;  %v804_v37 = vadd.f32 %v1685_v5, %v683_v32 }
 0x128   : > { %835 = vst.msk [vmem:[%s1855_s15 + $0x60] sm:$0xff] %vm545_vm1, %v803_v36  ;;  %v996_v19 = vsel %vm545_vm1, %v1841_v45, %v683_v32  ;;  %v819_v20 = vadd.f32 %v1804_v16, %v744_v13  ;;  %v1011_v47 = vsel %vm545_vm1, %v944_v60, %v744_v13  ;;  %838 = vst.msk [vmem:[%s1855_s15 + $0x78] sm:$0xff] %vm545_vm1, %v806_v46  ;;  %v1334_v8 = vpop.f32.mrb[14].mxu1 }
 0x129   : > { %1046 = vst.msk [vmem:[%s1859_s17 + $0xf0] sm:$0xff] %vm1015_vm4, %v1013_v6  ;;  %1029 = vst.msk [vmem:[%s1859_s17 + $0x68] sm:$0xff] %vm1015_vm4, %v996_v19  ;;  %v822_v5 = vadd.f32 %v1334_v8, %v1817_v23  ;;  %v1014_v16 = vsel %vm545_vm1, %v950_v29, %v1334_v8  ;;  %v747_v45 = vpop.f32.mrb[15].mxu1 }
 0x12a   : > { %853 = vst.msk [vmem:[%s1855_s15 + $0xf0] sm:$0xff] %vm545_vm1, %v821_v43  ;;  %836 = vst.msk [vmem:[%s1855_s15 + $0x68] sm:$0xff] %vm545_vm1, %v804_v37  ;;  %v820_v55 = vadd.f32 %v1807_v17, %v747_v45  ;;  %v1012_v33 = vsel %vm545_vm1, %v946_v14, %v747_v45 }
 0x12b   : > { %1044 = vst.msk [vmem:[%s1859_s17 + $0xe0] sm:$0xff] %vm1015_vm4, %v1011_v47  ;;  %1047 = vst.msk [vmem:[%s1859_s17 + $0xf8] sm:$0xff] %vm1015_vm4, %v1014_v16 }
 0x12c   : > { %851 = vst.msk [vmem:[%s1855_s15 + $0xe0] sm:$0xff] %vm545_vm1, %v819_v20  ;;  %854 = vst.msk [vmem:[%s1855_s15 + $0xf8] sm:$0xff] %vm545_vm1, %v822_v5 }
 0x12d   : > { %1045 = vst.msk [vmem:[%s1859_s17 + $0xe8] sm:$0xff] %vm1015_vm4, %v1012_v33 }
 0x12e   : > { %852 = vst.msk [vmem:[%s1855_s15 + $0xe8] sm:$0xff] %vm545_vm1, %v820_v55 }
 0x12f   : > { %1394 = shalt.err (!%p1391_p3)
}
 0x130   : > { %s1395_s10 = scalar_lea.hbm %s2048_s19, 4096  ;;  %s1399_s14 = scalar_lea.hbm %s2121_s6, 8192 }
 0x131   : > { %p1396_p4 = scmp.ne.s32.totalorder %s2048_s19, %s1395_s10  ;;  %p1400_p9 = scmp.lt.u32.totalorder %s2048_s19, %s2121_s6 }
 0x132   : > { %p1401_p10 = scmp.lt.u32.totalorder %s1399_s14, %s1395_s10  ;;  %p1403_p12 = scmp.lt.u32.totalorder %s1395_s10, %s2048_s19 }
 0x133   : > { %p1397_p7 = pnand %p1396_p4, %p1522_p5 }
 0x134   : > { %p1402_p11 = por %p1401_p10, %p1400_p9 }
 0x135   : > { %p1398_p8 = pneg %p1397_p7 }
 0x136   : > { %p1404_p13 = por %p1403_p12, %p1402_p11 }
 0x138   : > { %p1405_p0 = pnand %p1404_p13, %p1398_p8 }
 0x13a   : > { %1408 = shalt.err (!%p1405_p0)
}
 0x13b   : > { %s1447_s11 = smov 128   ;;  %s1448_s25 = smov 8  }
 0x13c   : > { %1339 = dma.vmem_to_hbm [thread:$0]  (%p1522_p5), %s2050_s16, 4096, %s2048_s19, %s2074_s20, %s1447_s11, %s1447_s11, %s1448_s25  }
 0x13d PF: > { %p1345_p1 = scmp.ge.s32.totalorder %s1443_s24, 2  ;;  %s1094_s18 = sand.u32 1, %s1431_s21  }
 0x13e   : > { %s1095_s26 = scalar_lea.sflag [#allocation3], %s1094_s18 }
 0x13f   : > { %p1342_p2 = pnand %p1345_p1, %p1526_p6 }
 0x141   : > { %1426 = dma.done.wait (!%p1342_p2), %s1095_s26, 4096  }
 0x142   : > { %1428 = vsyncadd (!%p1342_p2), %s1095_s26, 4294963200  ;;  %p17_p3 = scmp.ge.s32.totalorder %s1509_s27, 4   ;;  %s2124_s21 = smov %s1435_s22 }
 0x143   : > { %s2125_s22 = smov %s1439_s23  ;;  %s2126_s23 = smov %s1520_s30 }
 0x144   : > { %s2127_s24 = smov %s1509_s27  ;;  %19 = sbr.rel (!%p17_p3) target bundleno = 3 (0x3), region = 90 }
 0x14b   :  { %1100 = vsyncpa [#allocation3], 1 }
 0x14c   :  { %1102 = vsyncpa [#allocation3 + $0x1], 1 }

// kernel: dual_path_block_forward.4
= control target key start
LH: loop header
LB: loop body
LE: loop exit
PB: predicated region body
PF: predicated region fallthrough
CT: control target
= control target key end

     0   :  { %s6003_s9 = smov 0   ;;  %s6005_s10 = smov 0   ;;  %s7189_s0 = inlined_call_operand.vmem [shape: bf16[2,6,110,8], index: 0, kind: input, shape index: {}]   ;;  %s7190_s1 = inlined_call_operand.vmem [shape: bf16[27,8,8], index: 1, kind: input, shape index: {}]   ;;  %s7191_s2 = inlined_call_operand.vmem [shape: bf16[2,4,80,8], index: 2, kind: output, shape index: {}]  }
   0x1   :  { %s6007_s11 = smov 0   ;;  %s6009_s12 = smov 0  }
   0x2   :  { %s6011_s13 = smov 0  }
   0x3 LB: > { %s21_s14 = sadd.s32 1, %s5976_s11  ;;  %s24_s15 = sadd.s32 1, %s5980_s12  ;;  %s5984_s13 = sphi %s6011_s13, %s12_s13   ;;  %s5980_s12 = sphi %s6009_s12, %s7195_s12   ;;  %s5976_s11 = sphi %s6007_s11, %s7194_s11   ;;  %s5972_s10 = sphi %s6005_s10, %s7193_s10   ;;  %s5968_s9 = sphi %s6003_s9, %s7192_s9  }
   0x4   : > { %p22_p0 = scmp.ge.s32.totalorder %s21_s14, 4  ;;  %p4186_p1 = scmp.ge.s32.totalorder %s5984_s13, 1 }
   0x5   : > { %p126_p2 = scmp.lt.s32.totalorder %s5984_s13, 9 }
   0x6   : > { %s7197_s14 = smov (%p22_p0, %s21_s14), 0  ;;  %s7199_s15 = smov (!%p22_p0, %s24_s15), %s5980_s12 }
   0x7   : > { %p127_p3 = pnand %p4186_p1, %p126_p2  ;;  %p26_p4 = scmp.ge.s32.totalorder %s7199_s15, 2 }
   0x8   : > { %vm273_vm0 = vcmask (!%p127_p3), 1043456   ;;  %v4342_v0 = vld [vmem:[%s7190_s1 + $0x34] sm:$0xf] (!%p127_p3)  ;;  %v4190_v1 = vld [vmem:[%s7190_s1 + $0x4] sm:$0xf] (!%p127_p3)  ;;  %v5986_v2 = vmov (!%p127_p3), 0.0  }
   0x9   : > { %s7201_s15 = smov (%p26_p4, %s7199_s15), 0  ;;  %130 = sbr.rel (%p127_p3) target bundleno = 788 (0x314), region = 28 }
   0xa   : > { %4997 = vmatprep.subr.bf16.mxu0 (!%p127_p3), %v5986_v2  ;;  %4711 = vmatprep.subr.bf16.mxu1 (!%p127_p3), %v5986_v2  ;;  %v6044_v3 = vsel (!%p127_p3), %vm273_vm0, %v4342_v0, 0  ;;  %v275_v4 = vsel (!%p127_p3), %vm273_vm0, %v4190_v1, 0  ;;  %p152_p5 = scmp.lt.s32.totalorder (!%p127_p3), %s5972_s10, 1  ;;  %vm5987_vm1 = vmmov (!%p127_p3), 0   ;;  %s4538_s20 = smul.u32 (!%p127_p3), 56, %s5968_s9  ;;  %vm257_vm4 = vcmask (!%p127_p3), 64512  }
   0xb   : > { %4998 = vmatpush3.bf16.msra.mxu0 (!%p127_p3), %v6044_v3  ;;  %4712 = vmatpush3.bf16.msra.mxu1 (!%p127_p3), %v275_v4  ;;  %vm212_vm2 = vsmask.f32 (!%p127_p3), 7424  ;;  %vm714_vm3 = vsmask.f32 (!%p127_p3), 6400  ;;  %v180_v16 = vld [vmem:[%s7190_s1] sm:$0xf] (!%p127_p3) }
   0xc   : > { %4713 = vmatprep.mubr.msk.bf16.mxu1 (!%p127_p3), %vm5987_vm1, %v5986_v2  ;;  %4999 = vmatprep.mubr.msk.bf16.mxu0 (!%p127_p3), %vm5987_vm1, %v5986_v2  ;;  %v4350_v24 = vld [vmem:[%s7190_s1 + $0x38] sm:$0xf] (!%p127_p3)  ;;  %v361_v33 = vsel (!%p127_p3), %vm273_vm0, %v180_v16, 0  ;;  %vm442_vm5 = vcmask (!%p127_p3), 1046528   ;;  %vm875_vm6 = vcmask (!%p127_p3), 1045504   ;;  %vm1308_vm7 = vcmask (!%p127_p3), 1044480  }
   0xd   : > { %5019 = vmatprep.subr.bf16.mxu0 (!%p127_p3), %v5986_v2  ;;  %4733 = vmatprep.subr.bf16.mxu1 (!%p127_p3), %v5986_v2  ;;  %v2213_v41 = vsel (!%p127_p3), %vm273_vm0, %v4350_v24, 0  ;;  %vm1147_vm8 = vsmask.f32 (!%p127_p3), 5376  ;;  %p159_p6 = scmp.lt.s32.totalorder (!%p127_p3), %s5968_s9, 3  ;;  %vm4077_vm9 = vcmask (!%p127_p3), 60416  }
  0x10   : > { %s7203_s10 = smov (!%p152_p5, %s5972_s10), 1  ;;  %s7205_s9 = smov (!%p159_p6, %s5968_s9), 3 }
  0x11   : > { %s5817_s21 = smul.u32 336, %s7203_s10 }
  0x12   : > { %s5818_s8 = smul.u32 10, %s7205_s9 }
  0x13   : > { %s156_s24 = scalar_lea.vmem %s7189_s0, %s5817_s21 }
  0x14   : > { %s6061_s25 = scalar_lea.vmem %s156_s24, %s4538_s20 }
  0x15   : > { %v170_v5 = vld [vmem:[%s6061_s25] sm:$0xf]  ;;  %v6065_v6 = vld [vmem:[%s6061_s25 + $0x4] sm:$0xf]  ;;  %v6071_v8 = vld [vmem:[%s6061_s25 + $0x8] sm:$0xff]  }
  0x16   : > { %v6068_v7 = vcombine.low %v170_v5, %v6065_v6  ;;  %v4318_v9 = vld [vmem:[%s6061_s25 + $0x3c] sm:$0xe]  ;;  %v6075_v10 = vld [vmem:[%s6061_s25 + $0x40] sm:$0xf]  ;;  %v221_v13 = vshll.u32 %v6071_v8, 16  ;;  %v6084_v15 = vld [vmem:[%s6061_s25 + $0x44] sm:$0xff]  }
  0x17   : > { %v6081_v14 = vcombine.low %v4318_v9, %v6075_v10  ;;  %v6090_v17 = vld [vmem:[%s6061_s25 + $0x10] sm:$0xff]   ;;  %v2035_v22 = vshrl.u32 %v6084_v15, 16  ;;  %v2038_v23 = vshll.u32 %v6084_v15, 16  ;;  %v225_v25 = vshrl.u32 %v6071_v8, 16  ;;  %v6116_v45 = vld [vmem:[%s6061_s25 + $0x18] sm:$0xff]   ;;  %v6134_v58 = vld [vmem:[%s6061_s25 + $0x20] sm:$0xff]  }
  0x18   : > { %v214_v11 = vshrl.u32 %v6068_v7, 16  ;;  %v216_v12 = vshll.u32 %v6068_v7, 16  ;;  %v223_v19 = vrot.slane %v221_v13, 1  ;;  %v6101_v26 = vld [vmem:[%s6061_s25 + $0x4c] sm:$0xff]   ;;  %v229_v30 = vshll.u32 %v6090_v17, 16  ;;  %v6110_v40 = vld [vmem:[%s6061_s25 + $0x54] sm:$0xff]  }
  0x19   : > { %v2027_v20 = vshrl.u32 %v6081_v14, 16  ;;  %v2030_v21 = vshll.u32 %v6081_v14, 16  ;;  %v2037_v31 = vrot.slane %v2035_v22, 1  ;;  %v2040_v32 = vrot.slane %v2038_v23, 2  ;;  %v436_v59 = vld [vmem:[%s6061_s25] sm:$0xe] }
  0x1a   : > { %v218_v18 = vrot.slane %v216_v12, 1  ;;  %v2044_v34 = vshrl.u32 %v6101_v26, 16  ;;  %v2047_v37 = vshll.u32 %v6101_v26, 16  ;;  %v227_v42 = vor.u32 %v225_v25, %v223_v19  ;;  %v4349_v9 = vld [vmem:[%s6061_s25 + $0x3c] sm:$0xc] }
  0x1b   : > { %v2029_v28 = vrot.slane %v2027_v20, 1  ;;  %v2032_v29 = vrot.slane %v2030_v21, 2  ;;  %v2041_v38 = vor.u32 %v2040_v32, %v2037_v31  ;;  %v231_v43 = vrot.slane %v229_v30, 1  ;;  %v6168_v21 = vld [vmem:[%s6061_s25 + $0x28] ss:$0 sps:$4 sm:$0x11]  }
  0x1c   : > { %v219_v27 = vor.u32 %v218_v18, %v214_v11  ;;  %v2046_v39 = vrot.slane %v2044_v34, 1  ;;  %v2049_v44 = vrot.slane %v2047_v37, 2  ;;  %v2053_v48 = vshrl.u32 %v6110_v40, 16  ;;  %v4358_v30 = vld [vmem:[%s6061_s25 + $0x44] sm:$0xf]  ;;  %v6185_v31 = vld [vmem:[%s6061_s25 + $0x48] sm:$0xff]  }
  0x1d   : > { %v2033_v36 = vor.u32 %v2032_v29, %v2029_v28  ;;  %v2056_v49 = vshll.u32 %v6110_v40, 16  ;;  %v232_v50 = vsel %vm212_vm2, %v227_v42, %v231_v43  ;;  %v233_v51 = vshrl.u32 %v6090_v17, 16  ;;  %v4388_v28 = vld [vmem:[%s6061_s25 + $0x40] sm:$0x8]  ;;  %v6191_v34 = vld [vmem:[%s6061_s25 + $0x50] sm:$0xff]  }
  0x1e   : > { %v224_v35 = vsel %vm212_vm2, %v219_v27, %v223_v19  ;;  %v2050_v47 = vor.u32 %v2049_v44, %v2046_v39  ;;  %v237_v52 = vshll.u32 %v6116_v45, 16  ;;  %v2055_v54 = vrot.slane %v2053_v48, 1  ;;  %v4368_v27 = vld [vmem:[%s7190_s1 + $0x3c] sm:$0xf] }
  0x1f   : > { %4714 = vmatmul.mubr.msk.bf16.vlgmr.msra.gmra.mrb[0].mxu1 %vm257_vm4, %v224_v35  ;;  %v2042_v46 = vsel %vm714_vm3, %v2033_v36, %v2041_v38  ;;  %v2058_v55 = vrot.slane %v2056_v49, 2  ;;  %v235_v56 = vor.u32 %v233_v51, %v231_v43  ;;  %v4208_v60 = vcombine.low %v436_v59, %v6065_v6  ;;  %v6205_v43 = vld [vmem:[%s6061_s25 + $0x58] sm:$0xff]   ;;  %v6227_v51 = vld [vmem:[%s6061_s25 + $0x60] sm:$0xff]  }
  0x20   : > { %4717 = vmatprep.mubr.msk.bf16.mxu1 %vm5987_vm1, %v5986_v2  ;;  %4734 = vmatpush3.bf16.msra.mxu1 %v361_v33  ;;  %v2051_v53 = vsel %vm714_vm3, %v2041_v38, %v2050_v47  ;;  %v239_v57 = vrot.slane %v237_v52, 1  ;;  %v444_v61 = vrot.slane %v6071_v8, 1  ;;  %v446_v62 = vrot.slane %v6090_v17, 1 }
  0x21   : > { %4755 = vmatprep.subr.bf16.mxu1 %v5986_v2  ;;  %5000 = vmatmul.mubr.msk.bf16.vlgmr.msra.gmra.mrb[0].mxu0 %vm257_vm4, %v2042_v46  ;;  %v6143_v63 = vor.u32 %v2058_v55, %v2055_v54  ;;  %v443_v0 = vrot.slane %v4208_v60, 1  ;;  %v448_v1 = vrot.slane %v6116_v45, 1  ;;  %v241_v5 = vshrl.u32 %v6116_v45, 16  ;;  %v5874_v55 = vld [vmem:[%s6061_s25 + $0x64] ss:$0 sps:$4 sm:$0x33]  }
  0x22   : > { %5020 = vmatpush3.bf16.msra.mxu0 %v2213_v41  ;;  %5003 = vmatprep.mubr.msk.bf16.mxu0 %vm5987_vm1, %v5986_v2  ;;  %v240_v4 = vsel %vm212_vm2, %v235_v56, %v239_v57  ;;  %v245_v6 = vshll.u32 %v6134_v58, 16  ;;  %v6151_v11 = vsel %vm442_vm5, %v444_v61, %v446_v62  ;;  %v4351_v18 = vcombine.low %v4349_v9, %v6075_v10  ;;  %v6281_v9 = vld [vmem:[%s6061_s25 + $0x8] sm:$0xf] }
  0x23   : > { %5041 = vmatprep.subr.bf16.mxu0 %v5986_v2  ;;  %v6154_v12 = vsel %vm442_vm5, %v443_v0, %v444_v61  ;;  %v6159_v13 = vsel %vm442_vm5, %v446_v62, %v448_v1  ;;  %v2060_v16 = vsel %vm714_vm3, %v2050_v47, %v6143_v63  ;;  %v243_v19 = vor.u32 %v241_v5, %v239_v57  ;;  %v4207_v47 = vld [vmem:[%s7190_s1 + $0x8] sm:$0xf]  ;;  %v4357_v57 = vld [vmem:[%s6061_s25 + $0x40] sm:$0xc]  ;;  %v6275_v5 = vld [vmem:[%s6061_s25 + $0xc] sm:$0xff]  }
  0x24   : > { %v247_v20 = vrot.slane %v245_v6, 1  ;;  %v2186_v22 = vrot.slane %v4351_v18, 2  ;;  %v2187_v23 = vrot.slane %v6084_v15, 2  ;;  %v249_v24 = vshrl.u32 %v6134_v58, 16 }
  0x25   : > { %v253_v25 = vshll.u32 %v6168_v21, 16  ;;  %v2366_v15 = vsel %vm273_vm0, %v4368_v27, 0  ;;  %v4390_v35 = vcombine.low %v4388_v28, %v4358_v30  ;;  %v2618_v36 = vrot.slane %v6185_v31, 3 }
  0x26   : > { %v248_v10 = vsel %vm212_vm2, %v243_v19, %v247_v20  ;;  %v2188_v29 = vsel %vm875_vm6, %v2186_v22, %v2187_v23  ;;  %v251_v32 = vor.u32 %v249_v24, %v247_v20  ;;  %v2189_v38 = vrot.slane %v6101_v26, 2  ;;  %v4214_v24 = vld [vmem:[%s7190_s1 + $0xc] sm:$0xf] }
  0x27   : > { %4718 = vmatmul.mubr.msk.bf16.gmra.mrb[4].mxu1 %vm257_vm4, %v232_v50  ;;  %v255_v33 = vrot.slane %v253_v25, 1  ;;  %v2617_v37 = vrot.slane %v4390_v35, 3  ;;  %v2620_v39 = vrot.slane %v6191_v34, 3  ;;  %v2622_v46 = vrot.slane %v6205_v43, 3 }
  0x28   : > { %4721 = vmatprep.mubr.msk.bf16.mxu1 %vm5987_vm1, %v5986_v2  ;;  %v2190_v26 = vsel %vm875_vm6, %v2187_v23, %v2189_v38  ;;  %v2191_v49 = vrot.slane %v6110_v40, 2  ;;  %v470_v50 = vsel %vm273_vm0, %v4207_v47, 0  ;;  %v2624_v54 = vrot.slane %v6227_v51, 3 }
  0x29   : > { %5004 = vmatmul.mubr.msk.bf16.gmra.mrb[4].mxu0 %vm257_vm4, %v2051_v53  ;;  %v256_v41 = vsel %vm212_vm2, %v251_v32, %v255_v33  ;;  %v6202_v42 = vsel %vm1308_vm7, %v2617_v37, %v2618_v36  ;;  %v6208_v44 = vsel %vm1308_vm7, %v2618_v36, %v2620_v39  ;;  %v6219_v48 = vsel %vm1308_vm7, %v2620_v39, %v2622_v46  ;;  %v5873_v53 = vld [vmem:[%s6061_s25 + $0x5c] sm:$0xff]   ;;  %v5881_v36 = vld [vmem:[%s6061_s25 + $0x68] ss:$0 sps:$4 sm:$0x33]  }
  0x2a   : > { %5007 = vmatprep.mubr.msk.bf16.mxu0 %vm5987_vm1, %v5986_v2  ;;  %v2192_v52 = vsel %vm875_vm6, %v2189_v38, %v2191_v49  ;;  %v6240_v40 = vsel %vm1308_vm7, %v2622_v46, %v2624_v54  ;;  %v2195_v59 = vrot.slane %v5874_v55, 2  ;;  %v4369_v61 = vcombine.low %v4357_v57, %v4358_v30 }
  0x2b   : > { %v2340_v62 = vrot.slane %v6185_v31, 2  ;;  %v2342_v6 = vrot.slane %v6191_v34, 2  ;;  %v877_v19 = vrot.slane %v6275_v5, 2  ;;  %v2344_v25 = vrot.slane %v6205_v43, 2 }
  0x2c   : > { %v623_v28 = vsel %vm273_vm0, %v4214_v24, 0  ;;  %v2346_v32 = vrot.slane %v6227_v51, 2  ;;  %v2458_v37 = vshrl.u32 %v4369_v61, 16  ;;  %v2348_v38 = vrot.slane %v5881_v36, 2 }
  0x2d   : > { %v2343_v22 = vsel %vm875_vm6, %v2340_v62, %v2342_v6  ;;  %v2345_v30 = vsel %vm875_vm6, %v2342_v6, %v2344_v25  ;;  %v2461_v39 = vshll.u32 %v4369_v61, 16 }
  0x2e   : > { %v2347_v35 = vsel %vm875_vm6, %v2344_v25, %v2346_v32  ;;  %v2460_v46 = vrot.slane %v2458_v37, 2 }
  0x2f   : > { %4722 = vmatmul.mubr.msk.bf16.gmra.mrb[8].mxu1 %vm257_vm4, %v240_v4  ;;  %v2463_v47 = vrot.slane %v2461_v39, 3 }
  0x30   : > { %4725 = vmatprep.mubr.msk.bf16.mxu1 %vm5987_vm1, %v5986_v2 }
  0x31   : > { %5008 = vmatmul.mubr.msk.bf16.gmra.mrb[8].mxu0 %vm257_vm4, %v2060_v16  ;;  %v869_v16 = vld [vmem:[%s6061_s25 + $0x4] sm:$0xc] }
  0x32   : > { %5021 = vmatprep.mubr.msk.bf16.mxu0 %vm5987_vm1, %v5986_v2  ;;  %v4234_v18 = vcombine.low %v869_v16, %v6281_v9 }
  0x34   : > { %v876_v20 = vrot.slane %v4234_v18, 2  ;;  %v2493_v18 = vshrl.u32 %v6227_v51, 16 }
  0x36   : > { %v6293_v23 = vsel %vm875_vm6, %v876_v20, %v877_v19  ;;  %v2495_v25 = vrot.slane %v2493_v18, 2 }
  0x37   : > { %4726 = vmatmul.mubr.msk.bf16.gmra.mrb[12].mxu1 %vm257_vm4, %v248_v10  ;;  %v6296_v10 = vld [vmem:[%s6061_s25 + $0x14] sm:$0xff]  }
  0x38   : > { %4729 = vmatprep.mubr.msk.bf16.mxu1 %vm5987_vm1, %v5986_v2  ;;  %v879_v27 = vrot.slane %v6296_v10, 2 }
  0x39   : > { %5022 = vmatmul.mubr.msk.bf16.vlgmr.msra.gmra.mrb[0].mxu0 %vm257_vm4, %v2188_v29 }
  0x3a   : > { %5042 = vmatpush3.bf16.msra.mxu0 %v2366_v15  ;;  %5025 = vmatprep.mubr.msk.bf16.mxu0 %vm5987_vm1, %v5986_v2  ;;  %v6308_v29 = vsel %vm875_vm6, %v877_v19, %v879_v27  ;;  %v6317_v15 = vld [vmem:[%s6061_s25 + $0x1c] sm:$0xff]   ;;  %v2496_v19 = vshll.u32 %v6227_v51, 16 }
  0x3b   : > { %5063 = vmatprep.subr.bf16.mxu0 %v5986_v2  ;;  %v881_v33 = vrot.slane %v6317_v15, 2 }
  0x3f   : > { %4730 = vmatmul.mubr.msk.bf16.gmra.mrb[16].mxu1 %vm257_vm4, %v256_v41  ;;  %v2466_v41 = vshrl.u32 %v6185_v31, 16 }
  0x40   : > { %4735 = vmatprep.mubr.msk.bf16.mxu1 %vm5987_vm1, %v5986_v2 }
  0x41   : > { %5026 = vmatmul.mubr.msk.bf16.gmra.mrb[4].mxu0 %vm257_vm4, %v2190_v26  ;;  %v2469_v26 = vshll.u32 %v6185_v31, 16  ;;  %v2464_v31 = vor.u32 %v2463_v47, %v2460_v46  ;;  %v6415_v47 = vld [vmem:[%s6061_s25 + $0x24] sm:$0xff]  }
  0x42   : > { %5029 = vmatprep.mubr.msk.bf16.mxu0 %vm5987_vm1, %v5986_v2 }
  0x47   : > { %4736 = vmatmul.mubr.msk.bf16.vlgmr.msra.gmra.mrb[0].mxu1 %vm257_vm4, %v6068_v7  ;;  %v2193_v7 = vrot.slane %v5873_v53, 2 }
  0x48   : > { %4739 = vmatprep.mubr.msk.bf16.mxu1 %vm5987_vm1, %v5986_v2  ;;  %4756 = vmatpush3.bf16.msra.mxu1 %v470_v50  ;;  %v2471_v50 = vrot.slane %v2469_v26, 3  ;;  %v601_v26 = vrot.slane %v6317_v15, 1 }
  0x49   : > { %4777 = vmatprep.subr.bf16.mxu1 %v5986_v2  ;;  %5030 = vmatmul.mubr.msk.bf16.gmra.mrb[8].mxu0 %vm257_vm4, %v2192_v52  ;;  %v2194_v56 = vsel %vm875_vm6, %v2191_v49, %v2193_v7  ;;  %v2196_v60 = vsel %vm875_vm6, %v2193_v7, %v2195_v59  ;;  %v2468_v49 = vrot.slane %v2466_v41, 2  ;;  %v450_v52 = vrot.slane %v6134_v58, 1 }
  0x4a   : > { %5033 = vmatprep.mubr.msk.bf16.mxu0 %vm5987_vm1, %v5986_v2  ;;  %v2478_v7 = vshll.u32 %v6191_v34, 16 }
  0x4b   : > { %v2472_v53 = vor.u32 %v2471_v50, %v2468_v49  ;;  %v451_v55 = vsel %vm442_vm5, %v448_v1, %v450_v52  ;;  %v603_v50 = vrot.slane %v6415_v47, 1 }
  0x4c   : > { %v2480_v59 = vrot.slane %v2478_v7, 3 }
  0x4f   : > { %4740 = vmatmul.mubr.msk.bf16.gmra.mrb[4].mxu1 %vm257_vm4, %v6071_v8  ;;  %v2339_v8 = vrot.slane %v4369_v61, 2  ;;  %v2484_v61 = vshrl.u32 %v6205_v43, 16 }
  0x50   : > { %4743 = vmatprep.mubr.msk.bf16.mxu1 %vm5987_vm1, %v5986_v2 }
  0x51   : > { %5034 = vmatmul.mubr.msk.bf16.gmra.mrb[12].mxu0 %vm257_vm4, %v2194_v56  ;;  %v2341_v0 = vsel %vm875_vm6, %v2339_v8, %v2340_v62  ;;  %v2473_v56 = vsel %vm1147_vm8, %v2464_v31, %v2472_v53  ;;  %v2487_v8 = vshll.u32 %v6205_v43, 16  ;;  %v597_v43 = vrot.slane %v6275_v5, 1 }
  0x52   : > { %5037 = vmatprep.mubr.msk.bf16.mxu0 %vm5987_vm1, %v5986_v2  ;;  %v604_v31 = vsel %vm442_vm5, %v601_v26, %v603_v50 }
  0x57   : > { %4744 = vmatmul.mubr.msk.bf16.gmra.mrb[8].mxu1 %vm257_vm4, %v6090_v17  ;;  %v4381_v17 = vld [vmem:[%s7190_s1 + $0x40] sm:$0xf] }
  0x58   : > { %4747 = vmatprep.mubr.msk.bf16.mxu1 %vm5987_vm1, %v5986_v2  ;;  %v2526_v4 = vsel %vm273_vm0, %v4381_v17, 0 }
  0x59   : > { %5038 = vmatmul.mubr.msk.bf16.gmra.mrb[16].mxu0 %vm257_vm4, %v2196_v60 }
  0x5a   : > { %5043 = vmatprep.mubr.msk.bf16.mxu0 %vm5987_vm1, %v5986_v2 }
  0x5f   : > { %4748 = vmatmul.mubr.msk.bf16.gmra.mrb[12].mxu1 %vm257_vm4, %v6116_v45  ;;  %v452_v45 = vrot.slane %v6168_v21, 1 }
  0x60   : > { %4751 = vmatprep.mubr.msk.bf16.mxu1 %vm5987_vm1, %v5986_v2 }
  0x61   : > { %5044 = vmatmul.mubr.msk.bf16.vlgmr.msra.gmra.mrb[0].mxu0 %vm257_vm4, %v2341_v0  ;;  %v453_v62 = vsel %vm442_vm5, %v450_v52, %v452_v45  ;;  %v2486_v0 = vrot.slane %v2484_v61, 2  ;;  %v5889_v52 = vld [vmem:[%s6061_s25 + $0x2c] ss:$0 sps:$4 sm:$0x11]  }
  0x62   : > { %5064 = vmatpush3.bf16.msra.mxu0 %v2526_v4  ;;  %5047 = vmatprep.mubr.msk.bf16.mxu0 %vm5987_vm1, %v5986_v2  ;;  %v2489_v4 = vrot.slane %v2487_v8, 3  ;;  %v605_v7 = vrot.slane %v5889_v52, 1  ;;  %v736_v8 = vshll.u32 %v6296_v10, 16  ;;  %v6530_v52 = vld [vmem:[%s6061_s25 + $0x74] sm:$0xf] }
  0x63   : > { %5085 = vmatprep.subr.bf16.mxu0 %v5986_v2 }
  0x64   : > { %v2490_v16 = vor.u32 %v2489_v4, %v2486_v0  ;;  %v738_v0 = vrot.slane %v736_v8, 2 }
  0x67   : > { %4752 = vmatmul.mubr.msk.bf16.gmra.mrb[16].mxu1 %vm257_vm4, %v6134_v58  ;;  %v4389_v58 = vld [vmem:[%s7190_s1 + $0x44] sm:$0xf] }
  0x68   : > { %4757 = vmatprep.mubr.msk.bf16.mxu1 %vm5987_vm1, %v5986_v2  ;;  %v2644_v60 = vsel %vm273_vm0, %v4389_v58, 0 }
  0x69   : > { %5048 = vmatmul.mubr.msk.bf16.gmra.mrb[4].mxu0 %vm257_vm4, %v2343_v22 }
  0x6a   : > { %5051 = vmatprep.mubr.msk.bf16.mxu0 %vm5987_vm1, %v5986_v2 }
  0x6f   : > { %4758 = vmatmul.mubr.msk.bf16.vlgmr.msra.gmra.mrb[0].mxu1 %vm257_vm4, %v6154_v12  ;;  %v6327_v12 = vsel %vm875_vm6, %v879_v27, %v881_v33  ;;  %v2498_v27 = vrot.slane %v2496_v19, 3  ;;  %v751_v19 = vshrl.u32 %v6415_v47, 16 }
  0x70   : > { %4761 = vmatprep.mubr.msk.bf16.mxu1 %vm5987_vm1, %v5986_v2  ;;  %4778 = vmatpush3.bf16.msra.mxu1 %v623_v28  ;;  %v6393_v28 = vld [vmem:[%s6061_s25 + $0x68] ss:$0 sps:$4 sm:$0x77]  }
  0x71   : > { %4799 = vmatprep.subr.bf16.mxu1 %v5986_v2  ;;  %5052 = vmatmul.mubr.msk.bf16.gmra.mrb[8].mxu0 %vm257_vm4, %v2345_v30  ;;  %v599_v30 = vrot.slane %v6296_v10, 1  ;;  %v2505_v36 = vshll.u32 %v6393_v28, 16 }
  0x72   : > { %5055 = vmatprep.mubr.msk.bf16.mxu0 %vm5987_vm1, %v5986_v2 }
  0x73   : > { %v600_v37 = vsel %vm442_vm5, %v597_v43, %v599_v30  ;;  %v2507_v41 = vrot.slane %v2505_v36, 3 }
  0x77   : > { %4762 = vmatmul.mubr.msk.bf16.gmra.mrb[4].mxu1 %vm257_vm4, %v6151_v11  ;;  %v2349_v11 = vsel %vm875_vm6, %v2346_v32, %v2348_v38  ;;  %v2499_v32 = vor.u32 %v2498_v27, %v2495_v25  ;;  %v6481_v27 = vld [vmem:[%s6061_s25 + $0x2c] ss:$0 sps:$4 sm:$0x33]  }
  0x78   : > { %4765 = vmatprep.mubr.msk.bf16.mxu1 %vm5987_vm1, %v5986_v2 }
  0x79   : > { %5056 = vmatmul.mubr.msk.bf16.gmra.mrb[12].mxu0 %vm257_vm4, %v2347_v35  ;;  %v2502_v35 = vshrl.u32 %v6393_v28, 16  ;;  %v2500_v38 = vsel %vm1147_vm8, %v2490_v16, %v2499_v32 }
  0x7a   : > { %5059 = vmatprep.mubr.msk.bf16.mxu0 %vm5987_vm1, %v5986_v2 }
  0x7b   : > { %v2504_v39 = vrot.slane %v2502_v35, 2 }
  0x7d   : > { %v2508_v46 = vor.u32 %v2507_v41, %v2504_v39 }
  0x7f   : > { %4766 = vmatmul.mubr.msk.bf16.gmra.mrb[8].mxu1 %vm257_vm4, %v6159_v13  ;;  %v2475_v13 = vshrl.u32 %v6191_v34, 16  ;;  %v555_v34 = vld [vmem:[%s6061_s25 + $0x4] sm:$0xe]  ;;  %v2509_v49 = vsel %vm1147_vm8, %v2499_v32, %v2508_v46  ;;  %v760_v32 = vshrl.u32 %v6481_v27, 16  ;;  %v4240_v46 = vld [vmem:[%s7190_s1 + $0x18] sm:$0xf] }
  0x80   : > { %4769 = vmatprep.mubr.msk.bf16.mxu1 %vm5987_vm1, %v5986_v2  ;;  %v6371_v17 = vcombine.low %v555_v34, %v6281_v9  ;;  %v4226_v9 = vld [vmem:[%s7190_s1 + $0x10] sm:$0xf] }
  0x81   : > { %5060 = vmatmul.mubr.msk.bf16.gmra.mrb[16].mxu0 %vm257_vm4, %v2349_v11  ;;  %v2477_v57 = vrot.slane %v2475_v13, 2  ;;  %v784_v22 = vsel %vm273_vm0, %v4226_v9, 0  ;;  %v602_v11 = vsel %vm442_vm5, %v599_v30, %v601_v26  ;;  %v762_v36 = vrot.slane %v760_v32, 1  ;;  %v5892_v26 = vld [vmem:[%s6061_s25 + $0x78] sm:$0xff]  }
  0x82   : > { %5065 = vmatprep.mubr.msk.bf16.mxu0 %vm5987_vm1, %v5986_v2  ;;  %v596_v6 = vrot.slane %v6371_v17, 1  ;;  %v719_v58 = vshll.u32 %v6371_v17, 16 }
  0x83   : > { %v2481_v1 = vor.u32 %v2480_v59, %v2477_v57  ;;  %v727_v57 = vshll.u32 %v6275_v5, 16  ;;  %v606_v59 = vsel %vm442_vm5, %v603_v50, %v605_v7  ;;  %v4417_v50 = vld [vmem:[%s6061_s25 + $0x70] sm:$0xf] }
  0x84   : > { %v598_v20 = vsel %vm442_vm5, %v596_v6, %v597_v43  ;;  %v721_v45 = vrot.slane %v719_v58, 2  ;;  %v745_v6 = vshll.u32 %v6317_v15, 16  ;;  %v5896_v7 = vld [vmem:[%s6061_s25 + $0x90] sm:$0xff]  }
  0x85   : > { %v2482_v21 = vsel %vm1147_vm8, %v2472_v53, %v2481_v1  ;;  %v2491_v24 = vsel %vm1147_vm8, %v2481_v1, %v2490_v16  ;;  %v4406_v53 = vld [vmem:[%s7190_s1 + $0x48] sm:$0xf]  ;;  %v729_v1 = vrot.slane %v727_v57, 2 }
  0x86   : > { %v2786_v13 = vsel %vm273_vm0, %v4406_v53, 0  ;;  %v747_v16 = vrot.slane %v745_v6, 2  ;;  %v6542_v53 = vld [vmem:[%s6061_s25 + $0x78] sm:$0xff]  }
  0x87   : > { %4770 = vmatmul.mubr.msk.bf16.gmra.mrb[12].mxu1 %vm257_vm4, %v451_v55  ;;  %v716_v55 = vshrl.u32 %v6371_v17, 16  ;;  %v2920_v58 = vshll.u32 %v6542_v53, 16 }
  0x88   : > { %4773 = vmatprep.mubr.msk.bf16.mxu1 %vm5987_vm1, %v5986_v2 }
  0x89   : > { %5066 = vmatmul.mubr.msk.bf16.vlgmr.msra.gmra.mrb[0].mxu0 %vm257_vm4, %v2473_v56  ;;  %v724_v56 = vshrl.u32 %v6275_v5, 16 }
  0x8a   : > { %5086 = vmatpush3.bf16.msra.mxu0 %v2644_v60  ;;  %5069 = vmatprep.mubr.msk.bf16.mxu0 %vm5987_vm1, %v5986_v2  ;;  %v718_v60 = vrot.slane %v716_v55, 1 }
  0x8b   : > { %5107 = vmatprep.subr.bf16.mxu0 %v5986_v2  ;;  %v726_v34 = vrot.slane %v724_v56, 1  ;;  %v883_v56 = vrot.slane %v6415_v47, 2 }
  0x8c   : > { %v722_v5 = vor.u32 %v721_v45, %v718_v60  ;;  %v6555_v60 = vld [vmem:[%s6061_s25 + $0x80] sm:$0xff]   ;;  %v4441_v45 = vld [vmem:[%s7190_s1 + $0x50] sm:$0xf] }
  0x8d   : > { %v730_v61 = vor.u32 %v729_v1, %v726_v34  ;;  %v2924_v34 = vshrl.u32 %v6542_v53, 16  ;;  %v2928_v1 = vshll.u32 %v6555_v60, 16 }
  0x8f   : > { %4774 = vmatmul.mubr.msk.bf16.gmra.mrb[16].mxu1 %vm257_vm4, %v453_v62  ;;  %v4233_v62 = vld [vmem:[%s7190_s1 + $0x14] sm:$0xf]  ;;  %v731_v17 = vsel %vm714_vm3, %v722_v5, %v730_v61  ;;  %v3090_v5 = vsel %vm273_vm0, %v4441_v45, 0  ;;  %v2930_v8 = vrot.slane %v2928_v1, 1 }
  0x90   : > { %4779 = vmatprep.mubr.msk.bf16.mxu1 %vm5987_vm1, %v5986_v2  ;;  %v903_v4 = vsel %vm273_vm0, %v4233_v62, 0  ;;  %v6579_v62 = vld [vmem:[%s6061_s25 + $0x88] sm:$0xff]  }
  0x91   : > { %5070 = vmatmul.mubr.msk.bf16.gmra.mrb[4].mxu0 %vm257_vm4, %v2482_v21 }
  0x92   : > { %5073 = vmatprep.mubr.msk.bf16.mxu0 %vm5987_vm1, %v5986_v2 }
  0x97   : > { %4780 = vmatmul.mubr.msk.bf16.vlgmr.msra.gmra.mrb[0].mxu1 %vm257_vm4, %v598_v20  ;;  %v754_v20 = vshll.u32 %v6415_v47, 16 }
  0x98   : > { %4783 = vmatprep.mubr.msk.bf16.mxu1 %vm5987_vm1, %v5986_v2  ;;  %4800 = vmatpush3.bf16.msra.mxu1 %v784_v22 }
  0x99   : > { %4821 = vmatprep.subr.bf16.mxu1 %v5986_v2  ;;  %5074 = vmatmul.mubr.msk.bf16.gmra.mrb[8].mxu0 %vm257_vm4, %v2491_v24  ;;  %v753_v24 = vrot.slane %v751_v19, 1  ;;  %v756_v25 = vrot.slane %v754_v20, 2  ;;  %v6604_v19 = vld [vmem:[%s6061_s25 + $0x90] sm:$0xff]  }
  0x9a   : > { %5077 = vmatprep.mubr.msk.bf16.mxu0 %vm5987_vm1, %v5986_v2 }
  0x9f   : > { %4784 = vmatmul.mubr.msk.bf16.gmra.mrb[4].mxu1 %vm257_vm4, %v600_v37  ;;  %v5890_v37 = vld [vmem:[%s6061_s25 + $0x70] sm:$0xff]  }
  0xa0   : > { %4787 = vmatprep.mubr.msk.bf16.mxu1 %vm5987_vm1, %v5986_v2 }
  0xa1   : > { %5078 = vmatmul.mubr.msk.bf16.gmra.mrb[12].mxu0 %vm257_vm4, %v2500_v38 }
  0xa2   : > { %5081 = vmatprep.mubr.msk.bf16.mxu0 %vm5987_vm1, %v5986_v2 }
  0xa7   : > { %4788 = vmatmul.mubr.msk.bf16.gmra.mrb[8].mxu1 %vm257_vm4, %v602_v11  ;;  %v1056_v11 = vsel %vm273_vm0, %v4240_v46, 0  ;;  %v6641_v46 = vld [vmem:[%s6061_s25 + $0x28] sm:$0xff]  }
  0xa8   : > { %4791 = vmatprep.mubr.msk.bf16.mxu1 %vm5987_vm1, %v5986_v2 }
  0xa9   : > { %5082 = vmatmul.mubr.msk.bf16.gmra.mrb[16].mxu0 %vm257_vm4, %v2509_v49  ;;  %v5894_v49 = vld [vmem:[%s6061_s25 + $0x80] sm:$0xff]  }
  0xaa   : > { %5087 = vmatprep.mubr.msk.bf16.mxu0 %vm5987_vm1, %v5986_v2 }
  0xaf   : > { %4792 = vmatmul.mubr.msk.bf16.gmra.mrb[12].mxu1 %vm257_vm4, %v604_v31  ;;  %v5895_v31 = vld [vmem:[%s6061_s25 + $0x88] sm:$0xff]  }
  0xb0   : > { %4795 = vmatprep.mubr.msk.bf16.mxu1 %vm5987_vm1, %v5986_v2 }
  0xb1   : > { %5088 = vmatmul.mubr.msk.bf16.vlgmr.msra.gmra.mrb[0].mxu0 %vm257_vm4, %v6202_v42  ;;  %v733_v42 = vshrl.u32 %v6296_v10, 16 }
  0xb2   : > { %5108 = vmatpush3.bf16.msra.mxu0 %v2786_v13  ;;  %5091 = vmatprep.mubr.msk.bf16.mxu0 %vm5987_vm1, %v5986_v2 }
  0xb3   : > { %5129 = vmatprep.subr.bf16.mxu0 %v5986_v2  ;;  %v735_v21 = vrot.slane %v733_v42, 1 }
  0xb5   : > { %v739_v10 = vor.u32 %v738_v0, %v735_v21  ;;  %v6586_v0 = vld [vmem:[%s6061_s25 + $0x10] sm:$0xff]  }
  0xb7   : > { %4796 = vmatmul.mubr.msk.bf16.gmra.mrb[16].mxu1 %vm257_vm4, %v606_v59  ;;  %v740_v43 = vsel %vm714_vm3, %v730_v61, %v739_v10  ;;  %v2922_v59 = vrot.slane %v2920_v58, 1  ;;  %v6573_v61 = vld [vmem:[%s6061_s25 + $0xc] sm:$0xf] }
  0xb8   : > { %4801 = vmatprep.mubr.msk.bf16.mxu1 %vm5987_vm1, %v5986_v2 }
  0xb9   : > { %5092 = vmatmul.mubr.msk.bf16.gmra.mrb[4].mxu0 %vm257_vm4, %v6208_v44  ;;  %v742_v44 = vshrl.u32 %v6317_v15, 16  ;;  %v885_v15 = vrot.slane %v6481_v27, 2  ;;  %v2926_v42 = vor.u32 %v2924_v34, %v2922_v59 }
  0xba   : > { %5095 = vmatprep.mubr.msk.bf16.mxu0 %vm5987_vm1, %v5986_v2 }
  0xbb   : > { %v744_v9 = vrot.slane %v742_v44, 1  ;;  %v2936_v44 = vshll.u32 %v6579_v62, 16 }
  0xbd   : > { %v748_v18 = vor.u32 %v747_v16, %v744_v9  ;;  %v4252_v9 = vld [vmem:[%s7190_s1 + $0x1c] sm:$0xf] }
  0xbf   : > { %4802 = vmatmul.mubr.msk.bf16.vlgmr.msra.gmra.mrb[0].mxu1 %vm257_vm4, %v731_v17  ;;  %v749_v22 = vsel %vm714_vm3, %v739_v10, %v748_v18  ;;  %v886_v17 = vsel %vm875_vm6, %v883_v56, %v885_v15  ;;  %v2932_v10 = vshrl.u32 %v6555_v60, 16 }
  0xc0   : > { %4805 = vmatprep.mubr.msk.bf16.mxu1 %vm5987_vm1, %v5986_v2  ;;  %4822 = vmatpush3.bf16.msra.mxu1 %v903_v4  ;;  %v2931_v4 = vsel %vm212_vm2, %v2926_v42, %v2930_v8 }
  0xc1   : > { %4843 = vmatprep.subr.bf16.mxu1 %v5986_v2  ;;  %5096 = vmatmul.mubr.msk.bf16.gmra.mrb[8].mxu0 %vm257_vm4, %v6219_v48  ;;  %v2626_v48 = vrot.slane %v6393_v28, 3  ;;  %v763_v28 = vshll.u32 %v6481_v27, 16  ;;  %v2934_v16 = vor.u32 %v2932_v10, %v2930_v8  ;;  %v2944_v27 = vshll.u32 %v6604_v19, 16 }
  0xc2   : > { %5099 = vmatprep.mubr.msk.bf16.mxu0 %vm5987_vm1, %v5986_v2 }
  0xc3   : > { %v2627_v30 = vsel %vm1308_vm7, %v2624_v54, %v2626_v48  ;;  %v765_v51 = vrot.slane %v763_v28, 2  ;;  %v4428_v54 = vld [vmem:[%s7190_s1 + $0x4c] sm:$0xf]  ;;  %v6608_v48 = vld [vmem:[%s6061_s25 + $0x18] sm:$0xff]   ;;  %v2946_v32 = vrot.slane %v2944_v27, 1 }
  0xc4   : > { %v2972_v38 = vsel %vm273_vm0, %v4428_v54, 0  ;;  %v6623_v28 = vld [vmem:[%s6061_s25 + $0x98] ss:$0 sps:$4 sm:$0x11]   ;;  %v2948_v54 = vshrl.u32 %v6604_v19, 16 }
  0xc5   : > { %v766_v39 = vor.u32 %v765_v51, %v762_v36  ;;  %v6627_v36 = vld [vmem:[%s6061_s25 + $0x20] sm:$0xff]  }
  0xc7   : > { %4806 = vmatmul.mubr.msk.bf16.gmra.mrb[4].mxu1 %vm257_vm4, %v740_v43  ;;  %v1030_v43 = vrot.slane %v6586_v0, 2 }
  0xc8   : > { %4809 = vmatprep.mubr.msk.bf16.mxu1 %vm5987_vm1, %v5986_v2 }
  0xc9   : > { %5100 = vmatmul.mubr.msk.bf16.gmra.mrb[12].mxu0 %vm257_vm4, %v6240_v40  ;;  %v757_v40 = vor.u32 %v756_v25, %v753_v24  ;;  %v2940_v25 = vshrl.u32 %v6579_v62, 16 }
  0xca   : > { %5103 = vmatprep.mubr.msk.bf16.mxu0 %vm5987_vm1, %v5986_v2 }
  0xcb   : > { %v758_v35 = vsel %vm714_vm3, %v748_v18, %v757_v40  ;;  %v767_v41 = vsel %vm714_vm3, %v757_v40, %v766_v39  ;;  %v2938_v18 = vrot.slane %v2936_v44, 1  ;;  %v2950_v39 = vor.u32 %v2948_v54, %v2946_v32 }
  0xcd   : > { %v2939_v24 = vsel %vm212_vm2, %v2934_v16, %v2938_v18  ;;  %v2942_v40 = vor.u32 %v2940_v25, %v2938_v18  ;;  %v1175_v18 = vshrl.u32 %v6627_v36, 16 }
  0xcf   : > { %4810 = vmatmul.mubr.msk.bf16.gmra.mrb[8].mxu1 %vm257_vm4, %v749_v22  ;;  %v1217_v22 = vsel %vm273_vm0, %v4252_v9, 0  ;;  %v2947_v51 = vsel %vm212_vm2, %v2942_v40, %v2946_v32  ;;  %v1184_v40 = vshrl.u32 %v6641_v46, 16  ;;  %v1187_v32 = vshll.u32 %v6641_v46, 16 }
  0xd0   : > { %4813 = vmatprep.mubr.msk.bf16.mxu1 %vm5987_vm1, %v5986_v2 }
  0xd1   : > { %5104 = vmatmul.mubr.msk.bf16.gmra.mrb[16].mxu0 %vm257_vm4, %v2627_v30  ;;  %v1032_v30 = vrot.slane %v6608_v48, 2 }
  0xd2   : > { %5109 = vmatprep.mubr.msk.bf16.mxu0 %vm5987_vm1, %v5986_v2 }
  0xd7   : > { %4814 = vmatmul.mubr.msk.bf16.gmra.mrb[12].mxu1 %vm257_vm4, %v758_v35  ;;  %v1033_v35 = vsel %vm875_vm6, %v1030_v43, %v1032_v30 }
  0xd8   : > { %4817 = vmatprep.mubr.msk.bf16.mxu1 %vm5987_vm1, %v5986_v2 }
  0xd9   : > { %5110 = vmatmul.mubr.msk.bf16.vlgmr.msra.gmra.mrb[0].mxu0 %vm257_vm4, %v5890_v37  ;;  %v2952_v37 = vshll.u32 %v6623_v28, 16 }
  0xda   : > { %5130 = vmatpush3.bf16.msra.mxu0 %v2972_v38  ;;  %5113 = vmatprep.mubr.msk.bf16.mxu0 %vm5987_vm1, %v5986_v2  ;;  %v1034_v38 = vrot.slane %v6627_v36, 2 }
  0xdb   : > { %5151 = vmatprep.subr.bf16.mxu0 %v5986_v2 }
  0xdf   : > { %4818 = vmatmul.mubr.msk.bf16.gmra.mrb[16].mxu1 %vm257_vm4, %v767_v41  ;;  %v2954_v41 = vrot.slane %v2952_v37, 1  ;;  %v1186_v37 = vrot.slane %v1184_v40, 2 }
  0xe0   : > { %4823 = vmatprep.mubr.msk.bf16.mxu1 %vm5987_vm1, %v5986_v2 }
  0xe1   : > { %5114 = vmatmul.mubr.msk.bf16.gmra.mrb[4].mxu0 %vm257_vm4, %v5892_v26  ;;  %v1035_v26 = vsel %vm875_vm6, %v1032_v30, %v1034_v38 }
  0xe2   : > { %5117 = vmatprep.mubr.msk.bf16.mxu0 %vm5987_vm1, %v5986_v2 }
  0xe7   : > { %4824 = vmatmul.mubr.msk.bf16.vlgmr.msra.gmra.mrb[0].mxu1 %vm257_vm4, %v6293_v23  ;;  %v4429_v23 = vcombine.low %v4417_v50, %v6530_v52 }
  0xe8   : > { %4827 = vmatprep.mubr.msk.bf16.mxu1 %vm5987_vm1, %v5986_v2  ;;  %4844 = vmatpush3.bf16.msra.mxu1 %v1056_v11  ;;  %v4440_v11 = vld [vmem:[%s6061_s25 + $0x70] sm:$0xe] }
  0xe9   : > { %4865 = vmatprep.subr.bf16.mxu1 %v5986_v2  ;;  %5118 = vmatmul.mubr.msk.bf16.gmra.mrb[8].mxu0 %vm257_vm4, %v5894_v49  ;;  %v2915_v13 = vshll.u32 %v4429_v23, 16  ;;  %v2913_v55 = vshrl.u32 %v4429_v23, 16  ;;  %v2955_v49 = vsel %vm212_vm2, %v2950_v39, %v2954_v41  ;;  %v4442_v50 = vcombine.low %v4440_v11, %v6530_v52  ;;  %v4459_v52 = vld [vmem:[%s7190_s1 + $0x54] sm:$0xf]  ;;  %v6725_v11 = vld [vmem:[%s6061_s25 + $0x7c] sm:$0xff]  }
  0xea   : > { %5121 = vmatprep.mubr.msk.bf16.mxu0 %vm5987_vm1, %v5986_v2  ;;  %v3243_v58 = vsel %vm273_vm0, %v4459_v52, 0  ;;  %v6717_v39 = vld [vmem:[%s6061_s25 + $0x30] ss:$0 sps:$4 sm:$0x77]   ;;  %v4472_v52 = vld [vmem:[%s7190_s1 + $0x58] sm:$0xf] }
  0xeb   : > { %v3063_v23 = vrot.slane %v4442_v50, 1  ;;  %v1196_v50 = vshll.u32 %v6717_v39, 16 }
  0xef   : > { %4828 = vmatmul.mubr.msk.bf16.gmra.mrb[4].mxu1 %vm257_vm4, %v6308_v29  ;;  %v2917_v29 = vrot.slane %v2915_v13, 1  ;;  %v3064_v13 = vrot.slane %v6542_v53, 1 }
  0xf0   : > { %4831 = vmatprep.mubr.msk.bf16.mxu1 %vm5987_vm1, %v5986_v2 }
  0xf1   : > { %5122 = vmatmul.mubr.msk.bf16.gmra.mrb[12].mxu0 %vm257_vm4, %v5895_v31  ;;  %v2918_v57 = vor.u32 %v2917_v29, %v2913_v55  ;;  %v1036_v31 = vrot.slane %v6641_v46, 2  ;;  %v3065_v29 = vsel %vm442_vm5, %v3063_v23, %v3064_v13  ;;  %v3217_v23 = vrot.slane %v6725_v11, 1 }
  0xf2   : > { %5125 = vmatprep.mubr.msk.bf16.mxu0 %vm5987_vm1, %v5986_v2 }
  0xf3   : > { %v2923_v47 = vsel %vm212_vm2, %v2918_v57, %v2922_v59  ;;  %v1037_v55 = vsel %vm875_vm6, %v1034_v38, %v1036_v31  ;;  %v1157_v59 = vshrl.u32 %v6586_v0, 16  ;;  %v1189_v38 = vrot.slane %v1187_v32, 3 }
  0xf7   : > { %4832 = vmatmul.mubr.msk.bf16.gmra.mrb[8].mxu1 %vm257_vm4, %v6327_v12  ;;  %v884_v12 = vsel %vm875_vm6, %v881_v33, %v883_v56  ;;  %v988_v33 = vld [vmem:[%s6061_s25 + $0x8] sm:$0xc] }
  0xf8   : > { %4835 = vmatprep.mubr.msk.bf16.mxu1 %vm5987_vm1, %v5986_v2  ;;  %v6583_v21 = vcombine.low %v988_v33, %v6573_v61 }
  0xf9   : > { %5126 = vmatmul.mubr.msk.bf16.gmra.mrb[16].mxu0 %vm257_vm4, %v5896_v7  ;;  %v5909_v7 = vld [vmem:[%s6061_s25 + $0x30] ss:$0 sps:$4 sm:$0x33]  }
  0xfa   : > { %5131 = vmatprep.mubr.msk.bf16.mxu0 %vm5987_vm1, %v5986_v2  ;;  %v1029_v6 = vrot.slane %v6583_v21, 2  ;;  %v1038_v56 = vrot.slane %v5909_v7, 2  ;;  %v1149_v57 = vshrl.u32 %v6583_v21, 16  ;;  %v1152_v53 = vshll.u32 %v6583_v21, 16 }
  0xfb   : > { %v1169_v21 = vshll.u32 %v6608_v48, 16 }
  0xfc   : > { %v1031_v20 = vsel %vm875_vm6, %v1029_v6, %v1030_v43  ;;  %v1039_v45 = vsel %vm875_vm6, %v1036_v31, %v1038_v56  ;;  %v1151_v34 = vrot.slane %v1149_v57, 2  ;;  %v1154_v1 = vrot.slane %v1152_v53, 3  ;;  %v1302_v53 = vld [vmem:[%s6061_s25 + $0x8] sm:$0x8] }
  0xfd   : > { %v1171_v6 = vrot.slane %v1169_v21, 3  ;;  %v3403_v56 = vsel %vm273_vm0, %v4472_v52, 0 }
  0xfe   : > { %v1155_v42 = vor.u32 %v1154_v1, %v1151_v34  ;;  %v6759_v34 = vld [vmem:[%s6061_s25 + $0x8c] sm:$0xff]  }
  0xff   : > { %4836 = vmatmul.mubr.msk.bf16.gmra.mrb[12].mxu1 %vm257_vm4, %v884_v12  ;;  %v1160_v12 = vshll.u32 %v6586_v0, 16 }
 0x100   : > { %4839 = vmatprep.mubr.msk.bf16.mxu1 %vm5987_vm1, %v5986_v2 }
 0x101   : > { %5132 = vmatmul.mubr.msk.bf16.vlgmr.msra.gmra.mrb[0].mxu0 %vm257_vm4, %v2923_v47  ;;  %v3066_v47 = vrot.slane %v6555_v60, 1  ;;  %v1162_v15 = vrot.slane %v1160_v12, 3  ;;  %v4259_v60 = vld [vmem:[%s7190_s1 + $0x20] sm:$0xf] }
 0x102   : > { %5152 = vmatpush3.bf16.msra.mxu0 %v3090_v5  ;;  %5135 = vmatprep.mubr.msk.bf16.mxu0 %vm5987_vm1, %v5986_v2  ;;  %v1159_v5 = vrot.slane %v1157_v59, 2  ;;  %v1336_v43 = vsel %vm273_vm0, %v4259_v60, 0 }
 0x103   : > { %5173 = vmatprep.subr.bf16.mxu0 %v5986_v2  ;;  %v3067_v33 = vsel %vm442_vm5, %v3064_v13, %v3066_v47 }
 0x104   : > { %v1163_v8 = vor.u32 %v1162_v15, %v1159_v5  ;;  %v1310_v5 = vrot.slane %v6586_v0, 3  ;;  %v3221_v15 = vrot.slane %v6759_v34, 1 }
 0x106   : > { %v1164_v10 = vsel %vm1147_vm8, %v1155_v42, %v1163_v8 }
 0x107   : > { %4840 = vmatmul.mubr.msk.bf16.gmra.mrb[16].mxu1 %vm257_vm4, %v886_v17  ;;  %v1166_v17 = vshrl.u32 %v6608_v48, 16 }
 0x108   : > { %4845 = vmatprep.mubr.msk.bf16.mxu1 %vm5987_vm1, %v5986_v2 }
 0x109   : > { %5136 = vmatmul.mubr.msk.bf16.gmra.mrb[4].mxu0 %vm257_vm4, %v2931_v4  ;;  %v3068_v4 = vrot.slane %v6579_v62, 1  ;;  %v1168_v44 = vrot.slane %v1166_v17, 2  ;;  %v3070_v62 = vrot.slane %v6604_v19, 1  ;;  %v3072_v19 = vrot.slane %v6623_v28, 1 }
 0x10a   : > { %5139 = vmatprep.mubr.msk.bf16.mxu0 %vm5987_vm1, %v5986_v2  ;;  %v1190_v28 = vor.u32 %v1189_v38, %v1186_v37  ;;  %v1312_v17 = vrot.slane %v6608_v48, 3  ;;  %v1314_v48 = vrot.slane %v6627_v36, 3 }
 0x10b   : > { %v3069_v9 = vsel %vm442_vm5, %v3066_v47, %v3068_v4  ;;  %v1172_v16 = vor.u32 %v1171_v6, %v1168_v44  ;;  %v3071_v27 = vsel %vm442_vm5, %v3068_v4, %v3070_v62  ;;  %v3073_v41 = vsel %vm442_vm5, %v3070_v62, %v3072_v19  ;;  %v5917_v4 = vld [vmem:[%s6061_s25 + $0x9c] ss:$0 sps:$4 sm:$0x11]  }
 0x10c   : > { %v1313_v60 = vsel %vm1308_vm7, %v1310_v5, %v1312_v17  ;;  %v3225_v44 = vrot.slane %v5917_v4, 1  ;;  %v4287_v4 = vld [vmem:[%s6061_s25 + $0x38] sm:$0xf] }
 0x10f   : > { %4846 = vmatmul.mubr.msk.bf16.vlgmr.msra.gmra.mrb[0].mxu1 %vm257_vm4, %v1031_v20  ;;  %v1178_v20 = vshll.u32 %v6627_v36, 16 }
 0x110   : > { %4849 = vmatprep.mubr.msk.bf16.mxu1 %vm5987_vm1, %v5986_v2  ;;  %4866 = vmatpush3.bf16.msra.mxu1 %v1217_v22  ;;  %v1173_v22 = vsel %vm1147_vm8, %v1163_v8, %v1172_v16  ;;  %v6776_v8 = vld [vmem:[%s6061_s25 + $0x94] sm:$0xff]  }
 0x111   : > { %4887 = vmatprep.subr.bf16.mxu1 %v5986_v2  ;;  %5140 = vmatmul.mubr.msk.bf16.gmra.mrb[8].mxu0 %vm257_vm4, %v2939_v24  ;;  %v1177_v24 = vrot.slane %v1175_v18, 2  ;;  %v1180_v25 = vrot.slane %v1178_v20, 3  ;;  %v3223_v21 = vrot.slane %v6776_v8, 1  ;;  %v1315_v18 = vsel %vm1308_vm7, %v1312_v17, %v1314_v48  ;;  %v4479_v17 = vld [vmem:[%s6061_s25 + $0x74] sm:$0xc] }
 0x112   : > { %5143 = vmatprep.mubr.msk.bf16.mxu0 %vm5987_vm1, %v5986_v2  ;;  %v3370_v52 = vshrl.u32 %v6776_v8, 16 }
 0x113   : > { %v1181_v30 = vor.u32 %v1180_v25, %v1177_v24  ;;  %v3226_v20 = vsel %vm442_vm5, %v3223_v21, %v3225_v44  ;;  %v1316_v25 = vrot.slane %v6641_v46, 3 }
 0x115   : > { %v1182_v54 = vsel %vm1147_vm8, %v1172_v16, %v1181_v30  ;;  %v1191_v13 = vsel %vm1147_vm8, %v1181_v30, %v1190_v28  ;;  %v3346_v16 = vshll.u32 %v6725_v11, 16  ;;  %v1317_v19 = vsel %vm1308_vm7, %v1314_v48, %v1316_v25  ;;  %v5922_v48 = vld [vmem:[%s6061_s25 + $0x50] sm:$0xff]  }
 0x117   : > { %4850 = vmatmul.mubr.msk.bf16.gmra.mrb[4].mxu1 %vm257_vm4, %v1033_v35  ;;  %v4448_v35 = vld [vmem:[%s6061_s25 + $0x74] sm:$0xe]  ;;  %v3348_v24 = vrot.slane %v3346_v16, 2 }
 0x118   : > { %4853 = vmatprep.mubr.msk.bf16.mxu1 %vm5987_vm1, %v5986_v2 }
 0x119   : > { %5144 = vmatmul.mubr.msk.bf16.gmra.mrb[12].mxu0 %vm257_vm4, %v2947_v51  ;;  %v6713_v51 = vld [vmem:[%s6061_s25 + $0x78] sm:$0xf] }
 0x11a   : > { %5147 = vmatprep.mubr.msk.bf16.mxu0 %vm5987_vm1, %v5986_v2 }
 0x11f   : > { %4854 = vmatmul.mubr.msk.bf16.gmra.mrb[8].mxu1 %vm257_vm4, %v1035_v26  ;;  %v6722_v26 = vcombine.low %v4448_v35, %v6713_v51  ;;  %v4480_v35 = vld [vmem:[%s7190_s1 + $0x5c] sm:$0xf] }
 0x120   : > { %4857 = vmatprep.mubr.msk.bf16.mxu1 %vm5987_vm1, %v5986_v2  ;;  %v3521_v38 = vsel %vm273_vm0, %v4480_v35, 0 }
 0x121   : > { %5148 = vmatmul.mubr.msk.bf16.gmra.mrb[16].mxu0 %vm257_vm4, %v2955_v49  ;;  %v1193_v49 = vshrl.u32 %v6717_v39, 16  ;;  %v3216_v31 = vrot.slane %v6722_v26, 1  ;;  %v3335_v6 = vshrl.u32 %v6722_v26, 16 }
 0x122   : > { %5153 = vmatprep.mubr.msk.bf16.mxu0 %vm5987_vm1, %v5986_v2 }
 0x123   : > { %v1195_v7 = vrot.slane %v1193_v49, 2  ;;  %v3337_v36 = vrot.slane %v3335_v6, 1  ;;  %v3364_v49 = vshll.u32 %v6759_v34, 16  ;;  %v3495_v6 = vrot.slane %v6725_v11, 2 }
 0x127   : > { %4858 = vmatmul.mubr.msk.bf16.gmra.mrb[12].mxu1 %vm257_vm4, %v1037_v55  ;;  %v1198_v55 = vrot.slane %v1196_v50, 3 }
 0x128   : > { %4861 = vmatprep.mubr.msk.bf16.mxu1 %vm5987_vm1, %v5986_v2 }
 0x129   : > { %5154 = vmatmul.mubr.msk.bf16.vlgmr.msra.gmra.mrb[0].mxu0 %vm257_vm4, %v3065_v29  ;;  %v3218_v29 = vsel %vm442_vm5, %v3216_v31, %v3217_v23  ;;  %v1199_v57 = vor.u32 %v1198_v55, %v1195_v7  ;;  %v5918_v7 = vld [vmem:[%s6061_s25 + $0x38] sm:$0xff]  }
 0x12a   : > { %5174 = vmatpush3.bf16.msra.mxu0 %v3243_v58  ;;  %5157 = vmatprep.mubr.msk.bf16.mxu0 %vm5987_vm1, %v5986_v2  ;;  %v6743_v58 = vld [vmem:[%s6061_s25 + $0x84] sm:$0xff]  }
 0x12b   : > { %5195 = vmatprep.subr.bf16.mxu0 %v5986_v2  ;;  %v3219_v59 = vrot.slane %v6743_v58, 1  ;;  %v1200_v12 = vsel %vm1147_vm8, %v1190_v28, %v1199_v57  ;;  %v3352_v40 = vshrl.u32 %v6743_v58, 16  ;;  %v3355_v32 = vshll.u32 %v6743_v58, 16 }
 0x12c   : > { %v3361_v28 = vshrl.u32 %v6759_v34, 16 }
 0x12d   : > { %v3220_v47 = vsel %vm442_vm5, %v3217_v23, %v3219_v59  ;;  %v3222_v0 = vsel %vm442_vm5, %v3219_v59, %v3221_v15  ;;  %v3357_v37 = vrot.slane %v3355_v32, 2  ;;  %v3366_v23 = vrot.slane %v3364_v49, 2 }
 0x12e   : > { %v3363_v31 = vrot.slane %v3361_v28, 1  ;;  %v3499_v32 = vrot.slane %v6759_v34, 2  ;;  %v6921_v34 = vld [vmem:[%s6061_s25 + $0x50] sm:$0xff]  }
 0x12f   : > { %4862 = vmatmul.mubr.msk.bf16.gmra.mrb[16].mxu1 %vm257_vm4, %v1039_v45  ;;  %v4260_v45 = vcombine.low %v1302_v53, %v6573_v61  ;;  %v4276_v61 = vld [vmem:[%s7190_s1 + $0x24] sm:$0xf]  ;;  %v3372_v53 = vrot.slane %v3370_v52, 1 }
 0x130   : > { %4867 = vmatprep.mubr.msk.bf16.mxu1 %vm5987_vm1, %v5986_v2  ;;  %v1478_v42 = vsel %vm273_vm0, %v4276_v61, 0  ;;  %v3367_v55 = vor.u32 %v3366_v23, %v3363_v31 }
 0x131   : > { %5158 = vmatmul.mubr.msk.bf16.gmra.mrb[4].mxu0 %vm257_vm4, %v3067_v33  ;;  %v1309_v1 = vrot.slane %v4260_v45, 3  ;;  %v5919_v45 = vld [vmem:[%s6061_s25 + $0x40] sm:$0xff]  }
 0x132   : > { %5161 = vmatprep.mubr.msk.bf16.mxu0 %vm5987_vm1, %v5986_v2 }
 0x133   : > { %v1311_v33 = vsel %vm1308_vm7, %v1309_v1, %v1310_v5 }
 0x137   : > { %4868 = vmatmul.mubr.msk.bf16.vlgmr.msra.gmra.mrb[0].mxu1 %vm257_vm4, %v1164_v10  ;;  %v3224_v10 = vsel %vm442_vm5, %v3221_v15, %v3223_v21 }
 0x138   : > { %4871 = vmatprep.mubr.msk.bf16.mxu1 %vm5987_vm1, %v5986_v2  ;;  %4888 = vmatpush3.bf16.msra.mxu1 %v1336_v43  ;;  %v3338_v43 = vshll.u32 %v6722_v26, 16 }
 0x139   : > { %4909 = vmatprep.subr.bf16.mxu1 %v5986_v2  ;;  %5162 = vmatmul.mubr.msk.bf16.gmra.mrb[8].mxu0 %vm257_vm4, %v3069_v9  ;;  %v3343_v9 = vshrl.u32 %v6725_v11, 16  ;;  %v5924_v11 = vld [vmem:[%s6061_s25 + $0x58] sm:$0xff]  }
 0x13a   : > { %5165 = vmatprep.mubr.msk.bf16.mxu0 %vm5987_vm1, %v5986_v2  ;;  %v3340_v62 = vrot.slane %v3338_v43, 2 }
 0x13f   : > { %4872 = vmatmul.mubr.msk.bf16.gmra.mrb[4].mxu1 %vm257_vm4, %v1173_v22  ;;  %v3345_v22 = vrot.slane %v3343_v9, 1 }
 0x140   : > { %4875 = vmatprep.mubr.msk.bf16.mxu1 %vm5987_vm1, %v5986_v2 }
 0x141   : > { %5166 = vmatmul.mubr.msk.bf16.gmra.mrb[12].mxu0 %vm257_vm4, %v3071_v27  ;;  %v3341_v27 = vor.u32 %v3340_v62, %v3337_v36  ;;  %v3349_v30 = vor.u32 %v3348_v24, %v3345_v22  ;;  %v3497_v36 = vrot.slane %v6743_v58, 2  ;;  %v4311_v58 = vld [vmem:[%s7190_s1 + $0x2c] sm:$0xf] }
 0x142   : > { %5169 = vmatprep.mubr.msk.bf16.mxu0 %vm5987_vm1, %v5986_v2 }
 0x143   : > { %v3350_v46 = vsel %vm714_vm3, %v3341_v27, %v3349_v30 }
 0x147   : > { %4876 = vmatmul.mubr.msk.bf16.gmra.mrb[8].mxu1 %vm257_vm4, %v1182_v54  ;;  %v3354_v54 = vrot.slane %v3352_v40, 1  ;;  %v6903_v40 = vld [vmem:[%s6061_s25 + $0x48] sm:$0xff]  }
 0x148   : > { %4879 = vmatprep.mubr.msk.bf16.mxu1 %vm5987_vm1, %v5986_v2  ;;  %v1624_v49 = vshrl.u32 %v6903_v40, 16 }
 0x149   : > { %5170 = vmatmul.mubr.msk.bf16.gmra.mrb[16].mxu0 %vm257_vm4, %v3073_v41  ;;  %v1318_v41 = vrot.slane %v6717_v39, 3  ;;  %v3358_v26 = vor.u32 %v3357_v37, %v3354_v54  ;;  %v1782_v54 = vsel %vm273_vm0, %v4311_v58, 0  ;;  %v3500_v37 = vsel %vm875_vm6, %v3497_v36, %v3499_v32 }
 0x14a   : > { %5175 = vmatprep.mubr.msk.bf16.mxu0 %vm5987_vm1, %v5986_v2 }
 0x14b   : > { %v1319_v50 = vsel %vm1308_vm7, %v1316_v25, %v1318_v41  ;;  %v3359_v39 = vsel %vm714_vm3, %v3349_v30, %v3358_v26  ;;  %v3368_v57 = vsel %vm714_vm3, %v3358_v26, %v3367_v55  ;;  %v3498_v25 = vsel %vm875_vm6, %v3495_v6, %v3497_v36 }
 0x14c   : > { %v3501_v26 = vrot.slane %v6776_v8, 2 }
 0x14f   : > { %4880 = vmatmul.mubr.msk.bf16.gmra.mrb[12].mxu1 %vm257_vm4, %v1191_v13  ;;  %v4298_v13 = vld [vmem:[%s7190_s1 + $0x28] sm:$0xf] }
 0x150   : > { %4883 = vmatprep.mubr.msk.bf16.mxu1 %vm5987_vm1, %v5986_v2 }
 0x151   : > { %5176 = vmatmul.mubr.msk.bf16.vlgmr.msra.gmra.mrb[0].mxu0 %vm257_vm4, %v3218_v29  ;;  %v3373_v29 = vshll.u32 %v6776_v8, 16 }
 0x152   : > { %5196 = vmatpush3.bf16.msra.mxu0 %v3403_v56  ;;  %5179 = vmatprep.mubr.msk.bf16.mxu0 %vm5987_vm1, %v5986_v2  ;;  %v1664_v56 = vsel %vm273_vm0, %v4298_v13, 0  ;;  %v6936_v13 = vld [vmem:[%s6061_s25 + $0x58] sm:$0xff]  }
 0x153   : > { %5217 = vmatprep.subr.bf16.mxu0 %v5986_v2  ;;  %v3375_v59 = vrot.slane %v3373_v29, 2  ;;  %v1636_v52 = vshll.u32 %v6936_v13, 16  ;;  %v4487_v29 = vld [vmem:[%s6061_s25 + $0x78] sm:$0xc] }
 0x157   : > { %4884 = vmatmul.mubr.msk.bf16.gmra.mrb[16].mxu1 %vm257_vm4, %v1200_v12  ;;  %v6845_v12 = vld [vmem:[%s6061_s25 + $0x9c] ss:$0 sps:$4 sm:$0x33]  }
 0x158   : > { %4889 = vmatprep.mubr.msk.bf16.mxu1 %vm5987_vm1, %v5986_v2  ;;  %v3379_v1 = vshrl.u32 %v6845_v12, 16  ;;  %v3382_v5 = vshll.u32 %v6845_v12, 16  ;;  %v3503_v8 = vrot.slane %v6845_v12, 2 }
 0x159   : > { %5180 = vmatmul.mubr.msk.bf16.gmra.mrb[4].mxu0 %vm257_vm4, %v3220_v47  ;;  %v3376_v47 = vor.u32 %v3375_v59, %v3372_v53  ;;  %v6955_v59 = vld [vmem:[%s6061_s25 + $0x80] sm:$0xff]  }
 0x15a   : > { %5183 = vmatprep.mubr.msk.bf16.mxu0 %vm5987_vm1, %v5986_v2  ;;  %v3381_v15 = vrot.slane %v3379_v1, 1 }
 0x15b   : > { %v3377_v61 = vsel %vm714_vm3, %v3367_v55, %v3376_v47  ;;  %v1632_v55 = vshrl.u32 %v6921_v34, 16 }
 0x15f   : > { %4890 = vmatmul.mubr.msk.bf16.vlgmr.msra.gmra.mrb[0].mxu1 %vm257_vm4, %v1311_v33  ;;  %v3384_v33 = vrot.slane %v3382_v5, 2  ;;  %v3648_v5 = vrot.slane %v6955_v59, 2 }
 0x160   : > { %4893 = vmatprep.mubr.msk.bf16.mxu1 %vm5987_vm1, %v5986_v2  ;;  %4910 = vmatpush3.bf16.msra.mxu1 %v1478_v42  ;;  %v5920_v42 = vld [vmem:[%s6061_s25 + $0x48] sm:$0xff]  }
 0x161   : > { %4931 = vmatprep.subr.bf16.mxu1 %v5986_v2  ;;  %5184 = vmatmul.mubr.msk.bf16.gmra.mrb[8].mxu0 %vm257_vm4, %v3222_v0  ;;  %v3385_v0 = vor.u32 %v3384_v33, %v3381_v15  ;;  %v1640_v15 = vshrl.u32 %v6936_v13, 16 }
 0x162   : > { %5187 = vmatprep.mubr.msk.bf16.mxu0 %vm5987_vm1, %v5986_v2 }
 0x163   : > { %v3386_v21 = vsel %vm714_vm3, %v3376_v47, %v3385_v0  ;;  %v6960_v47 = vld [vmem:[%s6061_s25 + $0x60] ss:$0 sps:$4 sm:$0x11]  }
 0x164   : > { %v1644_v33 = vshll.u32 %v6960_v47, 16 }
 0x167   : > { %4894 = vmatmul.mubr.msk.bf16.gmra.mrb[4].mxu1 %vm257_vm4, %v1313_v60  ;;  %v4481_v60 = vcombine.low %v4479_v17, %v6713_v51  ;;  %v4498_v51 = vld [vmem:[%s7190_s1 + $0x60] sm:$0xf]  ;;  %v6976_v17 = vld [vmem:[%s6061_s25 + $0x88] sm:$0xff]  }
 0x168   : > { %4897 = vmatprep.mubr.msk.bf16.mxu1 %vm5987_vm1, %v5986_v2  ;;  %v3674_v16 = vsel %vm273_vm0, %v4498_v51, 0 }
 0x169   : > { %5188 = vmatmul.mubr.msk.bf16.gmra.mrb[12].mxu0 %vm257_vm4, %v3224_v10  ;;  %v6872_v10 = vld [vmem:[%s6061_s25 + $0x3c] sm:$0xf]  ;;  %v3494_v44 = vrot.slane %v4481_v60, 2 }
 0x16a   : > { %5191 = vmatprep.mubr.msk.bf16.mxu0 %vm5987_vm1, %v5986_v2  ;;  %v4299_v43 = vcombine.low %v4287_v4, %v6872_v10  ;;  %v1646_v4 = vrot.slane %v1644_v33, 1  ;;  %v5941_v33 = vld [vmem:[%s6061_s25 + $0x44] sm:$0xff]  }
 0x16b   : > { %v3496_v9 = vsel %vm875_vm6, %v3494_v44, %v3495_v6  ;;  %v3650_v44 = vrot.slane %v6976_v17, 2 }
 0x16c   : > { %v1605_v62 = vshrl.u32 %v4299_v43, 16 }
 0x16d   : > { %v3651_v51 = vsel %vm875_vm6, %v3648_v5, %v3650_v44 }
 0x16f   : > { %4898 = vmatmul.mubr.msk.bf16.gmra.mrb[8].mxu1 %vm257_vm4, %v1315_v18  ;;  %v6889_v18 = vld [vmem:[%s6061_s25 + $0x40] sm:$0xff]  }
 0x170   : > { %4901 = vmatprep.mubr.msk.bf16.mxu1 %vm5987_vm1, %v5986_v2  ;;  %v1612_v24 = vshll.u32 %v6889_v18, 16  ;;  %v1616_v35 = vshrl.u32 %v6889_v18, 16 }
 0x171   : > { %5192 = vmatmul.mubr.msk.bf16.gmra.mrb[16].mxu0 %vm257_vm4, %v3226_v20  ;;  %v1607_v20 = vshll.u32 %v4299_v43, 16 }
 0x172   : > { %5197 = vmatprep.mubr.msk.bf16.mxu0 %vm5987_vm1, %v5986_v2  ;;  %v1614_v30 = vrot.slane %v1612_v24, 1  ;;  %v1758_v24 = vrot.slane %v6903_v40, 1 }
 0x173   : > { %v1609_v22 = vrot.slane %v1607_v20, 1  ;;  %v1756_v20 = vrot.slane %v6889_v18, 1 }
 0x175   : > { %v1610_v27 = vor.u32 %v1609_v22, %v1605_v62  ;;  %v7009_v22 = vld [vmem:[%s6061_s25 + $0x98] sm:$0xff]  }
 0x177   : > { %4902 = vmatmul.mubr.msk.bf16.gmra.mrb[12].mxu1 %vm257_vm4, %v1317_v19  ;;  %v1615_v19 = vsel %vm212_vm2, %v1610_v27, %v1614_v30  ;;  %v1759_v27 = vsel %vm442_vm5, %v1756_v20, %v1758_v24 }
 0x178   : > { %4905 = vmatprep.mubr.msk.bf16.mxu1 %vm5987_vm1, %v5986_v2 }
 0x179   : > { %5198 = vmatmul.mubr.msk.bf16.vlgmr.msra.gmra.mrb[0].mxu0 %vm257_vm4, %v3350_v46  ;;  %v1620_v46 = vshll.u32 %v6903_v40, 16  ;;  %v1760_v40 = vrot.slane %v6921_v34, 1 }
 0x17a   : > { %5218 = vmatpush3.bf16.msra.mxu0 %v3521_v38  ;;  %5201 = vmatprep.mubr.msk.bf16.mxu0 %vm5987_vm1, %v5986_v2  ;;  %v1618_v38 = vor.u32 %v1616_v35, %v1614_v30  ;;  %v5937_v30 = vld [vmem:[%s6061_s25 + $0xa0] ss:$0 sps:$4 sm:$0x33]  }
 0x17b   : > { %5239 = vmatprep.subr.bf16.mxu0 %v5986_v2  ;;  %v1622_v41 = vrot.slane %v1620_v46, 1  ;;  %v3774_v46 = vshrl.u32 %v6955_v59, 16 }
 0x17d   : > { %v1623_v28 = vsel %vm212_vm2, %v1618_v38, %v1622_v41  ;;  %v1626_v31 = vor.u32 %v1624_v49, %v1622_v41  ;;  %v1762_v49 = vrot.slane %v6936_v13, 1 }
 0x17f   : > { %4906 = vmatmul.mubr.msk.bf16.gmra.mrb[16].mxu1 %vm257_vm4, %v1319_v50  ;;  %v1628_v50 = vshll.u32 %v6921_v34, 16 }
 0x180   : > { %4911 = vmatprep.mubr.msk.bf16.mxu1 %vm5987_vm1, %v5986_v2 }
 0x181   : > { %5202 = vmatmul.mubr.msk.bf16.gmra.mrb[4].mxu0 %vm257_vm4, %v3359_v39  ;;  %v3502_v39 = vsel %vm875_vm6, %v3499_v32, %v3501_v26  ;;  %v1630_v23 = vrot.slane %v1628_v50, 1  ;;  %v3656_v32 = vrot.slane %v5937_v30, 2  ;;  %v4518_v30 = vld [vmem:[%s6061_s25 + $0x78] sm:$0x8] }
 0x182   : > { %5205 = vmatprep.mubr.msk.bf16.mxu0 %vm5987_vm1, %v5986_v2 }
 0x183   : > { %v1634_v12 = vor.u32 %v1632_v55, %v1630_v23 }
 0x187   : > { %4912 = vmatmul.mubr.msk.bf16.vlgmr.msra.gmra.mrb[0].mxu1 %vm257_vm4, %v5918_v7  ;;  %v1631_v7 = vsel %vm212_vm2, %v1626_v31, %v1630_v23  ;;  %v3783_v31 = vshrl.u32 %v6976_v17, 16  ;;  %v3786_v23 = vshll.u32 %v6976_v17, 16 }
 0x188   : > { %4915 = vmatprep.mubr.msk.bf16.mxu1 %vm5987_vm1, %v5986_v2  ;;  %4932 = vmatpush3.bf16.msra.mxu1 %v1664_v56  ;;  %v6947_v56 = vld [vmem:[%s6061_s25 + $0x7c] sm:$0xf] }
 0x189   : > { %4953 = vmatprep.subr.bf16.mxu1 %v5986_v2  ;;  %5206 = vmatmul.mubr.msk.bf16.gmra.mrb[8].mxu0 %vm257_vm4, %v3368_v57  ;;  %v3504_v57 = vsel %vm875_vm6, %v3501_v26, %v3503_v8  ;;  %v6952_v53 = vcombine.low %v4487_v29, %v6947_v56  ;;  %v3776_v26 = vrot.slane %v3774_v46, 2  ;;  %v1763_v8 = vsel %vm442_vm5, %v1760_v40, %v1762_v49 }
 0x18a   : > { %5209 = vmatprep.mubr.msk.bf16.mxu0 %vm5987_vm1, %v5986_v2  ;;  %v3785_v55 = vrot.slane %v3783_v31, 2  ;;  %v3926_v46 = vrot.slane %v6955_v59, 3  ;;  %v5945_v31 = vld [vmem:[%s6061_s25 + $0x64] ss:$0 sps:$4 sm:$0x33]  }
 0x18b   : > { %v3647_v1 = vrot.slane %v6952_v53, 2  ;;  %v3769_v35 = vshll.u32 %v6952_v53, 16 }
 0x18d   : > { %v3649_v0 = vsel %vm875_vm6, %v3647_v1, %v3648_v5  ;;  %v3771_v34 = vrot.slane %v3769_v35, 3 }
 0x18f   : > { %4916 = vmatmul.mubr.msk.bf16.gmra.mrb[4].mxu1 %vm257_vm4, %v5919_v45  ;;  %v1638_v45 = vrot.slane %v1636_v52, 1  ;;  %v3788_v52 = vrot.slane %v3786_v23, 3  ;;  %v2071_v23 = vshrl.u32 %v5945_v31, 16 }
 0x190   : > { %4919 = vmatprep.mubr.msk.bf16.mxu1 %vm5987_vm1, %v5986_v2 }
 0x191   : > { %5210 = vmatmul.mubr.msk.bf16.gmra.mrb[12].mxu0 %vm257_vm4, %v3377_v61  ;;  %v1639_v61 = vsel %vm212_vm2, %v1634_v12, %v1638_v45  ;;  %v1642_v60 = vor.u32 %v1640_v15, %v1638_v45  ;;  %v1908_v15 = vrot.slane %v6081_v14, 1 }
 0x192   : > { %5213 = vmatprep.mubr.msk.bf16.mxu0 %vm5987_vm1, %v5986_v2 }
 0x193   : > { %v1647_v6 = vsel %vm212_vm2, %v1642_v60, %v1646_v4  ;;  %v3804_v60 = vshll.u32 %v7009_v22, 16 }
 0x195   : > { %v3806_v14 = vrot.slane %v3804_v60, 3 }
 0x197   : > { %4920 = vmatmul.mubr.msk.bf16.gmra.mrb[8].mxu1 %vm257_vm4, %v5920_v42  ;;  %v4511_v42 = vld [vmem:[%s7190_s1 + $0x64] sm:$0xf] }
 0x198   : > { %4923 = vmatprep.mubr.msk.bf16.mxu1 %vm5987_vm1, %v5986_v2 }
 0x199   : > { %5214 = vmatmul.mubr.msk.bf16.gmra.mrb[16].mxu0 %vm257_vm4, %v3386_v21  ;;  %v3834_v21 = vsel %vm273_vm0, %v4511_v42, 0  ;;  %v1909_v42 = vrot.slane %v5941_v33, 1 }
 0x19a   : > { %5219 = vmatprep.mubr.msk.bf16.mxu0 %vm5987_vm1, %v5986_v2 }
 0x19b   : > { %v1910_v4 = vsel %vm442_vm5, %v1908_v15, %v1909_v42 }
 0x19f   : > { %4924 = vmatmul.mubr.msk.bf16.gmra.mrb[12].mxu1 %vm257_vm4, %v5922_v48  ;;  %v4310_v48 = vld [vmem:[%s6061_s25 + $0x38] sm:$0xe] }
 0x1a0   : > { %4927 = vmatprep.mubr.msk.bf16.mxu1 %vm5987_vm1, %v5986_v2  ;;  %v4312_v43 = vcombine.low %v4310_v48, %v6872_v10  ;;  %v4329_v10 = vld [vmem:[%s7190_s1 + $0x30] sm:$0xf] }
 0x1a1   : > { %5220 = vmatmul.mubr.msk.bf16.vlgmr.msra.gmra.mrb[0].mxu0 %vm257_vm4, %v3496_v9  ;;  %v6992_v9 = vld [vmem:[%s6061_s25 + $0x90] sm:$0xff]   ;;  %v1935_v62 = vsel %vm273_vm0, %v4329_v10, 0 }
 0x1a2   : > { %5240 = vmatpush3.bf16.msra.mxu0 %v3674_v16  ;;  %5223 = vmatprep.mubr.msk.bf16.mxu0 %vm5987_vm1, %v5986_v2  ;;  %v1755_v16 = vrot.slane %v4312_v43, 1  ;;  %v3792_v12 = vshrl.u32 %v6992_v9, 16  ;;  %v3795_v45 = vshll.u32 %v6992_v9, 16  ;;  %v5942_v43 = vld [vmem:[%s6061_s25 + $0x4c] sm:$0xff]  }
 0x1a3   : > { %5261 = vmatprep.subr.bf16.mxu0 %v5986_v2 }
 0x1a4   : > { %v1757_v36 = vsel %vm442_vm5, %v1755_v16, %v1756_v20 }
 0x1a7   : > { %4928 = vmatmul.mubr.msk.bf16.gmra.mrb[16].mxu1 %vm257_vm4, %v5924_v11  ;;  %v3652_v11 = vrot.slane %v6992_v9, 2 }
 0x1a8   : > { %4933 = vmatprep.mubr.msk.bf16.mxu1 %vm5987_vm1, %v5986_v2 }
 0x1a9   : > { %5224 = vmatmul.mubr.msk.bf16.gmra.mrb[4].mxu0 %vm257_vm4, %v3498_v25  ;;  %v3653_v18 = vsel %vm875_vm6, %v3650_v44, %v3652_v11  ;;  %v3654_v25 = vrot.slane %v7009_v22, 2 }
 0x1aa   : > { %5227 = vmatprep.mubr.msk.bf16.mxu0 %vm5987_vm1, %v5986_v2 }
 0x1ab   : > { %v3655_v58 = vsel %vm875_vm6, %v3652_v11, %v3654_v25  ;;  %v3657_v38 = vsel %vm875_vm6, %v3654_v25, %v3656_v32  ;;  %v5944_v32 = vld [vmem:[%s6061_s25 + $0x5c] sm:$0xff]  }
 0x1af   : > { %4934 = vmatmul.mubr.msk.bf16.vlgmr.msra.gmra.mrb[0].mxu1 %vm257_vm4, %v1615_v19  ;;  %v3766_v19 = vshrl.u32 %v6952_v53, 16  ;;  %v3789_v53 = vor.u32 %v3788_v52, %v3785_v55 }
 0x1b0   : > { %4937 = vmatprep.mubr.msk.bf16.mxu1 %vm5987_vm1, %v5986_v2  ;;  %4954 = vmatpush3.bf16.msra.mxu1 %v1782_v54  ;;  %v3777_v54 = vshll.u32 %v6955_v59, 16  ;;  %v3928_v59 = vrot.slane %v6976_v17, 3  ;;  %v3930_v17 = vrot.slane %v6992_v9, 3  ;;  %v3932_v9 = vrot.slane %v7009_v22, 3 }
 0x1b1   : > { %4975 = vmatprep.subr.bf16.mxu1 %v5986_v2  ;;  %5228 = vmatmul.mubr.msk.bf16.gmra.mrb[8].mxu0 %vm257_vm4, %v3500_v37  ;;  %v1761_v37 = vsel %vm442_vm5, %v1758_v24, %v1760_v40  ;;  %v3768_v41 = vrot.slane %v3766_v19, 2  ;;  %v4520_v40 = vcombine.low %v4518_v30, %v6947_v56  ;;  %v1915_v19 = vrot.slane %v5944_v32, 1 }
 0x1b2   : > { %5231 = vmatprep.mubr.msk.bf16.mxu0 %vm5987_vm1, %v5986_v2  ;;  %v3931_v52 = vsel %vm1308_vm7, %v3928_v59, %v3930_v17 }
 0x1b3   : > { %v3772_v50 = vor.u32 %v3771_v34, %v3768_v41  ;;  %v3925_v35 = vrot.slane %v4520_v40, 3  ;;  %v2062_v41 = vshrl.u32 %v5944_v32, 16  ;;  %v2065_v34 = vshll.u32 %v5944_v32, 16 }
 0x1b5   : > { %v3927_v56 = vsel %vm1308_vm7, %v3925_v35, %v3926_v46 }
 0x1b7   : > { %4938 = vmatmul.mubr.msk.bf16.gmra.mrb[4].mxu1 %vm257_vm4, %v1623_v28  ;;  %v3779_v28 = vrot.slane %v3777_v54, 3 }
 0x1b8   : > { %4941 = vmatprep.mubr.msk.bf16.mxu1 %vm5987_vm1, %v5986_v2 }
 0x1b9   : > { %5232 = vmatmul.mubr.msk.bf16.gmra.mrb[12].mxu0 %vm257_vm4, %v3502_v39  ;;  %v3780_v39 = vor.u32 %v3779_v28, %v3776_v26  ;;  %v2064_v28 = vrot.slane %v2062_v41, 1 }
 0x1ba   : > { %5235 = vmatprep.mubr.msk.bf16.mxu0 %vm5987_vm1, %v5986_v2 }
 0x1bb   : > { %v3781_v13 = vsel %vm1147_vm8, %v3772_v50, %v3780_v39  ;;  %v3790_v5 = vsel %vm1147_vm8, %v3780_v39, %v3789_v53  ;;  %v3929_v50 = vsel %vm1308_vm7, %v3926_v46, %v3928_v59 }
 0x1bf   : > { %4942 = vmatmul.mubr.msk.bf16.gmra.mrb[8].mxu1 %vm257_vm4, %v1631_v7  ;;  %v4519_v7 = vld [vmem:[%s7190_s1 + $0x68] sm:$0xf] }
 0x1c0   : > { %4945 = vmatprep.mubr.msk.bf16.mxu1 %vm5987_vm1, %v5986_v2  ;;  %v3952_v29 = vsel %vm273_vm0, %v4519_v7, 0 }
 0x1c1   : > { %5236 = vmatmul.mubr.msk.bf16.gmra.mrb[16].mxu0 %vm257_vm4, %v3504_v57  ;;  %v1764_v57 = vrot.slane %v6960_v47, 1  ;;  %v3797_v47 = vrot.slane %v3795_v45, 3 }
 0x1c2   : > { %5241 = vmatprep.mubr.msk.bf16.mxu0 %vm5987_vm1, %v5986_v2 }
 0x1c3   : > { %v1765_v1 = vsel %vm442_vm5, %v1762_v49, %v1764_v57  ;;  %v2067_v49 = vrot.slane %v2065_v34, 2 }
 0x1c5   : > { %v2068_v39 = vor.u32 %v2067_v49, %v2064_v28 }
 0x1c7   : > { %4946 = vmatmul.mubr.msk.bf16.gmra.mrb[12].mxu1 %vm257_vm4, %v1639_v61  ;;  %v3794_v61 = vrot.slane %v3792_v12, 2  ;;  %v2069_v7 = vsel %vm714_vm3, %v6143_v63, %v2068_v39  ;;  %v3933_v63 = vsel %vm1308_vm7, %v3930_v17, %v3932_v9 }
 0x1c8   : > { %4949 = vmatprep.mubr.msk.bf16.mxu1 %vm5987_vm1, %v5986_v2 }
 0x1c9   : > { %5242 = vmatmul.mubr.msk.bf16.vlgmr.msra.gmra.mrb[0].mxu0 %vm257_vm4, %v3649_v0  ;;  %v3798_v0 = vor.u32 %v3797_v47, %v3794_v61 }
 0x1ca   : > { %5262 = vmatpush3.bf16.msra.mxu0 %v3834_v21  ;;  %5245 = vmatprep.mubr.msk.bf16.mxu0 %vm5987_vm1, %v5986_v2  ;;  %v3801_v21 = vshrl.u32 %v7009_v22, 16 }
 0x1cb   : > { %5283 = vmatprep.subr.bf16.mxu0 %v5986_v2  ;;  %v3799_v48 = vsel %vm1147_vm8, %v3789_v53, %v3798_v0 }
 0x1cc   : > { %v3803_v44 = vrot.slane %v3801_v21, 2 }
 0x1ce   : > { %v3807_v16 = vor.u32 %v3806_v14, %v3803_v44 }
 0x1cf   : > { %4950 = vmatmul.mubr.msk.bf16.gmra.mrb[16].mxu1 %vm257_vm4, %v1647_v6  ;;  %v7075_v6 = vld [vmem:[%s6061_s25 + $0xa0] ss:$0 sps:$4 sm:$0x77]  }
 0x1d0   : > { %4955 = vmatprep.mubr.msk.bf16.mxu1 %vm5987_vm1, %v5986_v2  ;;  %v3810_v20 = vshrl.u32 %v7075_v6, 16  ;;  %v3813_v10 = vshll.u32 %v7075_v6, 16  ;;  %v3934_v53 = vrot.slane %v7075_v6, 3 }
 0x1d1   : > { %5246 = vmatmul.mubr.msk.bf16.gmra.mrb[4].mxu0 %vm257_vm4, %v3651_v51  ;;  %v1911_v51 = vrot.slane %v5942_v43, 1 }
 0x1d2   : > { %5249 = vmatprep.mubr.msk.bf16.mxu0 %vm5987_vm1, %v5986_v2  ;;  %v3935_v12 = vsel %vm1308_vm7, %v3932_v9, %v3934_v53 }
 0x1d3   : > { %v1912_v11 = vsel %vm442_vm5, %v1909_v42, %v1911_v51 }
 0x1d7   : > { %4956 = vmatmul.mubr.msk.bf16.vlgmr.msra.gmra.mrb[0].mxu1 %vm257_vm4, %v1757_v36  ;;  %v3808_v36 = vsel %vm1147_vm8, %v3798_v0, %v3807_v16 }
 0x1d8   : > { %4959 = vmatprep.mubr.msk.bf16.mxu1 %vm5987_vm1, %v5986_v2  ;;  %4976 = vmatpush3.bf16.msra.mxu1 %v1935_v62  ;;  %v3812_v62 = vrot.slane %v3810_v20, 2 }
 0x1d9   : > { %5305 = vmatprep.subr.bf16.mxu1 %v5986_v2  ;;  %5250 = vmatmul.mubr.msk.bf16.gmra.mrb[8].mxu0 %vm257_vm4, %v3653_v18  ;;  %v5943_v18 = vld [vmem:[%s6061_s25 + $0x54] sm:$0xff]  }
 0x1da   : > { %5253 = vmatprep.mubr.msk.bf16.mxu0 %vm5987_vm1, %v5986_v2  ;;  %v1913_v24 = vrot.slane %v5943_v18, 1 }
 0x1dc   : > { %v1916_v54 = vsel %vm442_vm5, %v1913_v24, %v1915_v19 }
 0x1df   : > { %4960 = vmatmul.mubr.msk.bf16.gmra.mrb[4].mxu1 %vm257_vm4, %v1759_v27  ;;  %v1914_v27 = vsel %vm442_vm5, %v1911_v51, %v1913_v24 }
 0x1e0   : > { %4963 = vmatprep.mubr.msk.bf16.mxu1 %vm5987_vm1, %v5986_v2 }
 0x1e1   : > { %5254 = vmatmul.mubr.msk.bf16.gmra.mrb[12].mxu0 %vm257_vm4, %v3655_v58 }
 0x1e2   : > { %5257 = vmatprep.mubr.msk.bf16.mxu0 %vm5987_vm1, %v5986_v2 }
 0x1e7   : > { %4964 = vmatmul.mubr.msk.bf16.gmra.mrb[8].mxu1 %vm257_vm4, %v1761_v37  ;;  %v5940_v37 = vld [vmem:[%s6061_s25 + $0x64] ss:$0 sps:$4 sm:$0x11]   ;;  %s5819_s25 = smul.u32 40, %s7203_s10 }
 0x1e8   : > { %4967 = vmatprep.mubr.msk.bf16.mxu1 %vm5987_vm1, %v5986_v2 }
 0x1e9   : > { %5258 = vmatmul.mubr.msk.bf16.gmra.mrb[16].mxu0 %vm257_vm4, %v3657_v38  ;;  %v1917_v38 = vrot.slane %v5940_v37, 1  ;;  %s163_s16 = sadd.s32 %s5819_s25, %s5818_s8 }
 0x1ea   : > { %5263 = vmatprep.mubr.msk.bf16.mxu0 %vm5987_vm1, %v5986_v2  ;;  %s4188_s17 = sshll.u32 %s163_s16, 2 }
 0x1eb   : > { %v1918_v26 = vsel %vm442_vm5, %v1915_v19, %v1917_v38  ;;  %s7152_s20 = scalar_lea.vmem %s7191_s2, %s4188_s17 }
 0x1ef   : > { %4968 = vmatmul.mubr.msk.bf16.gmra.mrb[12].mxu1 %vm257_vm4, %v1763_v8  ;;  %v2074_v8 = vshll.u32 %v5945_v31, 16 }
 0x1f0   : > { %4971 = vmatprep.mubr.msk.bf16.mxu1 %vm5987_vm1, %v5986_v2 }
 0x1f1   : > { %5264 = vmatmul.mubr.msk.bf16.vlgmr.msra.gmra.mrb[0].mxu0 %vm257_vm4, %v3781_v13  ;;  %v2073_v13 = vrot.slane %v2071_v23, 1  ;;  %v2076_v55 = vrot.slane %v2074_v8, 2 }
 0x1f2   : > { %5284 = vmatpush3.bf16.msra.mxu0 %v3952_v29  ;;  %5267 = vmatprep.mubr.msk.bf16.mxu0 %vm5987_vm1, %v5986_v2 }
 0x1f3   : > { %v2077_v29 = vor.u32 %v2076_v55, %v2073_v13 }
 0x1f5   : > { %v2078_v57 = vsel %vm714_vm3, %v2068_v39, %v2077_v29 }
 0x1f7   : > { %4972 = vmatmul.mubr.msk.bf16.gmra.mrb[16].mxu1 %vm257_vm4, %v1765_v1 }
 0x1f8   : > { %4977 = vmatprep.mubr.msk.bf16.mxu1 %vm5987_vm1, %v5986_v2 }
 0x1f9   : > { %5268 = vmatmul.mubr.msk.bf16.gmra.mrb[4].mxu0 %vm257_vm4, %v3790_v5 }
 0x1fa   : > { %5271 = vmatprep.mubr.msk.bf16.mxu0 %vm5987_vm1, %v5986_v2 }
 0x1ff   : > { %4978 = vmatmul.mubr.msk.bf16.vlgmr.msra.gmra.mrb[0].mxu1 %vm257_vm4, %v1910_v4 }
 0x200   : > { %4981 = vmatprep.mubr.msk.bf16.mxu1 %vm5987_vm1, %v5986_v2  ;;  %5306 = vmatpush3.bf16.msra.mxu1 %v6044_v3  ;;  %v3815_v3 = vrot.slane %v3813_v10, 3 }
 0x201   : > { %5272 = vmatmul.mubr.msk.bf16.gmra.mrb[8].mxu0 %vm257_vm4, %v3799_v48 }
 0x202   : > { %5275 = vmatprep.mubr.msk.bf16.mxu0 %vm5987_vm1, %v5986_v2  ;;  %v3816_v25 = vor.u32 %v3815_v3, %v3812_v62 }
 0x204   : > { %v3817_v58 = vsel %vm1147_vm8, %v3807_v16, %v3816_v25 }
 0x207   : > { %4982 = vmatmul.mubr.msk.bf16.gmra.mrb[4].mxu1 %vm257_vm4, %v1912_v11 }
 0x208   : > { %4985 = vmatprep.mubr.msk.bf16.mxu1 %vm5987_vm1, %v5986_v2 }
 0x209   : > { %5276 = vmatmul.mubr.msk.bf16.gmra.mrb[12].mxu0 %vm257_vm4, %v3808_v36 }
 0x20a   : > { %5279 = vmatprep.mubr.msk.bf16.mxu0 %vm5987_vm1, %v5986_v2 }
 0x20f   : > { %4986 = vmatmul.mubr.msk.bf16.gmra.mrb[8].mxu1 %vm257_vm4, %v1914_v27 }
 0x210   : > { %4989 = vmatprep.mubr.msk.bf16.mxu1 %vm5987_vm1, %v5986_v2 }
 0x211   : > { %5280 = vmatmul.mubr.msk.bf16.gmra.mrb[16].mxu0 %vm257_vm4, %v3817_v58 }
 0x212   : > { %5285 = vmatprep.mubr.msk.bf16.mxu0 %vm5987_vm1, %v5986_v2 }
 0x217   : > { %4990 = vmatmul.mubr.msk.bf16.gmra.mrb[12].mxu1 %vm257_vm4, %v1916_v54 }
 0x218   : > { %4993 = vmatprep.mubr.msk.bf16.mxu1 %vm5987_vm1, %v5986_v2 }
 0x219   : > { %5286 = vmatmul.mubr.msk.bf16.vlgmr.msra.gmra.mrb[0].mxu0 %vm257_vm4, %v3927_v56 }
 0x21a   : > { %5289 = vmatprep.mubr.msk.bf16.mxu0 %vm5987_vm1, %v5986_v2 }
 0x21f   : > { %4994 = vmatmul.mubr.msk.bf16.gmra.mrb[16].mxu1 %vm257_vm4, %v1918_v26 }
 0x220   : > { %5011 = vmatprep.mubr.msk.bf16.mxu1 %vm5987_vm1, %v5986_v2 }
 0x221   : > { %5290 = vmatmul.mubr.msk.bf16.gmra.mrb[4].mxu0 %vm257_vm4, %v3929_v50 }
 0x222   : > { %5293 = vmatprep.mubr.msk.bf16.mxu0 %vm5987_vm1, %v5986_v2 }
 0x227   : > { %5012 = vmatmul.mubr.msk.bf16.vlgmr.msra.gmra.mrb[12].mxu1 %vm257_vm4, %v2069_v7 }
 0x228   : > { %5015 = vmatprep.mubr.msk.bf16.mxu1 %vm5987_vm1, %v5986_v2 }
 0x229   : > { %5294 = vmatmul.mubr.msk.bf16.gmra.mrb[8].mxu0 %vm257_vm4, %v3931_v52 }
 0x22a   : > { %5297 = vmatprep.mubr.msk.bf16.mxu0 %vm5987_vm1, %v5986_v2 }
 0x22f   : > { %5016 = vmatmul.mubr.msk.bf16.gmra.mrb[16].mxu1 %vm257_vm4, %v2078_v57 }
 0x231   : > { %5298 = vmatmul.mubr.msk.bf16.gmra.mrb[12].mxu0 %vm257_vm4, %v3933_v63 }
 0x232   : > { %5301 = vmatprep.mubr.msk.bf16.mxu0 %vm5987_vm1, %v5986_v2 }
 0x239   : > { %5302 = vmatmul.mubr.msk.bf16.gmra.mrb[16].mxu0 %vm257_vm4, %v3935_v12 }
 0x2d2   : > { %v1971_v22 = vpop.f32.mrb[0].mxu1 }
 0x2d3   : > { %v4979_v45 = vpop.f32.mrb[1].mxu1 }
 0x2d4   : > { %v1974_v1 = vpop.f32.mrb[2].mxu1 }
 0x2d5   : > { %v4980_v5 = vpop.f32.mrb[3].mxu1 }
 0x2da   : > { %v1979_v61 = vpop.f32.mrb[4].mxu1 }
 0x2db   : > { %v4983_v47 = vpop.f32.mrb[5].mxu1 }
 0x2dc   : > { %v1982_v15 = vpop.f32.mrb[6].mxu1 }
 0x2dd   : > { %v4984_v33 = vpop.f32.mrb[7].mxu1 }
 0x2e2   : > { %v1987_v42 = vpop.f32.mrb[8].mxu1 }
 0x2e3   : > { %v4987_v0 = vpop.f32.mrb[9].mxu1 }
 0x2e4   : > { %v1990_v2 = vpop.f32.mrb[10].mxu1 }
 0x2e5   : > { %v4988_v21 = vpop.f32.mrb[11].mxu1 }
 0x2ec   : > { %v3988_v60 = vpop.f32.mrb[0].mxu0 }
 0x2ed   : > { %v5307_v4 = vadd.f32 %v3988_v60, %v1971_v22  ;;  %v5287_v48 = vpop.f32.mrb[1].mxu0 }
 0x2ee   : > { %v3991_v44 = vpop.f32.mrb[2].mxu0 }
 0x2ef   : > { %v4539_v14 = vpack.c.bf16 %v5307_v4, %v5307_v4  ;;  %v5308_v6 = vadd.f32 %v3991_v44, %v1974_v1  ;;  %v5288_v43 = vpop.f32.mrb[3].mxu0 }
 0x2f1   : > { %4078 = vst.msk [vmem:[%s7152_s20] sm:$0xf] %vm4077_vm9, %v4539_v14  ;;  %v4540_v51 = vpack.c.bf16 %v5308_v6, %v5308_v6 }
 0x2f3   : > { %4079 = vst.msk [vmem:[%s7152_s20 + $0x4] sm:$0xf] %vm4077_vm9, %v4540_v51 }
 0x2f4   : > { %v3996_v16 = vpop.f32.mrb[4].mxu0 }
 0x2f5   : > { %v5309_v20 = vadd.f32 %v3996_v16, %v1979_v61  ;;  %v5291_v10 = vpop.f32.mrb[5].mxu0 }
 0x2f6   : > { %v3999_v11 = vpop.f32.mrb[6].mxu0 }
 0x2f7   : > { %v4541_v36 = vpack.c.bf16 %v5309_v20, %v5309_v20  ;;  %v5310_v62 = vadd.f32 %v3999_v11, %v1982_v15  ;;  %v5292_v3 = vpop.f32.mrb[7].mxu0 }
 0x2f9   : > { %4080 = vst.msk [vmem:[%s7152_s20 + $0x8] sm:$0xf] %vm4077_vm9, %v4541_v36  ;;  %v4542_v18 = vpack.c.bf16 %v5310_v62, %v5310_v62 }
 0x2fa   : > { %v2155_v24 = vpop.f32.mrb[12].mxu1 }
 0x2fb   : > { %v5013_v25 = vpop.f32.mrb[13].mxu1  ;;  %4081 = vst.msk [vmem:[%s7152_s20 + $0xc] sm:$0xf] %vm4077_vm9, %v4542_v18 }
 0x2fc   : > { %v2158_v27 = vpop.f32.mrb[14].mxu1  ;;  %v4004_v30 = vpop.f32.mrb[8].mxu0 }
 0x2fd   : > { %v5014_v58 = vpop.f32.mrb[15].mxu1  ;;  %v5311_v40 = vadd.f32 %v4004_v30, %v1987_v42  ;;  %v5295_v32 = vpop.f32.mrb[9].mxu0 }
 0x2fe   : > { %v4007_v19 = vpop.f32.mrb[10].mxu0 }
 0x2ff   : > { %v4543_v35 = vpack.c.bf16 %v5311_v40, %v5311_v40  ;;  %v5312_v46 = vadd.f32 %v4007_v19, %v1990_v2  ;;  %v5296_v54 = vpop.f32.mrb[11].mxu0 }
 0x301   : > { %4082 = vst.msk [vmem:[%s7152_s20 + $0x10] sm:$0xf] %vm4077_vm9, %v4543_v35  ;;  %v4544_v37 = vpack.c.bf16 %v5312_v46, %v5312_v46 }
 0x302   : > { %v2163_v56 = vpop.f32.mrb[16].mxu1 }
 0x303   : > { %v5017_v38 = vpop.f32.mrb[17].mxu1  ;;  %4083 = vst.msk [vmem:[%s7152_s20 + $0x14] sm:$0xf] %vm4077_vm9, %v4544_v37 }
 0x304   : > { %v2166_v41 = vpop.f32.mrb[18].mxu1  ;;  %v4012_v34 = vpop.f32.mrb[12].mxu0 }
 0x305   : > { %v5018_v59 = vpop.f32.mrb[19].mxu1  ;;  %v5313_v26 = vadd.f32 %v4012_v34, %v2155_v24  ;;  %v5299_v28 = vpop.f32.mrb[13].mxu0 }
 0x306   : > { %v4015_v49 = vpop.f32.mrb[14].mxu0 }
 0x307   : > { %v4545_v50 = vpack.c.bf16 %v5313_v26, %v5313_v26  ;;  %v5314_v39 = vadd.f32 %v4015_v49, %v2158_v27  ;;  %v5300_v31 = vpop.f32.mrb[15].mxu0 }
 0x309   : > { %4084 = vst.msk [vmem:[%s7152_s20 + $0x18] sm:$0xf] %vm4077_vm9, %v4545_v50  ;;  %v4546_v23 = vpack.c.bf16 %v5314_v39, %v5314_v39 }
 0x30b   : > { %4085 = vst.msk [vmem:[%s7152_s20 + $0x1c] sm:$0xf] %vm4077_vm9, %v4546_v23 }
 0x30c   : > { %v4020_v8 = vpop.f32.mrb[16].mxu0 }
 0x30d   : > { %v5315_v17 = vadd.f32 %v4020_v8, %v2163_v56  ;;  %v5303_v7 = vpop.f32.mrb[17].mxu0 }
 0x30e   : > { %v4023_v13 = vpop.f32.mrb[18].mxu0 }
 0x30f   : > { %v4547_v55 = vpack.c.bf16 %v5315_v17, %v5315_v17  ;;  %v5316_v52 = vadd.f32 %v4023_v13, %v2166_v41  ;;  %v5304_v29 = vpop.f32.mrb[19].mxu0 }
 0x311   : > { %4086 = vst.msk [vmem:[%s7152_s20 + $0x20] sm:$0xf] %vm4077_vm9, %v4547_v55  ;;  %v4548_v9 = vpack.c.bf16 %v5316_v52, %v5316_v52 }
 0x313   : > { %4087 = vst.msk [vmem:[%s7152_s20 + $0x24] sm:$0xf] %vm4077_vm9, %v4548_v9 }
 0x314 PF: > { %s12_s13 = sadd.s32 1, %s5984_s13   ;;  %s7192_s9 = smov %s5976_s11 }
 0x315   : > { %p9_p7 = scmp.ge.s32.totalorder %s12_s13, 10   ;;  %s7193_s10 = smov %s5980_s12 }
 0x316   : > { %s7194_s11 = smov %s7197_s14  ;;  %s7195_s12 = smov %s7201_s15 }
 0x317   :  { %11 = sbr.rel (!%p9_p7) target bundleno = 3 (0x3), region = 87 }

</bundles_post_ra>
